<compile_context>
chip_gen: v5e
topology: v5e:2x2
jax: 0.10.0
libtpu: 0.0.40
codegen_flags: <defaults>
</compile_context>

<pallas_src>
import jax
import jax.numpy as jnp
from jax import lax
from jax.experimental import pallas as pl
from jax.experimental.pallas import tpu as pltpu

# ---- module hyper-parameters (class_to_id / elem_to_id sizes chosen synthetically) ----
LEN_ELEM_TO_ID = 3
LEN_CLASS_TO_ID = 6                       # output_dim_id = len(class_to_id)
INPUT_DIM = LEN_ELEM_TO_ID + 4 + 1        # must cover the p4 slice x[:, 3:7]
HIDDEN = 32
OUT_P4 = 4
SPACE_DIM = 2
SPACE_PAD = 8                             # spatial projection zero-padded to 8 rows
K_NEAREST = 3
NEG_SLOPE = 0.01                          # nn.LeakyReLU default
LANES = 128

# bf16 operands for the dominant (H,N)@(N,N) gravnet message matmul on every
# generation (v5e/v6e/v7x MXUs are all bf16-native with f32 accumulate); the
# one-hot selection matrix is exact in bf16.
MSG_MM_DTYPE = jnp.bfloat16

PACK_W = HIDDEN                           # every transposed block has fan_in <= HIDDEN

_LAYERS = [
    # nn1
    ('nn1_0', INPUT_DIM, HIDDEN), ('nn1_1', HIDDEN, HIDDEN),
    ('nn1_2', HIDDEN, HIDDEN), ('nn1_3', HIDDEN, HIDDEN),
    # conv1: lin_s, lin_h, lin([mean, max, x])
    ('c1_s', HIDDEN, SPACE_DIM), ('c1_h', HIDDEN, HIDDEN), ('c1_o', 3 * HIDDEN, HIDDEN),
    # conv2
    ('c2_s', HIDDEN, SPACE_DIM), ('c2_h', HIDDEN, HIDDEN), ('c2_o', 3 * HIDDEN, HIDDEN),
    # nn2
    ('nn2_0', HIDDEN, HIDDEN), ('nn2_1', HIDDEN, HIDDEN),
    ('nn2_2', HIDDEN, HIDDEN), ('nn2_3', HIDDEN, LEN_CLASS_TO_ID),
    # nn3
    ('nn3_0', HIDDEN + LEN_CLASS_TO_ID, HIDDEN), ('nn3_1', HIDDEN, HIDDEN),
    ('nn3_2', HIDDEN, HIDDEN), ('nn3_3', HIDDEN, OUT_P4),
]


def _align8(r):
    return (r + 7) & ~7


def init_packed_params(key):
    """PyTorch-Linear-style uniform(-1/sqrt(fan_in), 1/sqrt(fan_in)) init, packed
    FEATURE-MAJOR into ONE (rows, HIDDEN) f32 slab: each weight is stored as
    W.T (fan_out, fan_in) and each bias as a (fan_out, 1) column, every block at an
    8-aligned row.  The gravnet output (3H, H) and nn3 layer-0 (H+C, H) weights are
    stored column-split (split-weight matmuls instead of lane concats); the 2-dim
    spatial projections are zero-padded to SPACE_PAD rows.
    Returns (slab, idx) with idx: name -> (row_offset, rows, cols)."""
    keys = jax.random.split(key, len(_LAYERS))
    entries = []
    for k, (name, fi, fo) in zip(keys, _LAYERS):
        kw, kb = jax.random.split(k)
        bound = 1.0 / (fi ** 0.5)
        w = jax.random.uniform(kw, (fi, fo), jnp.float32, -bound, bound)
        b = jax.random.uniform(kb, (fo,), jnp.float32, -bound, bound)
        wt, bt = w.T, b[:, None]                              # (fo, fi), (fo, 1)
        if name in ('c1_s', 'c2_s'):                          # pad fan_out 2 -> 8
            wt = jnp.zeros((SPACE_PAD, fi), jnp.float32).at[:fo].set(wt)
            bt = jnp.zeros((SPACE_PAD, 1), jnp.float32).at[:fo].set(bt)
        if name in ('c1_o', 'c2_o'):
            entries += [(name + '_mean', wt[:, 0:HIDDEN]),
                        (name + '_max', wt[:, HIDDEN:2 * HIDDEN]),
                        (name + '_self', wt[:, 2 * HIDDEN:3 * HIDDEN]),
                        (name + '_b', bt)]
        elif name == 'nn3_0':
            entries += [(name + '_h', wt[:, 0:HIDDEN]),
                        (name + '_id', wt[:, HIDDEN:]),
                        (name + '_b', bt)]
        else:
            entries += [(name + '_w', wt), (name + '_b', bt)]

    idx, off = {}, 0
    for nm, arr in entries:
        idx[nm] = (off, arr.shape[0], arr.shape[1])
        off += _align8(arr.shape[0])
    slab = jnp.zeros((_align8(off), PACK_W), jnp.float32)
    for nm, arr in entries:
        o = idx[nm][0]
        slab = slab.at[o:o + arr.shape[0], 0:arr.shape[1]].set(arr)
    return slab, idx


def _make_kernel(idx, n_real, n_pad):
    idx_bits = max(1, (n_pad - 1).bit_length())   # bits needed for a candidate index
    idx_mask = (1 << idx_bits) - 1
    sentinel = 0x7FFFFFFF                         # Python int (NOT a jnp constant):
                                                  # > any valid packed key

    def kernel(xT_ref, p_ref, ids_ref, p4_ref):
        def par(name):
            off, rows, cols = idx[name]
            return p_ref[off:off + rows, 0:cols]  # static slice of the param slab

        def lin(vT, layer):                       # feature-major: (fo,fi)@(fi,N)+(fo,1)
            return jnp.dot(par(layer + '_w'), vT,
                           preferred_element_type=jnp.float32) + par(layer + '_b')

        def leaky(v):
            return jnp.maximum(v, NEG_SLOPE * v)  # one mul + one max on the VPU

        xT = xT_ref[...]                          # (INPUT_DIM, N) feature-major

        # ---------------- nn1 ----------------
        h = leaky(lin(xT, 'nn1_0'))
        h = leaky(lin(h, 'nn1_1'))
        h = leaky(lin(h, 'nn1_2'))
        h = leaky(lin(h, 'nn1_3'))

        # Hoisted ONCE for both convs (JAX does not CSE broadcast_in_dim):
        # candidate-row iota and the padded-candidate mask.
        cand = lax.broadcasted_iota(jnp.int32, (n_pad, n_pad), 0)      # candidate j
        pad_cand = None
        if n_real < n_pad:
            pad_cand = lax.broadcasted_iota(jnp.int32, (n_pad, 1), 0) >= n_real

        # ---------------- GravNetConv (transposed / feature-major view) ---------
        def gravnet(vT, pfx):
            sT = lin(vT, pfx + '_s')              # (SPACE_PAD, N); rows >= 2 are 0
            hpT = lin(vT, pfx + '_h')             # (H, N)

            # pairwise squared distances d[j, i] = |s_j - s_i|^2  (symmetric)
            sN = jnp.transpose(sT)                # (N, SPACE_PAD) — tiny, tile-aligned
            g = jnp.dot(sN, sT, preferred_element_type=jnp.float32)    # (N, N)
            sq_r = jnp.sum(sT * sT, axis=0, keepdims=True)             # (1, N)
            sq_c = jnp.sum(sN * sN, axis=1, keepdims=True)             # (N, 1)
            d = jnp.maximum(sq_c + sq_r - 2.0 * g, 0.0)                # (N, N) >= 0

            # Fused argmin key: ordered non-negative f32 distance bits with the
            # candidate row index packed into the low idx_bits.  One int32
            # column-min per k-round yields both the neighbor index and its
            # distance -> exp() runs only on the selected (1, N) distances.
            dbits = pltpu.bitcast(d, jnp.int32)
            key = (dbits & (~idx_mask)) | cand
            if pad_cand is not None:              # padded rows never selected
                key = jnp.where(pad_cand, sentinel, key)

            hp_m = hpT.astype(MSG_MM_DTYPE)       # hoisted cast (out of the k-loop)
            mean_sum = jnp.zeros(hpT.shape, jnp.float32)
            max_agg = jnp.full(hpT.shape, -jnp.inf, jnp.float32)
            for _ in range(K_NEAREST):
                kmin = jnp.min(key, axis=0, keepdims=True)             # (1, N) int32
                sel = kmin & idx_mask                                  # argmin row
                d_sel = pltpu.bitcast(kmin & (~idx_mask), jnp.float32)
                w_sel = jnp.exp(-10.0 * d_sel)                         # (1, N) only
                onehotT = cand == sel                                  # (N, N) bool
                # single lane-dense matmul per round, reused for mean AND max
                msg = w_sel * jnp.dot(hp_m, onehotT.astype(MSG_MM_DTYPE),
                                      preferred_element_type=jnp.float32)   # (H, N)
                mean_sum = mean_sum + msg
                max_agg = jnp.maximum(max_agg, msg)
                key = jnp.where(onehotT, sentinel, key)                # drop selected
            mean_agg = mean_sum * (1.0 / K_NEAREST)   # scatter 'mean' (k msgs/node)

            # split-weight matmuls replace concat([mean, max, v]) @ W
            return (jnp.dot(par(pfx + '_o_mean'), mean_agg,
                            preferred_element_type=jnp.float32)
                    + jnp.dot(par(pfx + '_o_max'), max_agg,
                              preferred_element_type=jnp.float32)
                    + jnp.dot(par(pfx + '_o_self'), vT,
                              preferred_element_type=jnp.float32)
                    + par(pfx + '_o_b'))

        h = leaky(gravnet(h, 'c1'))
        h = leaky(gravnet(h, 'c2'))

        # ---------------- nn2 -> cand_ids ----------------
        t = leaky(lin(h, 'nn2_0'))
        t = leaky(lin(t, 'nn2_1'))
        t = leaky(lin(t, 'nn2_2'))
        cand_ids = lin(t, 'nn2_3')                                     # (n_ids, N)

        # ---------------- nn3 -> cand_p4 (split-weight instead of concat) -------
        u = leaky(jnp.dot(par('nn3_0_h'), h, preferred_element_type=jnp.float32)
                  + jnp.dot(par('nn3_0_id'), cand_ids,
                            preferred_element_type=jnp.float32)
                  + par('nn3_0_b'))
        u = leaky(lin(u, 'nn3_1'))
        u = leaky(lin(u, 'nn3_2'))
        delta_p4 = lin(u, 'nn3_3')                                     # (4, N)
        cand_p4 = xT[LEN_ELEM_TO_ID:LEN_ELEM_TO_ID + OUT_P4, :] + delta_p4

        # full-ref, lane-dense stores (no masked partial-column writes)
        ids_ref[...] = cand_ids
        p4_ref[...] = cand_p4

    return kernel


def _vmem_limit_bytes(n_pad):
    # ~5 live (N,N) i32/f32/bf16 buffers per conv in the dense kNN, plus the param
    # slab and (C,N) activations.  Capped at 64 MiB so the setting is legal on v7x
    # (64 MiB per-TC VMEM) as well as v5e/v6e (128 MiB).
    need = 24 * n_pad * n_pad + (8 << 20)
    return int(min(64 << 20, max(32 << 20, need)))


def _cost_estimate(n, slab_rows):
    h, sp, c, k = HIDDEN, SPACE_PAD, LEN_CLASS_TO_ID, K_NEAREST
    mm = n * (INPUT_DIM * h + 3 * h * h)                               # nn1
    mm += 2 * (n * (h * sp + h * h) + n * n * sp + k * n * n * h + 3 * n * h * h)
    mm += n * (3 * h * h + h * c)                                      # nn2
    mm += n * ((h + c) * h + 2 * h * h + h * OUT_P4)                   # nn3
    return pl.CostEstimate(
        flops=2 * mm,
        transcendentals=2 * k * n,                                     # exp on (1,N)
        bytes_accessed=4 * (n * INPUT_DIM + slab_rows * PACK_W
                            + n * (LEN_CLASS_TO_ID + OUT_P4)),
    )


def pfnet9_forward(x, edge_attr, pslab, idx):
    """x: (N, INPUT_DIM) f32, edge_attr: (E, 1) f32, pslab/idx from init_packed_params."""
    n = x.shape[0]
    # pad the node axis to a lane multiple: all kernel arrays stay lane-dense and
    # all loads/stores unmasked; padded candidates are masked inside the kNN.
    n_pad = max(LANES, ((n + LANES - 1) // LANES) * LANES)
    xT = jnp.zeros((INPUT_DIM, n_pad), jnp.float32).at[:, :n].set(jnp.transpose(x))

    vmem = pl.BlockSpec(memory_space=pltpu.MemorySpace.VMEM)
    ids_t, p4_t = pl.pallas_call(
        _make_kernel(idx, n, n_pad),
        out_shape=(jax.ShapeDtypeStruct((LEN_CLASS_TO_ID, n_pad), jnp.float32),
                   jax.ShapeDtypeStruct((OUT_P4, n_pad), jnp.float32)),
        in_specs=[vmem, vmem],
        out_specs=(vmem, vmem),
        compiler_params=pltpu.CompilerParams(
            vmem_limit_bytes=_vmem_limit_bytes(n_pad)),
        cost_estimate=_cost_estimate(n_pad, pslab.shape[0]),
    )(xT, pslab)

    cand_ids = jnp.transpose(ids_t[:, :n])
    cand_p4 = jnp.transpose(p4_t[:, :n])
    # sigmoid(edge_weight) is independent of the graph compute: stays in XLA so the
    # kernel carries no (E,1) input/output DMA.
    ew = jax.nn.sigmoid(edge_attr[:, 0])
    return ew, cand_ids, cand_p4                                       # torch shapes


if __name__ == "__main__":
    key = jax.random.PRNGKey(0)
    kx, ke, kp = jax.random.split(key, 3)

    N, E = 64, 128                                                     # small synthetic graph
    x = jax.random.normal(kx, (N, INPUT_DIM), jnp.float32)             # data.x
    edge_attr = jax.random.normal(ke, (E, 1), jnp.float32)             # data.edge_attr
    pslab, idx = init_packed_params(kp)

    ew, cand_ids, cand_p4 = pfnet9_forward(x, edge_attr, pslab, idx)
    jax.block_until_ready((ew, cand_ids, cand_p4))

    assert ew.shape == (E,)
    assert cand_ids.shape == (N, LEN_CLASS_TO_ID)
    assert cand_p4.shape == (N, OUT_P4)
    assert bool(jnp.all(jnp.isfinite(ew)))
    assert bool(jnp.all(jnp.isfinite(cand_ids)))
    assert bool(jnp.all(jnp.isfinite(cand_p4)))
    print("KERNEL_OK")
</pallas_src>

<mosaic_0001>
module attributes {stable_mosaic.version = 11 : i64} {
  func.func @kernel(%arg0: memref<8x128xf32, #tpu.memory_space<vmem>>, %arg1: memref<1120x32xf32, #tpu.memory_space<vmem>>, %arg2: memref<6x128xf32, #tpu.memory_space<vmem>>, %arg3: memref<4x128xf32, #tpu.memory_space<vmem>>) attributes {dimension_semantics = [], scalar_prefetch = 0 : i64, scratch_operands = 0 : i64, tpu.core_type = #tpu.core_type<tc>} {
    %c0 = arith.constant 0 : index
    %c0_0 = arith.constant 0 : index
    %0 = vector.load %arg0[%c0, %c0_0] : memref<8x128xf32, #tpu.memory_space<vmem>>, vector<8x128xf32>
    %c0_1 = arith.constant 0 : index
    %c0_2 = arith.constant 0 : index
    %1 = vector.load %arg1[%c0_1, %c0_2] : memref<1120x32xf32, #tpu.memory_space<vmem>>, vector<32x8xf32>
    %cst = arith.constant dense<0.000000e+00> : vector<32x128xf32>
    %2 = tpu.matmul %1, %0, %cst {dimension_numbers = #tpu.dot_dimension_numbers<[1], [0], [0], [1], [0, 0, 1, 1], [], []>} : vector<32x8xf32>, vector<8x128xf32>, vector<32x128xf32> -> vector<32x128xf32>
    %c32 = arith.constant 32 : index
    %c0_3 = arith.constant 0 : index
    %3 = vector.load %arg1[%c32, %c0_3] : memref<1120x32xf32, #tpu.memory_space<vmem>>, vector<32x1xf32>
    %4 = vector.broadcast %3 : vector<32x1xf32> to vector<32x128xf32>
    %5 = arith.addf %2, %4 : vector<32x128xf32>
    %cst_4 = arith.constant 0.00999999977 : f32
    %6 = vector.broadcast %cst_4 : f32 to vector<32x128xf32>
    %7 = arith.mulf %6, %5 : vector<32x128xf32>
    %8 = arith.maximumf %5, %7 : vector<32x128xf32>
    %c64 = arith.constant 64 : index
    %c0_5 = arith.constant 0 : index
    %9 = vector.load %arg1[%c64, %c0_5] : memref<1120x32xf32, #tpu.memory_space<vmem>>, vector<32x32xf32>
    %cst_6 = arith.constant dense<0.000000e+00> : vector<32x128xf32>
    %10 = tpu.matmul %9, %8, %cst_6 {dimension_numbers = #tpu.dot_dimension_numbers<[1], [0], [0], [1], [0, 0, 1, 1], [], []>} : vector<32x32xf32>, vector<32x128xf32>, vector<32x128xf32> -> vector<32x128xf32>
    %c96 = arith.constant 96 : index
    %c0_7 = arith.constant 0 : index
    %11 = vector.load %arg1[%c96, %c0_7] : memref<1120x32xf32, #tpu.memory_space<vmem>>, vector<32x1xf32>
    %12 = vector.broadcast %11 : vector<32x1xf32> to vector<32x128xf32>
    %13 = arith.addf %10, %12 : vector<32x128xf32>
    %cst_8 = arith.constant 0.00999999977 : f32
    %14 = vector.broadcast %cst_8 : f32 to vector<32x128xf32>
    %15 = arith.mulf %14, %13 : vector<32x128xf32>
    %16 = arith.maximumf %13, %15 : vector<32x128xf32>
    %c128 = arith.constant 128 : index
    %c0_9 = arith.constant 0 : index
    %17 = vector.load %arg1[%c128, %c0_9] : memref<1120x32xf32, #tpu.memory_space<vmem>>, vector<32x32xf32>
    %cst_10 = arith.constant dense<0.000000e+00> : vector<32x128xf32>
    %18 = tpu.matmul %17, %16, %cst_10 {dimension_numbers = #tpu.dot_dimension_numbers<[1], [0], [0], [1], [0, 0, 1, 1], [], []>} : vector<32x32xf32>, vector<32x128xf32>, vector<32x128xf32> -> vector<32x128xf32>
    %c160 = arith.constant 160 : index
    %c0_11 = arith.constant 0 : index
    %19 = vector.load %arg1[%c160, %c0_11] : memref<1120x32xf32, #tpu.memory_space<vmem>>, vector<32x1xf32>
    %20 = vector.broadcast %19 : vector<32x1xf32> to vector<32x128xf32>
    %21 = arith.addf %18, %20 : vector<32x128xf32>
    %cst_12 = arith.constant 0.00999999977 : f32
    %22 = vector.broadcast %cst_12 : f32 to vector<32x128xf32>
    %23 = arith.mulf %22, %21 : vector<32x128xf32>
    %24 = arith.maximumf %21, %23 : vector<32x128xf32>
    %c192 = arith.constant 192 : index
    %c0_13 = arith.constant 0 : index
    %25 = vector.load %arg1[%c192, %c0_13] : memref<1120x32xf32, #tpu.memory_space<vmem>>, vector<32x32xf32>
    %cst_14 = arith.constant dense<0.000000e+00> : vector<32x128xf32>
    %26 = tpu.matmul %25, %24, %cst_14 {dimension_numbers = #tpu.dot_dimension_numbers<[1], [0], [0], [1], [0, 0, 1, 1], [], []>} : vector<32x32xf32>, vector<32x128xf32>, vector<32x128xf32> -> vector<32x128xf32>
    %c224 = arith.constant 224 : index
    %c0_15 = arith.constant 0 : index
    %27 = vector.load %arg1[%c224, %c0_15] : memref<1120x32xf32, #tpu.memory_space<vmem>>, vector<32x1xf32>
    %28 = vector.broadcast %27 : vector<32x1xf32> to vector<32x128xf32>
    %29 = arith.addf %26, %28 : vector<32x128xf32>
    %cst_16 = arith.constant 0.00999999977 : f32
    %30 = vector.broadcast %cst_16 : f32 to vector<32x128xf32>
    %31 = arith.mulf %30, %29 : vector<32x128xf32>
    %32 = arith.maximumf %29, %31 : vector<32x128xf32>
    %33 = tpu.iota {dimensions = array<i32: 0>} : vector<128x128xi32>
    %34 = tpu.iota {dimensions = array<i32: 0>} : vector<128x1xi32>
    %c64_i32 = arith.constant 64 : i32
    %35 = vector.broadcast %c64_i32 : i32 to vector<128x1xi32>
    %36 = arith.cmpi sge, %34, %35 : vector<128x1xi32>
    %c256 = arith.constant 256 : index
    %c0_17 = arith.constant 0 : index
    %37 = vector.load %arg1[%c256, %c0_17] : memref<1120x32xf32, #tpu.memory_space<vmem>>, vector<8x32xf32>
    %cst_18 = arith.constant dense<0.000000e+00> : vector<8x128xf32>
    %38 = tpu.matmul %37, %32, %cst_18 {dimension_numbers = #tpu.dot_dimension_numbers<[1], [0], [0], [1], [0, 0, 1, 1], [], []>} : vector<8x32xf32>, vector<32x128xf32>, vector<8x128xf32> -> vector<8x128xf32>
    %c264 = arith.constant 264 : index
    %c0_19 = arith.constant 0 : index
    %39 = vector.load %arg1[%c264, %c0_19] : memref<1120x32xf32, #tpu.memory_space<vmem>>, vector<8x1xf32>
    %40 = vector.broadcast %39 : vector<8x1xf32> to vector<8x128xf32>
    %41 = arith.addf %38, %40 : vector<8x128xf32>
    %c272 = arith.constant 272 : index
    %c0_20 = arith.constant 0 : index
    %42 = vector.load %arg1[%c272, %c0_20] : memref<1120x32xf32, #tpu.memory_space<vmem>>, vector<32x32xf32>
    %cst_21 = arith.constant dense<0.000000e+00> : vector<32x128xf32>
    %43 = tpu.matmul %42, %32, %cst_21 {dimension_numbers = #tpu.dot_dimension_numbers<[1], [0], [0], [1], [0, 0, 1, 1], [], []>} : vector<32x32xf32>, vector<32x128xf32>, vector<32x128xf32> -> vector<32x128xf32>
    %c304 = arith.constant 304 : index
    %c0_22 = arith.constant 0 : index
    %44 = vector.load %arg1[%c304, %c0_22] : memref<1120x32xf32, #tpu.memory_space<vmem>>, vector<32x1xf32>
    %45 = vector.broadcast %44 : vector<32x1xf32> to vector<32x128xf32>
    %46 = arith.addf %43, %45 : vector<32x128xf32>
    %47 = tpu.transpose %41, [1, 0] : vector<8x128xf32> -> vector<128x8xf32>
    %cst_23 = arith.constant dense<0.000000e+00> : vector<128x128xf32>
    %48 = tpu.matmul %47, %41, %cst_23 {dimension_numbers = #tpu.dot_dimension_numbers<[1], [0], [0], [1], [0, 0, 1, 1], [], []>} : vector<128x8xf32>, vector<8x128xf32>, vector<128x128xf32> -> vector<128x128xf32>
    %49 = arith.mulf %41, %41 : vector<8x128xf32>
    %cst_24 = arith.constant dense<0.000000e+00> : vector<128xf32>
    %50 = vector.multi_reduction <add>, %49, %cst_24 [0] : vector<8x128xf32> to vector<128xf32>
    %51 = vector.shape_cast %50 : vector<128xf32> to vector<1x128xf32>
    %52 = arith.mulf %47, %47 : vector<128x8xf32>
    %cst_25 = arith.constant dense<0.000000e+00> : vector<128xf32>
    %53 = vector.multi_reduction <add>, %52, %cst_25 [1] : vector<128x8xf32> to vector<128xf32>
    %54 = vector.shape_cast %53 : vector<128xf32> to vector<128x1xf32>
    %55 = vector.broadcast %54 : vector<128x1xf32> to vector<128x128xf32>
    %56 = vector.broadcast %51 : vector<1x128xf32> to vector<128x128xf32>
    %57 = arith.addf %55, %56 : vector<128x128xf32>
    %cst_26 = arith.constant 2.000000e+00 : f32
    %58 = vector.broadcast %cst_26 : f32 to vector<128x128xf32>
    %59 = arith.mulf %58, %48 : vector<128x128xf32>
    %60 = arith.subf %57, %59 : vector<128x128xf32>
    %cst_27 = arith.constant 0.000000e+00 : f32
    %61 = vector.broadcast %cst_27 : f32 to vector<128x128xf32>
    %62 = arith.maximumf %60, %61 : vector<128x128xf32>
    %63 = tpu.bitcast %62 : vector<128x128xf32> -> vector<128x128xi32>
    %c-128_i32 = arith.constant -128 : i32
    %64 = vector.broadcast %c-128_i32 : i32 to vector<128x128xi32>
    %65 = arith.andi %63, %64 : vector<128x128xi32>
    %66 = arith.ori %65, %33 : vector<128x128xi32>
    %c2147483647_i32 = arith.constant 2147483647 : i32
    %67 = vector.shape_cast %36 : vector<128x1xi1> to vector<128x1xi1>
    %68 = vector.broadcast %67 : vector<128x1xi1> to vector<128x128xi1>
    %69 = vector.broadcast %c2147483647_i32 : i32 to vector<128x128xi32>
    %70 = arith.select %68, %69, %66 : vector<128x128xi1>, vector<128x128xi32>
    %71 = arith.truncf %46 : vector<32x128xf32> to vector<32x128xbf16>
    %cst_28 = arith.constant 0.000000e+00 : f32
    %72 = vector.broadcast %cst_28 : f32 to vector<32x128xf32>
    %cst_29 = arith.constant 0xFF800000 : f32
    %73 = vector.broadcast %cst_29 : f32 to vector<32x128xf32>
    %cst_30 = arith.constant dense<2147483647> : vector<128xi32>
    %74 = vector.multi_reduction <minsi>, %70, %cst_30 [0] : vector<128x128xi32> to vector<128xi32>
    %75 = vector.shape_cast %74 : vector<128xi32> to vector<1x128xi32>
    %c127_i32 = arith.constant 127 : i32
    %76 = vector.broadcast %c127_i32 : i32 to vector<1x128xi32>
    %77 = arith.andi %75, %76 : vector<1x128xi32>
    %c-128_i32_31 = arith.constant -128 : i32
    %78 = vector.broadcast %c-128_i32_31 : i32 to vector<1x128xi32>
    %79 = arith.andi %75, %78 : vector<1x128xi32>
    %80 = tpu.bitcast %79 : vector<1x128xi32> -> vector<1x128xf32>
    %cst_32 = arith.constant -1.000000e+01 : f32
    %81 = vector.broadcast %cst_32 : f32 to vector<1x128xf32>
    %82 = arith.mulf %81, %80 : vector<1x128xf32>
    %83 = math.exp %82 : vector<1x128xf32>
    %84 = vector.broadcast %77 : vector<1x128xi32> to vector<128x128xi32>
    %85 = arith.cmpi eq, %33, %84 : vector<128x128xi32>
    %86 = arith.extui %85 : vector<128x128xi1> to vector<128x128xi32>
    %87 = arith.sitofp %86 : vector<128x128xi32> to vector<128x128xf32>
    %88 = arith.truncf %87 : vector<128x128xf32> to vector<128x128xbf16>
    %cst_33 = arith.constant dense<0.000000e+00> : vector<32x128xf32>
    %89 = tpu.matmul %71, %88, %cst_33 {dimension_numbers = #tpu.dot_dimension_numbers<[1], [0], [0], [1], [0, 0, 1, 1], [], []>} : vector<32x128xbf16>, vector<128x128xbf16>, vector<32x128xf32> -> vector<32x128xf32>
    %90 = vector.broadcast %83 : vector<1x128xf32> to vector<32x128xf32>
    %91 = arith.mulf %90, %89 : vector<32x128xf32>
    %92 = arith.addf %72, %91 : vector<32x128xf32>
    %93 = arith.maximumf %73, %91 : vector<32x128xf32>
    %c2147483647_i32_34 = arith.constant 2147483647 : i32
    %94 = vector.broadcast %c2147483647_i32_34 : i32 to vector<128x128xi32>
    %95 = arith.select %85, %94, %70 : vector<128x128xi1>, vector<128x128xi32>
    %cst_35 = arith.constant dense<2147483647> : vector<128xi32>
    %96 = vector.multi_reduction <minsi>, %95, %cst_35 [0] : vector<128x128xi32> to vector<128xi32>
    %97 = vector.shape_cast %96 : vector<128xi32> to vector<1x128xi32>
    %c127_i32_36 = arith.constant 127 : i32
    %98 = vector.broadcast %c127_i32_36 : i32 to vector<1x128xi32>
    %99 = arith.andi %97, %98 : vector<1x128xi32>
    %c-128_i32_37 = arith.constant -128 : i32
    %100 = vector.broadcast %c-128_i32_37 : i32 to vector<1x128xi32>
    %101 = arith.andi %97, %100 : vector<1x128xi32>
    %102 = tpu.bitcast %101 : vector<1x128xi32> -> vector<1x128xf32>
    %cst_38 = arith.constant -1.000000e+01 : f32
    %103 = vector.broadcast %cst_38 : f32 to vector<1x128xf32>
    %104 = arith.mulf %103, %102 : vector<1x128xf32>
    %105 = math.exp %104 : vector<1x128xf32>
    %106 = vector.broadcast %99 : vector<1x128xi32> to vector<128x128xi32>
    %107 = arith.cmpi eq, %33, %106 : vector<128x128xi32>
    %108 = arith.extui %107 : vector<128x128xi1> to vector<128x128xi32>
    %109 = arith.sitofp %108 : vector<128x128xi32> to vector<128x128xf32>
    %110 = arith.truncf %109 : vector<128x128xf32> to vector<128x128xbf16>
    %cst_39 = arith.constant dense<0.000000e+00> : vector<32x128xf32>
    %111 = tpu.matmul %71, %110, %cst_39 {dimension_numbers = #tpu.dot_dimension_numbers<[1], [0], [0], [1], [0, 0, 1, 1], [], []>} : vector<32x128xbf16>, vector<128x128xbf16>, vector<32x128xf32> -> vector<32x128xf32>
    %112 = vector.broadcast %105 : vector<1x128xf32> to vector<32x128xf32>
    %113 = arith.mulf %112, %111 : vector<32x128xf32>
    %114 = arith.addf %92, %113 : vector<32x128xf32>
    %115 = arith.maximumf %93, %113 : vector<32x128xf32>
    %c2147483647_i32_40 = arith.constant 2147483647 : i32
    %116 = vector.broadcast %c2147483647_i32_40 : i32 to vector<128x128xi32>
    %117 = arith.select %107, %116, %95 : vector<128x128xi1>, vector<128x128xi32>
    %cst_41 = arith.constant dense<2147483647> : vector<128xi32>
    %118 = vector.multi_reduction <minsi>, %117, %cst_41 [0] : vector<128x128xi32> to vector<128xi32>
    %119 = vector.shape_cast %118 : vector<128xi32> to vector<1x128xi32>
    %c127_i32_42 = arith.constant 127 : i32
    %120 = vector.broadcast %c127_i32_42 : i32 to vector<1x128xi32>
    %121 = arith.andi %119, %120 : vector<1x128xi32>
    %c-128_i32_43 = arith.constant -128 : i32
    %122 = vector.broadcast %c-128_i32_43 : i32 to vector<1x128xi32>
    %123 = arith.andi %119, %122 : vector<1x128xi32>
    %124 = tpu.bitcast %123 : vector<1x128xi32> -> vector<1x128xf32>
    %cst_44 = arith.constant -1.000000e+01 : f32
    %125 = vector.broadcast %cst_44 : f32 to vector<1x128xf32>
    %126 = arith.mulf %125, %124 : vector<1x128xf32>
    %127 = math.exp %126 : vector<1x128xf32>
    %128 = vector.broadcast %121 : vector<1x128xi32> to vector<128x128xi32>
    %129 = arith.cmpi eq, %33, %128 : vector<128x128xi32>
    %130 = arith.extui %129 : vector<128x128xi1> to vector<128x128xi32>
    %131 = arith.sitofp %130 : vector<128x128xi32> to vector<128x128xf32>
    %132 = arith.truncf %131 : vector<128x128xf32> to vector<128x128xbf16>
    %cst_45 = arith.constant dense<0.000000e+00> : vector<32x128xf32>
    %133 = tpu.matmul %71, %132, %cst_45 {dimension_numbers = #tpu.dot_dimension_numbers<[1], [0], [0], [1], [0, 0, 1, 1], [], []>} : vector<32x128xbf16>, vector<128x128xbf16>, vector<32x128xf32> -> vector<32x128xf32>
    %134 = vector.broadcast %127 : vector<1x128xf32> to vector<32x128xf32>
    %135 = arith.mulf %134, %133 : vector<32x128xf32>
    %136 = arith.addf %114, %135 : vector<32x128xf32>
    %137 = arith.maximumf %115, %135 : vector<32x128xf32>
    %cst_46 = arith.constant 0.333333343 : f32
    %138 = vector.broadcast %cst_46 : f32 to vector<32x128xf32>
    %139 = arith.mulf %136, %138 : vector<32x128xf32>
    %c336 = arith.constant 336 : index
    %c0_47 = arith.constant 0 : index
    %140 = vector.load %arg1[%c336, %c0_47] : memref<1120x32xf32, #tpu.memory_space<vmem>>, vector<32x32xf32>
    %cst_48 = arith.constant dense<0.000000e+00> : vector<32x128xf32>
    %141 = tpu.matmul %140, %139, %cst_48 {dimension_numbers = #tpu.dot_dimension_numbers<[1], [0], [0], [1], [0, 0, 1, 1], [], []>} : vector<32x32xf32>, vector<32x128xf32>, vector<32x128xf32> -> vector<32x128xf32>
    %c368 = arith.constant 368 : index
    %c0_49 = arith.constant 0 : index
    %142 = vector.load %arg1[%c368, %c0_49] : memref<1120x32xf32, #tpu.memory_space<vmem>>, vector<32x32xf32>
    %cst_50 = arith.constant dense<0.000000e+00> : vector<32x128xf32>
    %143 = tpu.matmul %142, %137, %cst_50 {dimension_numbers = #tpu.dot_dimension_numbers<[1], [0], [0], [1], [0, 0, 1, 1], [], []>} : vector<32x32xf32>, vector<32x128xf32>, vector<32x128xf32> -> vector<32x128xf32>
    %144 = arith.addf %141, %143 : vector<32x128xf32>
    %c400 = arith.constant 400 : index
    %c0_51 = arith.constant 0 : index
    %145 = vector.load %arg1[%c400, %c0_51] : memref<1120x32xf32, #tpu.memory_space<vmem>>, vector<32x32xf32>
    %cst_52 = arith.constant dense<0.000000e+00> : vector<32x128xf32>
    %146 = tpu.matmul %145, %32, %cst_52 {dimension_numbers = #tpu.dot_dimension_numbers<[1], [0], [0], [1], [0, 0, 1, 1], [], []>} : vector<32x32xf32>, vector<32x128xf32>, vector<32x128xf32> -> vector<32x128xf32>
    %147 = arith.addf %144, %146 : vector<32x128xf32>
    %c432 = arith.constant 432 : index
    %c0_53 = arith.constant 0 : index
    %148 = vector.load %arg1[%c432, %c0_53] : memref<1120x32xf32, #tpu.memory_space<vmem>>, vector<32x1xf32>
    %149 = vector.broadcast %148 : vector<32x1xf32> to vector<32x128xf32>
    %150 = arith.addf %147, %149 : vector<32x128xf32>
    %cst_54 = arith.constant 0.00999999977 : f32
    %151 = vector.broadcast %cst_54 : f32 to vector<32x128xf32>
    %152 = arith.mulf %151, %150 : vector<32x128xf32>
    %153 = arith.maximumf %150, %152 : vector<32x128xf32>
    %c464 = arith.constant 464 : index
    %c0_55 = arith.constant 0 : index
    %154 = vector.load %arg1[%c464, %c0_55] : memref<1120x32xf32, #tpu.memory_space<vmem>>, vector<8x32xf32>
    %cst_56 = arith.constant dense<0.000000e+00> : vector<8x128xf32>
    %155 = tpu.matmul %154, %153, %cst_56 {dimension_numbers = #tpu.dot_dimension_numbers<[1], [0], [0], [1], [0, 0, 1, 1], [], []>} : vector<8x32xf32>, vector<32x128xf32>, vector<8x128xf32> -> vector<8x128xf32>
    %c472 = arith.constant 472 : index
    %c0_57 = arith.constant 0 : index
    %156 = vector.load %arg1[%c472, %c0_57] : memref<1120x32xf32, #tpu.memory_space<vmem>>, vector<8x1xf32>
    %157 = vector.broadcast %156 : vector<8x1xf32> to vector<8x128xf32>
    %158 = arith.addf %155, %157 : vector<8x128xf32>
    %c480 = arith.constant 480 : index
    %c0_58 = arith.constant 0 : index
    %159 = vector.load %arg1[%c480, %c0_58] : memref<1120x32xf32, #tpu.memory_space<vmem>>, vector<32x32xf32>
    %cst_59 = arith.constant dense<0.000000e+00> : vector<32x128xf32>
    %160 = tpu.matmul %159, %153, %cst_59 {dimension_numbers = #tpu.dot_dimension_numbers<[1], [0], [0], [1], [0, 0, 1, 1], [], []>} : vector<32x32xf32>, vector<32x128xf32>, vector<32x128xf32> -> vector<32x128xf32>
    %c512 = arith.constant 512 : index
    %c0_60 = arith.constant 0 : index
    %161 = vector.load %arg1[%c512, %c0_60] : memref<1120x32xf32, #tpu.memory_space<vmem>>, vector<32x1xf32>
    %162 = vector.broadcast %161 : vector<32x1xf32> to vector<32x128xf32>
    %163 = arith.addf %160, %162 : vector<32x128xf32>
    %164 = tpu.transpose %158, [1, 0] : vector<8x128xf32> -> vector<128x8xf32>
    %cst_61 = arith.constant dense<0.000000e+00> : vector<128x128xf32>
    %165 = tpu.matmul %164, %158, %cst_61 {dimension_numbers = #tpu.dot_dimension_numbers<[1], [0], [0], [1], [0, 0, 1, 1], [], []>} : vector<128x8xf32>, vector<8x128xf32>, vector<128x128xf32> -> vector<128x128xf32>
    %166 = arith.mulf %158, %158 : vector<8x128xf32>
    %cst_62 = arith.constant dense<0.000000e+00> : vector<128xf32>
    %167 = vector.multi_reduction <add>, %166, %cst_62 [0] : vector<8x128xf32> to vector<128xf32>
    %168 = vector.shape_cast %167 : vector<128xf32> to vector<1x128xf32>
    %169 = arith.mulf %164, %164 : vector<128x8xf32>
    %cst_63 = arith.constant dense<0.000000e+00> : vector<128xf32>
    %170 = vector.multi_reduction <add>, %169, %cst_63 [1] : vector<128x8xf32> to vector<128xf32>
    %171 = vector.shape_cast %170 : vector<128xf32> to vector<128x1xf32>
    %172 = vector.broadcast %171 : vector<128x1xf32> to vector<128x128xf32>
    %173 = vector.broadcast %168 : vector<1x128xf32> to vector<128x128xf32>
    %174 = arith.addf %172, %173 : vector<128x128xf32>
    %cst_64 = arith.constant 2.000000e+00 : f32
    %175 = vector.broadcast %cst_64 : f32 to vector<128x128xf32>
    %176 = arith.mulf %175, %165 : vector<128x128xf32>
    %177 = arith.subf %174, %176 : vector<128x128xf32>
    %cst_65 = arith.constant 0.000000e+00 : f32
    %178 = vector.broadcast %cst_65 : f32 to vector<128x128xf32>
    %179 = arith.maximumf %177, %178 : vector<128x128xf32>
    %180 = tpu.bitcast %179 : vector<128x128xf32> -> vector<128x128xi32>
    %c-128_i32_66 = arith.constant -128 : i32
    %181 = vector.broadcast %c-128_i32_66 : i32 to vector<128x128xi32>
    %182 = arith.andi %180, %181 : vector<128x128xi32>
    %183 = arith.ori %182, %33 : vector<128x128xi32>
    %c2147483647_i32_67 = arith.constant 2147483647 : i32
    %184 = vector.shape_cast %36 : vector<128x1xi1> to vector<128x1xi1>
    %185 = vector.broadcast %184 : vector<128x1xi1> to vector<128x128xi1>
    %186 = vector.broadcast %c2147483647_i32_67 : i32 to vector<128x128xi32>
    %187 = arith.select %185, %186, %183 : vector<128x128xi1>, vector<128x128xi32>
    %188 = arith.truncf %163 : vector<32x128xf32> to vector<32x128xbf16>
    %cst_68 = arith.constant 0.000000e+00 : f32
    %189 = vector.broadcast %cst_68 : f32 to vector<32x128xf32>
    %cst_69 = arith.constant 0xFF800000 : f32
    %190 = vector.broadcast %cst_69 : f32 to vector<32x128xf32>
    %cst_70 = arith.constant dense<2147483647> : vector<128xi32>
    %191 = vector.multi_reduction <minsi>, %187, %cst_70 [0] : vector<128x128xi32> to vector<128xi32>
    %192 = vector.shape_cast %191 : vector<128xi32> to vector<1x128xi32>
    %c127_i32_71 = arith.constant 127 : i32
    %193 = vector.broadcast %c127_i32_71 : i32 to vector<1x128xi32>
    %194 = arith.andi %192, %193 : vector<1x128xi32>
    %c-128_i32_72 = arith.constant -128 : i32
    %195 = vector.broadcast %c-128_i32_72 : i32 to vector<1x128xi32>
    %196 = arith.andi %192, %195 : vector<1x128xi32>
    %197 = tpu.bitcast %196 : vector<1x128xi32> -> vector<1x128xf32>
    %cst_73 = arith.constant -1.000000e+01 : f32
    %198 = vector.broadcast %cst_73 : f32 to vector<1x128xf32>
    %199 = arith.mulf %198, %197 : vector<1x128xf32>
    %200 = math.exp %199 : vector<1x128xf32>
    %201 = vector.broadcast %194 : vector<1x128xi32> to vector<128x128xi32>
    %202 = arith.cmpi eq, %33, %201 : vector<128x128xi32>
    %203 = arith.extui %202 : vector<128x128xi1> to vector<128x128xi32>
    %204 = arith.sitofp %203 : vector<128x128xi32> to vector<128x128xf32>
    %205 = arith.truncf %204 : vector<128x128xf32> to vector<128x128xbf16>
    %cst_74 = arith.constant dense<0.000000e+00> : vector<32x128xf32>
    %206 = tpu.matmul %188, %205, %cst_74 {dimension_numbers = #tpu.dot_dimension_numbers<[1], [0], [0], [1], [0, 0, 1, 1], [], []>} : vector<32x128xbf16>, vector<128x128xbf16>, vector<32x128xf32> -> vector<32x128xf32>
    %207 = vector.broadcast %200 : vector<1x128xf32> to vector<32x128xf32>
    %208 = arith.mulf %207, %206 : vector<32x128xf32>
    %209 = arith.addf %189, %208 : vector<32x128xf32>
    %210 = arith.maximumf %190, %208 : vector<32x128xf32>
    %c2147483647_i32_75 = arith.constant 2147483647 : i32
    %211 = vector.broadcast %c2147483647_i32_75 : i32 to vector<128x128xi32>
    %212 = arith.select %202, %211, %187 : vector<128x128xi1>, vector<128x128xi32>
    %cst_76 = arith.constant dense<2147483647> : vector<128xi32>
    %213 = vector.multi_reduction <minsi>, %212, %cst_76 [0] : vector<128x128xi32> to vector<128xi32>
    %214 = vector.shape_cast %213 : vector<128xi32> to vector<1x128xi32>
    %c127_i32_77 = arith.constant 127 : i32
    %215 = vector.broadcast %c127_i32_77 : i32 to vector<1x128xi32>
    %216 = arith.andi %214, %215 : vector<1x128xi32>
    %c-128_i32_78 = arith.constant -128 : i32
    %217 = vector.broadcast %c-128_i32_78 : i32 to vector<1x128xi32>
    %218 = arith.andi %214, %217 : vector<1x128xi32>
    %219 = tpu.bitcast %218 : vector<1x128xi32> -> vector<1x128xf32>
    %cst_79 = arith.constant -1.000000e+01 : f32
    %220 = vector.broadcast %cst_79 : f32 to vector<1x128xf32>
    %221 = arith.mulf %220, %219 : vector<1x128xf32>
    %222 = math.exp %221 : vector<1x128xf32>
    %223 = vector.broadcast %216 : vector<1x128xi32> to vector<128x128xi32>
    %224 = arith.cmpi eq, %33, %223 : vector<128x128xi32>
    %225 = arith.extui %224 : vector<128x128xi1> to vector<128x128xi32>
    %226 = arith.sitofp %225 : vector<128x128xi32> to vector<128x128xf32>
    %227 = arith.truncf %226 : vector<128x128xf32> to vector<128x128xbf16>
    %cst_80 = arith.constant dense<0.000000e+00> : vector<32x128xf32>
    %228 = tpu.matmul %188, %227, %cst_80 {dimension_numbers = #tpu.dot_dimension_numbers<[1], [0], [0], [1], [0, 0, 1, 1], [], []>} : vector<32x128xbf16>, vector<128x128xbf16>, vector<32x128xf32> -> vector<32x128xf32>
    %229 = vector.broadcast %222 : vector<1x128xf32> to vector<32x128xf32>
    %230 = arith.mulf %229, %228 : vector<32x128xf32>
    %231 = arith.addf %209, %230 : vector<32x128xf32>
    %232 = arith.maximumf %210, %230 : vector<32x128xf32>
    %c2147483647_i32_81 = arith.constant 2147483647 : i32
    %233 = vector.broadcast %c2147483647_i32_81 : i32 to vector<128x128xi32>
    %234 = arith.select %224, %233, %212 : vector<128x128xi1>, vector<128x128xi32>
    %cst_82 = arith.constant dense<2147483647> : vector<128xi32>
    %235 = vector.multi_reduction <minsi>, %234, %cst_82 [0] : vector<128x128xi32> to vector<128xi32>
    %236 = vector.shape_cast %235 : vector<128xi32> to vector<1x128xi32>
    %c127_i32_83 = arith.constant 127 : i32
    %237 = vector.broadcast %c127_i32_83 : i32 to vector<1x128xi32>
    %238 = arith.andi %236, %237 : vector<1x128xi32>
    %c-128_i32_84 = arith.constant -128 : i32
    %239 = vector.broadcast %c-128_i32_84 : i32 to vector<1x128xi32>
    %240 = arith.andi %236, %239 : vector<1x128xi32>
    %241 = tpu.bitcast %240 : vector<1x128xi32> -> vector<1x128xf32>
    %cst_85 = arith.constant -1.000000e+01 : f32
    %242 = vector.broadcast %cst_85 : f32 to vector<1x128xf32>
    %243 = arith.mulf %242, %241 : vector<1x128xf32>
    %244 = math.exp %243 : vector<1x128xf32>
    %245 = vector.broadcast %238 : vector<1x128xi32> to vector<128x128xi32>
    %246 = arith.cmpi eq, %33, %245 : vector<128x128xi32>
    %247 = arith.extui %246 : vector<128x128xi1> to vector<128x128xi32>
    %248 = arith.sitofp %247 : vector<128x128xi32> to vector<128x128xf32>
    %249 = arith.truncf %248 : vector<128x128xf32> to vector<128x128xbf16>
    %cst_86 = arith.constant dense<0.000000e+00> : vector<32x128xf32>
    %250 = tpu.matmul %188, %249, %cst_86 {dimension_numbers = #tpu.dot_dimension_numbers<[1], [0], [0], [1], [0, 0, 1, 1], [], []>} : vector<32x128xbf16>, vector<128x128xbf16>, vector<32x128xf32> -> vector<32x128xf32>
    %251 = vector.broadcast %244 : vector<1x128xf32> to vector<32x128xf32>
    %252 = arith.mulf %251, %250 : vector<32x128xf32>
    %253 = arith.addf %231, %252 : vector<32x128xf32>
    %254 = arith.maximumf %232, %252 : vector<32x128xf32>
    %cst_87 = arith.constant 0.333333343 : f32
    %255 = vector.broadcast %cst_87 : f32 to vector<32x128xf32>
    %256 = arith.mulf %253, %255 : vector<32x128xf32>
    %c544 = arith.constant 544 : index
    %c0_88 = arith.constant 0 : index
    %257 = vector.load %arg1[%c544, %c0_88] : memref<1120x32xf32, #tpu.memory_space<vmem>>, vector<32x32xf32>
    %cst_89 = arith.constant dense<0.000000e+00> : vector<32x128xf32>
    %258 = tpu.matmul %257, %256, %cst_89 {dimension_numbers = #tpu.dot_dimension_numbers<[1], [0], [0], [1], [0, 0, 1, 1], [], []>} : vector<32x32xf32>, vector<32x128xf32>, vector<32x128xf32> -> vector<32x128xf32>
    %c576 = arith.constant 576 : index
    %c0_90 = arith.constant 0 : index
    %259 = vector.load %arg1[%c576, %c0_90] : memref<1120x32xf32, #tpu.memory_space<vmem>>, vector<32x32xf32>
    %cst_91 = arith.constant dense<0.000000e+00> : vector<32x128xf32>
    %260 = tpu.matmul %259, %254, %cst_91 {dimension_numbers = #tpu.dot_dimension_numbers<[1], [0], [0], [1], [0, 0, 1, 1], [], []>} : vector<32x32xf32>, vector<32x128xf32>, vector<32x128xf32> -> vector<32x128xf32>
    %261 = arith.addf %258, %260 : vector<32x128xf32>
    %c608 = arith.constant 608 : index
    %c0_92 = arith.constant 0 : index
    %262 = vector.load %arg1[%c608, %c0_92] : memref<1120x32xf32, #tpu.memory_space<vmem>>, vector<32x32xf32>
    %cst_93 = arith.constant dense<0.000000e+00> : vector<32x128xf32>
    %263 = tpu.matmul %262, %153, %cst_93 {dimension_numbers = #tpu.dot_dimension_numbers<[1], [0], [0], [1], [0, 0, 1, 1], [], []>} : vector<32x32xf32>, vector<32x128xf32>, vector<32x128xf32> -> vector<32x128xf32>
    %264 = arith.addf %261, %263 : vector<32x128xf32>
    %c640 = arith.constant 640 : index
    %c0_94 = arith.constant 0 : index
    %265 = vector.load %arg1[%c640, %c0_94] : memref<1120x32xf32, #tpu.memory_space<vmem>>, vector<32x1xf32>
    %266 = vector.broadcast %265 : vector<32x1xf32> to vector<32x128xf32>
    %267 = arith.addf %264, %266 : vector<32x128xf32>
    %cst_95 = arith.constant 0.00999999977 : f32
    %268 = vector.broadcast %cst_95 : f32 to vector<32x128xf32>
    %269 = arith.mulf %268, %267 : vector<32x128xf32>
    %270 = arith.maximumf %267, %269 : vector<32x128xf32>
    %c672 = arith.constant 672 : index
    %c0_96 = arith.constant 0 : index
    %271 = vector.load %arg1[%c672, %c0_96] : memref<1120x32xf32, #tpu.memory_space<vmem>>, vector<32x32xf32>
    %cst_97 = arith.constant dense<0.000000e+00> : vector<32x128xf32>
    %272 = tpu.matmul %271, %270, %cst_97 {dimension_numbers = #tpu.dot_dimension_numbers<[1], [0], [0], [1], [0, 0, 1, 1], [], []>} : vector<32x32xf32>, vector<32x128xf32>, vector<32x128xf32> -> vector<32x128xf32>
    %c704 = arith.constant 704 : index
    %c0_98 = arith.constant 0 : index
    %273 = vector.load %arg1[%c704, %c0_98] : memref<1120x32xf32, #tpu.memory_space<vmem>>, vector<32x1xf32>
    %274 = vector.broadcast %273 : vector<32x1xf32> to vector<32x128xf32>
    %275 = arith.addf %272, %274 : vector<32x128xf32>
    %cst_99 = arith.constant 0.00999999977 : f32
    %276 = vector.broadcast %cst_99 : f32 to vector<32x128xf32>
    %277 = arith.mulf %276, %275 : vector<32x128xf32>
    %278 = arith.maximumf %275, %277 : vector<32x128xf32>
    %c736 = arith.constant 736 : index
    %c0_100 = arith.constant 0 : index
    %279 = vector.load %arg1[%c736, %c0_100] : memref<1120x32xf32, #tpu.memory_space<vmem>>, vector<32x32xf32>
    %cst_101 = arith.constant dense<0.000000e+00> : vector<32x128xf32>
    %280 = tpu.matmul %279, %278, %cst_101 {dimension_numbers = #tpu.dot_dimension_numbers<[1], [0], [0], [1], [0, 0, 1, 1], [], []>} : vector<32x32xf32>, vector<32x128xf32>, vector<32x128xf32> -> vector<32x128xf32>
    %c768 = arith.constant 768 : index
    %c0_102 = arith.constant 0 : index
    %281 = vector.load %arg1[%c768, %c0_102] : memref<1120x32xf32, #tpu.memory_space<vmem>>, vector<32x1xf32>
    %282 = vector.broadcast %281 : vector<32x1xf32> to vector<32x128xf32>
    %283 = arith.addf %280, %282 : vector<32x128xf32>
    %cst_103 = arith.constant 0.00999999977 : f32
    %284 = vector.broadcast %cst_103 : f32 to vector<32x128xf32>
    %285 = arith.mulf %284, %283 : vector<32x128xf32>
    %286 = arith.maximumf %283, %285 : vector<32x128xf32>
    %c800 = arith.constant 800 : index
    %c0_104 = arith.constant 0 : index
    %287 = vector.load %arg1[%c800, %c0_104] : memref<1120x32xf32, #tpu.memory_space<vmem>>, vector<32x32xf32>
    %cst_105 = arith.constant dense<0.000000e+00> : vector<32x128xf32>
    %288 = tpu.matmul %287, %286, %cst_105 {dimension_numbers = #tpu.dot_dimension_numbers<[1], [0], [0], [1], [0, 0, 1, 1], [], []>} : vector<32x32xf32>, vector<32x128xf32>, vector<32x128xf32> -> vector<32x128xf32>
    %c832 = arith.constant 832 : index
    %c0_106 = arith.constant 0 : index
    %289 = vector.load %arg1[%c832, %c0_106] : memref<1120x32xf32, #tpu.memory_space<vmem>>, vector<32x1xf32>
    %290 = vector.broadcast %289 : vector<32x1xf32> to vector<32x128xf32>
    %291 = arith.addf %288, %290 : vector<32x128xf32>
    %cst_107 = arith.constant 0.00999999977 : f32
    %292 = vector.broadcast %cst_107 : f32 to vector<32x128xf32>
    %293 = arith.mulf %292, %291 : vector<32x128xf32>
    %294 = arith.maximumf %291, %293 : vector<32x128xf32>
    %c864 = arith.constant 864 : index
    %c0_108 = arith.constant 0 : index
    %295 = vector.load %arg1[%c864, %c0_108] : memref<1120x32xf32, #tpu.memory_space<vmem>>, vector<6x32xf32>
    %cst_109 = arith.constant dense<0.000000e+00> : vector<6x128xf32>
    %296 = tpu.matmul %295, %294, %cst_109 {dimension_numbers = #tpu.dot_dimension_numbers<[1], [0], [0], [1], [0, 0, 1, 1], [], []>} : vector<6x32xf32>, vector<32x128xf32>, vector<6x128xf32> -> vector<6x128xf32>
    %c872 = arith.constant 872 : index
    %c0_110 = arith.constant 0 : index
    %297 = vector.load %arg1[%c872, %c0_110] : memref<1120x32xf32, #tpu.memory_space<vmem>>, vector<6x1xf32>
    %298 = vector.broadcast %297 : vector<6x1xf32> to vector<6x128xf32>
    %299 = arith.addf %296, %298 : vector<6x128xf32>
    %c880 = arith.constant 880 : index
    %c0_111 = arith.constant 0 : index
    %300 = vector.load %arg1[%c880, %c0_111] : memref<1120x32xf32, #tpu.memory_space<vmem>>, vector<32x32xf32>
    %cst_112 = arith.constant dense<0.000000e+00> : vector<32x128xf32>
    %301 = tpu.matmul %300, %270, %cst_112 {dimension_numbers = #tpu.dot_dimension_numbers<[1], [0], [0], [1], [0, 0, 1, 1], [], []>} : vector<32x32xf32>, vector<32x128xf32>, vector<32x128xf32> -> vector<32x128xf32>
    %c912 = arith.constant 912 : index
    %c0_113 = arith.constant 0 : index
    %302 = vector.load %arg1[%c912, %c0_113] : memref<1120x32xf32, #tpu.memory_space<vmem>>, vector<32x6xf32>
    %cst_114 = arith.constant dense<0.000000e+00> : vector<32x128xf32>
    %303 = tpu.matmul %302, %299, %cst_114 {dimension_numbers = #tpu.dot_dimension_numbers<[1], [0], [0], [1], [0, 0, 1, 1], [], []>} : vector<32x6xf32>, vector<6x128xf32>, vector<32x128xf32> -> vector<32x128xf32>
    %304 = arith.addf %301, %303 : vector<32x128xf32>
    %c944 = arith.constant 944 : index
    %c0_115 = arith.constant 0 : index
    %305 = vector.load %arg1[%c944, %c0_115] : memref<1120x32xf32, #tpu.memory_space<vmem>>, vector<32x1xf32>
    %306 = vector.broadcast %305 : vector<32x1xf32> to vector<32x128xf32>
    %307 = arith.addf %304, %306 : vector<32x128xf32>
    %cst_116 = arith.constant 0.00999999977 : f32
    %308 = vector.broadcast %cst_116 : f32 to vector<32x128xf32>
    %309 = arith.mulf %308, %307 : vector<32x128xf32>
    %310 = arith.maximumf %307, %309 : vector<32x128xf32>
    %c976 = arith.constant 976 : index
    %c0_117 = arith.constant 0 : index
    %311 = vector.load %arg1[%c976, %c0_117] : memref<1120x32xf32, #tpu.memory_space<vmem>>, vector<32x32xf32>
    %cst_118 = arith.constant dense<0.000000e+00> : vector<32x128xf32>
    %312 = tpu.matmul %311, %310, %cst_118 {dimension_numbers = #tpu.dot_dimension_numbers<[1], [0], [0], [1], [0, 0, 1, 1], [], []>} : vector<32x32xf32>, vector<32x128xf32>, vector<32x128xf32> -> vector<32x128xf32>
    %c1008 = arith.constant 1008 : index
    %c0_119 = arith.constant 0 : index
    %313 = vector.load %arg1[%c1008, %c0_119] : memref<1120x32xf32, #tpu.memory_space<vmem>>, vector<32x1xf32>
    %314 = vector.broadcast %313 : vector<32x1xf32> to vector<32x128xf32>
    %315 = arith.addf %312, %314 : vector<32x128xf32>
    %cst_120 = arith.constant 0.00999999977 : f32
    %316 = vector.broadcast %cst_120 : f32 to vector<32x128xf32>
    %317 = arith.mulf %316, %315 : vector<32x128xf32>
    %318 = arith.maximumf %315, %317 : vector<32x128xf32>
    %c1040 = arith.constant 1040 : index
    %c0_121 = arith.constant 0 : index
    %319 = vector.load %arg1[%c1040, %c0_121] : memref<1120x32xf32, #tpu.memory_space<vmem>>, vector<32x32xf32>
    %cst_122 = arith.constant dense<0.000000e+00> : vector<32x128xf32>
    %320 = tpu.matmul %319, %318, %cst_122 {dimension_numbers = #tpu.dot_dimension_numbers<[1], [0], [0], [1], [0, 0, 1, 1], [], []>} : vector<32x32xf32>, vector<32x128xf32>, vector<32x128xf32> -> vector<32x128xf32>
    %c1072 = arith.constant 1072 : index
    %c0_123 = arith.constant 0 : index
    %321 = vector.load %arg1[%c1072, %c0_123] : memref<1120x32xf32, #tpu.memory_space<vmem>>, vector<32x1xf32>
    %322 = vector.broadcast %321 : vector<32x1xf32> to vector<32x128xf32>
    %323 = arith.addf %320, %322 : vector<32x128xf32>
    %cst_124 = arith.constant 0.00999999977 : f32
    %324 = vector.broadcast %cst_124 : f32 to vector<32x128xf32>
    %325 = arith.mulf %324, %323 : vector<32x128xf32>
    %326 = arith.maximumf %323, %325 : vector<32x128xf32>
    %c1104 = arith.constant 1104 : index
    %c0_125 = arith.constant 0 : index
    %327 = vector.load %arg1[%c1104, %c0_125] : memref<1120x32xf32, #tpu.memory_space<vmem>>, vector<4x32xf32>
    %cst_126 = arith.constant dense<0.000000e+00> : vector<4x128xf32>
    %328 = tpu.matmul %327, %326, %cst_126 {dimension_numbers = #tpu.dot_dimension_numbers<[1], [0], [0], [1], [0, 0, 1, 1], [], []>} : vector<4x32xf32>, vector<32x128xf32>, vector<4x128xf32> -> vector<4x128xf32>
    %c1112 = arith.constant 1112 : index
    %c0_127 = arith.constant 0 : index
    %329 = vector.load %arg1[%c1112, %c0_127] : memref<1120x32xf32, #tpu.memory_space<vmem>>, vector<4x1xf32>
    %330 = vector.broadcast %329 : vector<4x1xf32> to vector<4x128xf32>
    %331 = arith.addf %328, %330 : vector<4x128xf32>
    %332 = vector.extract_strided_slice %0 {offsets = [3, 0], sizes = [4, 128], strides = [1, 1]} : vector<8x128xf32> to vector<4x128xf32>
    %333 = arith.addf %332, %331 : vector<4x128xf32>
    %c0_128 = arith.constant 0 : index
    %c0_129 = arith.constant 0 : index
    %334 = vector.load %arg2[%c0_128, %c0_129] : memref<6x128xf32, #tpu.memory_space<vmem>>, vector<6x128xf32>
    tpu.vector_store %arg2[%c0_128, %c0_129], %299 {strides = array<i32>} : memref<6x128xf32, #tpu.memory_space<vmem>>, vector<6x128xf32>,
    %c0_130 = arith.constant 0 : index
    %c0_131 = arith.constant 0 : index
    %335 = vector.load %arg3[%c0_130, %c0_131] : memref<4x128xf32, #tpu.memory_space<vmem>>, vector<4x128xf32>
    tpu.vector_store %arg3[%c0_130, %c0_131], %333 {strides = array<i32>} : memref<4x128xf32, #tpu.memory_space<vmem>>, vector<4x128xf32>,
    return
  }
}

</mosaic_0001>

<bundles_post_ra>
// kernel: tpu_custom_call.1
= control target key start
LH: loop header
LB: loop body
LE: loop exit
PB: predicated region body
PF: predicated region fallthrough
CT: control target
= control target key end

     0   :  { %9 = vsyncpa [#allocation3], 0  ;;  %vm4895_vm0 = vcmask 64512   ;;  %v3495_v3 = vmov 0   ;;  %s4891_s0 = inlined_call_operand.vmem [shape: f32[8,128], index: 0, kind: input, shape index: {}]   ;;  %s4892_s1 = inlined_call_operand.vmem [shape: f32[1120,32], index: 1, kind: input, shape index: {}]   ;;  %s4893_s2 = inlined_call_operand.hbm [shape: f32[6,128], index: 2, kind: output, shape index: {0}]   ;;  %s4894_s3 = inlined_call_operand.hbm [shape: f32[4,128], index: 3, kind: output, shape index: {1}]  }
   0x1   :  { %v15_v0 = vld [vmem:[%s4891_s0] sm:$0xff]  ;;  %v23_v1 = vld [vmem:[%s4892_s1 + $0x38] sm:$0xff]  ;;  %v21_v2 = vld [vmem:[%s4892_s1 + $0x28] sm:$0xff]  ;;  %3428 = vset.pattern.permute.xlu1 %v3495_v3  ;;  %3427 = vset.pattern.permute.xlu0 %v3495_v3 }
   0x2   :  { %v16_v4 = vld [vmem:[%s4892_s1] sm:$0xff]  ;;  %72 = vmatpush.msra.mxu0 %v15_v0  ;;  %41 = vperm.xlu0 %3427, %v23_v1  }
   0x3   :  { %31 = vperm.xlu1 %3428, %v21_v2   ;;  %3101 = vmatmul.msk.f32.vlgmr.msra.gmra.mxu0 %vm4895_vm0, %v16_v4 }
   0x4   :  { %3429 = vset.pattern.permute.xlu2 %v3495_v3 }
   0x5   :  { %10 = vsyncpa [#allocation5], 0  ;;  %v22_v5 = vld [vmem:[%s4892_s1 + $0x30] sm:$0xff]  ;;  %v20_v6 = vld [vmem:[%s4892_s1 + $0x20] sm:$0xff]  ;;  %vm4896_vm1 = vcmask 261120   ;;  %s3076_s26 = sshll.u32 %s4893_s2, 4  ;;  %s3077_s26 = int_to_ptr.hbm [resolvable:$true] %s3076_s26 }
   0x6   :  { %v17_v7 = vld [vmem:[%s4892_s1 + $0x8] sm:$0xff]  ;;  %v98_v9 = vld [vmem:[%s4892_s1 + $0x60] sm:$0xff]  ;;  %v18_v10 = vld [vmem:[%s4892_s1 + $0x10] sm:$0xff]  ;;  %s3497_s27 = smov [#allocation2]   ;;  %s3498_s29 = smov [#allocation4]  }
   0x7   :  { %v99_v8 = vld [vmem:[%s4892_s1 + $0x68] sm:$0xff]  ;;  %v178_v11 = vld [vmem:[%s4892_s1 + $0xb0] sm:$0xff]  ;;  %v19_v13 = vld [vmem:[%s4892_s1 + $0x18] sm:$0xff]  ;;  %s3074_s28 = sshll.u32 %s3497_s27, 4  ;;  %s3085_s30 = sshll.u32 %s3498_s29, 4  ;;  %s3075_s28 = int_to_ptr.vmem [resolvable:$true] %s3074_s28  ;;  %s3086_s30 = int_to_ptr.vmem [resolvable:$true] %s3085_s30 }
   0x8   :  { %v177_v12 = vld [vmem:[%s4892_s1 + $0xa8] sm:$0xff]  ;;  %v256_v14 = vld [vmem:[%s4892_s1 + $0xf8] sm:$0xff]  ;;  %v255_v15 = vld [vmem:[%s4892_s1 + $0xf0] sm:$0xff] }
   0x9   :  { %v253_v16 = vld [vmem:[%s4892_s1 + $0xe0] sm:$0xff]  ;;  %v360_v17 = vld [vmem:[%s4892_s1 + $0x108] sm:$0xff]  ;;  %v101_v21 = vld [vmem:[%s4892_s1 + $0x78] sm:$0xff] }
   0xa   :  { %36 = vperm.xlu0 %3427, %v22_v5   ;;  %119 = vperm.xlu2 %3429, %v101_v21   ;;  %v100_v25 = vld [vmem:[%s4892_s1 + $0x70] sm:$0xff]  ;;  %v179_v36 = vld [vmem:[%s4892_s1 + $0xb8] sm:$0xff]  ;;  %v94_v41 = vld [vmem:[%s4892_s1 + $0x40] sm:$0xff] }
   0xb   :  { %26 = vperm.xlu1 %3428, %v20_v6   ;;  %3102 = vmatmul.msk.f32.gmra.mxu0 %vm4895_vm0, %v17_v7  ;;  %v97_v42 = vld [vmem:[%s4892_s1 + $0x58] sm:$0xff]  ;;  %v176_v43 = vld [vmem:[%s4892_s1 + $0xa0] sm:$0xff]  ;;  %v95_v44 = vld [vmem:[%s4892_s1 + $0x48] sm:$0xff] }
   0xc   :  { %v254_v45 = vld [vmem:[%s4892_s1 + $0xe8] sm:$0xff]  ;;  %v96_v46 = vld [vmem:[%s4892_s1 + $0x50] sm:$0xff]  ;;  %v172_v3 = vld [vmem:[%s4892_s1 + $0x80] sm:$0xff] }
   0xd   :  { %v173_v4 = vld [vmem:[%s4892_s1 + $0x88] sm:$0xff]  ;;  %v174_v5 = vld [vmem:[%s4892_s1 + $0x90] sm:$0xff]  ;;  %v175_v6 = vld [vmem:[%s4892_s1 + $0x98] sm:$0xff] }
  0x12   :  { %109 = vperm.xlu0 %3427, %v99_v8   ;;  %114 = vperm.xlu2 %3429, %v100_v25  }
  0x13   :  { %104 = vperm.xlu1 %3428, %v98_v9   ;;  %3103 = vmatmul.msk.f32.gmra.mxu0 %vm4895_vm0, %v18_v10 }
  0x1a   :  { %192 = vperm.xlu0 %3427, %v178_v11   ;;  %197 = vperm.xlu2 %3429, %v179_v36  }
  0x1b   :  { %187 = vperm.xlu1 %3428, %v177_v12   ;;  %3104 = vmatmul.msk.f32.gmra.mxu0 %vm4895_vm0, %v19_v13 }
  0x22   :  { %274 = vperm.xlu0 %3427, %v256_v14   ;;  %182 = vperm.xlu2 %3429, %v176_v43  }
  0x23   :  { %269 = vperm.xlu1 %3428, %v255_v15  }
  0x2a   :  { %259 = vperm.xlu0 %3427, %v253_v16   ;;  %264 = vperm.xlu2 %3429, %v254_v45  }
  0x2b   :  { %363 = vperm.xlu1 %3428, %v360_v17  }
  0x64   :  { %v120_v48 = vpop.permute.xlu2 %119 }
  0x6c   :  { %v115_v57 = vpop.permute.xlu2 %114 }
  0x74   :  { %v42_v20 = vpop.permute.xlu0 %41  ;;  %v198_v8 = vpop.permute.xlu2 %197 }
  0x75   :  { %v32_v22 = vpop.permute.xlu1 %31 }
  0x7c   :  { %v37_v24 = vpop.permute.xlu0 %36  ;;  %v183_v17 = vpop.permute.xlu2 %182 }
  0x7d   :  { %v27_v30 = vpop.permute.xlu1 %26 }
  0x80   :  { %v74_v18 = vpop.f32.mrf.mxu0 }
  0x81   :  { %v75_v31 = vadd.f32 %v74_v18, %v27_v30  ;;  %v252_v30 = vld [vmem:[%s4892_s1 + $0xd8] sm:$0xff] }
  0x83   :  { %v86_v38 = vmul.f32 0.01, %v75_v31 }
  0x84   :  { %v110_v54 = vpop.permute.xlu0 %109 }
  0x85   :  { %v90_v40 = vmax.f32 %v75_v31, %v86_v38  ;;  %v105_v55 = vpop.permute.xlu1 %104 }
  0x88   :  { %v77_v19 = vpop.f32.mrf.mxu0 }
  0x89   :  { %v78_v28 = vadd.f32 %v77_v19, %v32_v22 }
  0x8b   :  { %v87_v35 = vmul.f32 0.01, %v78_v28 }
  0x8c   :  { %v193_v10 = vpop.permute.xlu0 %192 }
  0x8d   :  { %v91_v39 = vmax.f32 %v78_v28, %v87_v35  ;;  %v188_v11 = vpop.permute.xlu1 %187  ;;  %v250_v28 = vld [vmem:[%s4892_s1 + $0xc8] sm:$0xff] }
  0x90   :  { %v80_v23 = vpop.f32.mrf.mxu0 }
  0x91   :  { %v81_v26 = vadd.f32 %v80_v23, %v37_v24 }
  0x93   :  { %v88_v33 = vmul.f32 0.01, %v81_v26 }
  0x95   :  { %v92_v37 = vmax.f32 %v81_v26, %v88_v33  ;;  %v275_v33 = vpop.permute.xlu0 %274  ;;  %v270_v35 = vpop.permute.xlu1 %269 }
  0x98   :  { %v83_v27 = vpop.f32.mrf.mxu0 }
  0x99   :  { %v84_v29 = vadd.f32 %v83_v27, %v42_v20  ;;  %v249_v27 = vld [vmem:[%s4892_s1 + $0xc0] sm:$0xff] }
  0x9b   :  { %v89_v32 = vmul.f32 0.01, %v84_v29 }
  0x9d   :  { %v93_v34 = vmax.f32 %v84_v29, %v89_v32  ;;  %v251_v29 = vld [vmem:[%s4892_s1 + $0xd0] sm:$0xff] }
  0x9f   :  { %147 = vmatpush.msra.mxu1 %v93_v34  ;;  %3406 = vmatpush.msra.mxu3 %v93_v34 }
  0xa1   :  { %148 = vmatpush.msra.mxu1 %v92_v37  ;;  %3407 = vmatpush.msra.mxu3 %v92_v37  ;;  %v265_v37 = vpop.permute.xlu2 %264 }
  0xa3   :  { %149 = vmatpush.msra.mxu1 %v91_v39  ;;  %3408 = vmatpush.msra.mxu3 %v91_v39 }
  0xa5   :  { %150 = vmatpush.msra.mxu1 %v90_v40  ;;  %3409 = vmatpush.msra.mxu3 %v90_v40 }
  0xa6   :  { %3105 = vmatmul.msk.f32.vlgmr.msra.gmra.mxu1 %vm4896_vm1, %v94_v41  ;;  %3108 = vmatmul.msk.f32.vlgmr.msra.gmra.mxu3 %vm4896_vm1, %v97_v42  ;;  %v260_v41 = vpop.permute.xlu0 %259 }
  0xae   :  { %3106 = vmatmul.msk.f32.gmra.mxu1 %vm4896_vm1, %v95_v44 }
  0xb6   :  { %3107 = vmatmul.msk.f32.gmra.mxu1 %vm4896_vm1, %v96_v46 }
 0x123   :  { %v152_v47 = vpop.f32.mrf.mxu1 }
 0x124   :  { %v153_v59 = vadd.f32 %v152_v47, %v105_v55 }
 0x126   :  { %v164_v0 = vmul.f32 0.01, %v153_v59 }
 0x128   :  { %v168_v2 = vmax.f32 %v153_v59, %v164_v0 }
 0x129   :  { %v161_v49 = vpop.f32.mrf.mxu3 }
 0x12a   :  { %v162_v50 = vadd.f32 %v161_v49, %v120_v48 }
 0x12b   :  { %v155_v51 = vpop.f32.mrf.mxu1 }
 0x12c   :  { %v167_v52 = vmul.f32 0.01, %v162_v50  ;;  %v156_v56 = vadd.f32 %v155_v51, %v110_v54  ;;  %v359_v51 = vld [vmem:[%s4892_s1 + $0x100] sm:$0xff] }
 0x12e   :  { %v171_v53 = vmax.f32 %v162_v50, %v167_v52  ;;  %v165_v62 = vmul.f32 0.01, %v156_v56  ;;  %v364_v52 = vpop.permute.xlu1 %363 }
 0x130   :  { %224 = vmatpush.msrb.mxu1 %v171_v53  ;;  %3410 = vmatpush.msra.mxu2 %v171_v53  ;;  %v169_v1 = vmax.f32 %v156_v56, %v165_v62  ;;  %v389_v62 = vld [vmem:[%s4892_s1 + $0x110] sm:$0xff] }
 0x133   :  { %v158_v58 = vpop.f32.mrf.mxu1 }
 0x134   :  { %v159_v60 = vadd.f32 %v158_v58, %v115_v57 }
 0x136   :  { %v166_v61 = vmul.f32 0.01, %v159_v60 }
 0x138   :  { %v170_v63 = vmax.f32 %v159_v60, %v166_v61 }
 0x13a   :  { %225 = vmatpush.msrb.mxu1 %v170_v63  ;;  %3411 = vmatpush.msra.mxu2 %v170_v63 }
 0x13c   :  { %226 = vmatpush.msrb.mxu1 %v169_v1  ;;  %3412 = vmatpush.msra.mxu2 %v169_v1 }
 0x13e   :  { %227 = vmatpush.msrb.mxu1 %v168_v2  ;;  %3413 = vmatpush.msra.mxu2 %v168_v2  ;;  %v390_v2 = vld [vmem:[%s4892_s1 + $0x118] sm:$0xff] }
 0x13f   :  { %3109 = vmatmul.msk.f32.vlgmr.msrb.gmra.mxu1 %vm4896_vm1, %v172_v3  ;;  %3110 = vmatmul.msk.f32.vlgmr.msra.gmra.mxu2 %vm4896_vm1, %v173_v4 }
 0x147   :  { %3111 = vmatmul.msk.f32.gmra.mxu2 %vm4896_vm1, %v174_v5  ;;  %v391_v5 = vld [vmem:[%s4892_s1 + $0x120] sm:$0xff] }
 0x14f   :  { %3112 = vmatmul.msk.f32.gmra.mxu2 %vm4896_vm1, %v175_v6 }
 0x1bc   :  { %v229_v13 = vpop.f32.mrf.mxu1 }
 0x1bd   :  { %v230_v18 = vadd.f32 %v229_v13, %v183_v17  ;;  %v393_v17 = vld [vmem:[%s4892_s1 + $0x130] sm:$0xff] }
 0x1bf   :  { %v241_v24 = vmul.f32 0.01, %v230_v18 }
 0x1c1   :  { %v245_v26 = vmax.f32 %v230_v18, %v241_v24  ;;  %v1405_v24 = vld [vmem:[%s4892_s1 + $0x1c0] sm:$0xff] }
 0x1c2   :  { %v232_v7 = vpop.f32.mrf.mxu2 }
 0x1c3   :  { %v233_v15 = vadd.f32 %v232_v7, %v188_v11 }
 0x1c5   :  { %v242_v22 = vmul.f32 0.01, %v233_v15 }
 0x1c7   :  { %v246_v25 = vmax.f32 %v233_v15, %v242_v22  ;;  %v396_v22 = vld [vmem:[%s4892_s1 + $0x148] sm:$0xff] }
 0x1ca   :  { %v235_v9 = vpop.f32.mrf.mxu2 }
 0x1cb   :  { %v236_v12 = vadd.f32 %v235_v9, %v193_v10  ;;  %v392_v9 = vld [vmem:[%s4892_s1 + $0x128] sm:$0xff] }
 0x1cd   :  { %v243_v20 = vmul.f32 0.01, %v236_v12 }
 0x1cf   :  { %v247_v23 = vmax.f32 %v236_v12, %v243_v20 }
 0x1d2   :  { %v238_v14 = vpop.f32.mrf.mxu2 }
 0x1d3   :  { %v239_v16 = vadd.f32 %v238_v14, %v198_v8 }
 0x1d5   :  { %v244_v19 = vmul.f32 0.01, %v239_v16 }
 0x1d7   :  { %v248_v21 = vmax.f32 %v239_v16, %v244_v19  ;;  %v394_v19 = vld [vmem:[%s4892_s1 + $0x138] sm:$0xff] }
 0x1d9   :  { %301 = vmatpush.msrb.mxu3 %v248_v21  ;;  %v395_v21 = vld [vmem:[%s4892_s1 + $0x140] sm:$0xff] }
 0x1db   :  { %302 = vmatpush.msrb.mxu3 %v247_v23  ;;  %v1406_v23 = vld [vmem:[%s4892_s1 + $0x1c8] sm:$0xff] }
 0x1dd   :  { %303 = vmatpush.msrb.mxu3 %v246_v25 }
 0x1df   :  { %304 = vmatpush.msrb.mxu3 %v245_v26  ;;  %v1404_v26 = vld [vmem:[%s4892_s1 + $0x1b8] sm:$0xff] }
 0x1e0   :  { %3113 = vmatmul.msk.f32.vlgmr.msrb.gmra.mxu3 %vm4896_vm1, %v249_v27  ;;  %v2452_v27 = vld [vmem:[%s4892_s1 + $0x288] sm:$0xff] }
 0x1e8   :  { %3114 = vmatmul.msk.f32.gmra.mxu3 %vm4896_vm1, %v250_v28  ;;  %v1403_v28 = vld [vmem:[%s4892_s1 + $0x1b0] sm:$0xff] }
 0x1f0   :  { %3115 = vmatmul.msk.f32.gmra.mxu3 %vm4896_vm1, %v251_v29  ;;  %v1440_v29 = vld [vmem:[%s4892_s1 + $0x1d8] sm:$0xff] }
 0x1f8   :  { %3116 = vmatmul.msk.f32.gmra.mxu3 %vm4896_vm1, %v252_v30 }
 0x263   :  { %v306_v31 = vpop.f32.mrf.mxu3 }
 0x264   :  { %v307_v42 = vadd.f32 %v306_v31, %v260_v41  ;;  %v2492_v31 = vld [vmem:[%s4892_s1 + $0x2c8] sm:$0xff] }
 0x265   :  { %v2646_v41 = vld [vmem:[%s4892_s1 + $0x348] sm:$0xff] }
 0x266   :  { %v318_v47 = vmul.f32 0.01, %v307_v42 }
 0x268   :  { %v3647_v50 = vmax.f32 %v307_v42, %v318_v47 }
 0x26b   :  { %v309_v32 = vpop.f32.mrf.mxu3 }
 0x26c   :  { %v310_v39 = vadd.f32 %v309_v32, %v265_v37 }
 0x26e   :  { %v319_v45 = vmul.f32 0.01, %v310_v39 }
 0x270   :  { %v3643_v49 = vmax.f32 %v310_v39, %v319_v45  ;;  %v2719_v45 = vld [vmem:[%s4892_s1 + $0x368] sm:$0x3f] }
 0x273   :  { %v312_v34 = vpop.f32.mrf.mxu3 }
 0x274   :  { %v313_v36 = vadd.f32 %v312_v34, %v270_v35  ;;  %v2569_v35 = vld [vmem:[%s4892_s1 + $0x308] sm:$0xff] }
 0x276   :  { %v320_v43 = vmul.f32 0.01, %v313_v36 }
 0x278   :  { %v3639_v48 = vmax.f32 %v313_v36, %v320_v43 }
 0x27b   :  { %v315_v38 = vpop.f32.mrf.mxu3 }
 0x27c   :  { %v316_v40 = vadd.f32 %v315_v38, %v275_v33  ;;  %v2571_v33 = vld [vmem:[%s4892_s1 + $0x318] sm:$0xff] }
 0x27d   :  { %v2648_v38 = vld [vmem:[%s4892_s1 + $0x358] sm:$0xff] }
 0x27e   :  { %v321_v44 = vmul.f32 0.01, %v316_v40 }
 0x280   :  { %v3637_v46 = vmax.f32 %v316_v40, %v321_v44 }
 0x282   :  { %381 = vmatpush.msrb.mxu2 %v3637_v46  ;;  %441 = vmatpush.msra.mxu1 %v3637_v46 }
 0x284   :  { %382 = vmatpush.msrb.mxu2 %v3639_v48  ;;  %442 = vmatpush.msra.mxu1 %v3639_v48 }
 0x286   :  { %383 = vmatpush.msrb.mxu2 %v3643_v49  ;;  %443 = vmatpush.msra.mxu1 %v3643_v49 }
 0x288   :  { %384 = vmatpush.msrb.mxu2 %v3647_v50  ;;  %444 = vmatpush.msra.mxu1 %v3647_v50 }
 0x289   :  { %3117 = vmatmul.msk.f32.vlgmr.msrb.gmra.mxu2 %vm4896_vm1, %v359_v51  ;;  %3118 = vmatmul.msk.f32.vlgmr.msra.gmra.mxu1 %vm4896_vm1, %v389_v62 }
 0x291   :  { %3119 = vmatmul.msk.f32.gmra.mxu1 %vm4896_vm1, %v390_v2 }
 0x299   :  { %3120 = vmatmul.msk.f32.gmra.mxu1 %vm4896_vm1, %v391_v5 }
 0x2a1   :  { %3121 = vmatmul.msk.f32.gmra.mxu1 %vm4896_vm1, %v392_v9 }
 0x30c   :  { %v386_v53 = vpop.f32.mrf.mxu2 }
 0x30d   :  { %v3657_v54 = vadd.f32 %v386_v53, %v364_v52 }
 0x30f   :  { %458 = vxpose.xlu2.b32.start.end [1/1] (short) %v3657_v54, 128  ;;  %553 = vmatpush.msra.mxu2 %v3657_v54  ;;  %v603_v43 = vmul.f32 %v3657_v54, %v3657_v54  ;;  %v2845_v54 = vld [vmem:[%s4892_s1 + $0x3c0] sm:$0xff] }
 0x311   :  { %v604_v47 = vrot.slane %v603_v43, 4 }
 0x313   :  { %v605_v53 = vadd.f32 %v604_v47, %v603_v43 }
 0x3a8   :  { %v474_v55 = vpop.trf.xlu2 }
 0x3a9   :  { %v610_v56 = vmul.f32 %v474_v55, %v474_v55  ;;  %3122 = vmatmul.msk.f32.vlgmr.msra.gmra.mxu2 %vm4895_vm0, %v474_v55 }
 0x3ab   :  { %v626_v57 = vsel %vm4895_vm0, %v610_v56, 0.0  ;;  %v606_v56 = vrot.slane %v605_v53, 2 }
 0x3ac   :  { %627 = vadd.xlane.f32.xlu0 %v626_v57 }
 0x3b0   :  { %v475_v58 = vpop.trf.xlu2 }
 0x3b1   :  { %v611_v59 = vmul.f32 %v475_v58, %v475_v58  ;;  %3123 = vmatmul.msk.f32.gmra.mxu2 %vm4895_vm0, %v475_v58  ;;  %v607_v58 = vadd.f32 %v606_v56, %v605_v53 }
 0x3b3   :  { %v629_v60 = vsel %vm4895_vm0, %v611_v59, 0.0  ;;  %v608_v62 = vrot.slane %v607_v58, 1 }
 0x3b4   :  { %630 = vadd.xlane.f32.xlu1 %v629_v60 }
 0x3b8   :  { %v476_v61 = vpop.trf.xlu2 }
 0x3b9   :  { %3124 = vmatmul.msk.f32.gmra.mxu2 %vm4895_vm0, %v476_v61  ;;  %v612_v18 = vmul.f32 %v476_v61, %v476_v61  ;;  %v2843_v61 = vld [vmem:[%s4892_s1 + $0x3b0] sm:$0xff] }
 0x3bb   :  { %v632_v20 = vsel %vm4895_vm0, %v612_v18, 0.0 }
 0x3c0   :  { %v477_v63 = vpop.trf.xlu2 }
 0x3c1   :  { %v613_v0 = vmul.f32 %v477_v63, %v477_v63  ;;  %3125 = vmatmul.msk.f32.gmra.mxu2 %vm4895_vm0, %v477_v63 }
 0x3c3   :  { %v635_v1 = vsel %vm4895_vm0, %v613_v0, 0.0  ;;  %v3759_v0 = vadd.f32 %v608_v62, %v607_v58 }
 0x3c4   :  { %636 = vadd.xlane.f32.xlu0 %v635_v1 }
 0x3c8   :  { %v478_v3 = vpop.trf.xlu2 }
 0x3c9   :  { %v614_v4 = vmul.f32 %v478_v3, %v478_v3  ;;  %3126 = vmatmul.msk.f32.gmra.mxu2 %vm4895_vm0, %v478_v3 }
 0x3cb   :  { %v638_v6 = vsel %vm4895_vm0, %v614_v4, 0.0  ;;  %v2885_v4 = vld [vmem:[%s4892_s1 + $0x400] sm:$0xff] }
 0x3cc   :  { %639 = vadd.xlane.f32.xlu1 %v638_v6 }
 0x3d0   :  { %v479_v7 = vpop.trf.xlu2 }
 0x3d1   :  { %v615_v8 = vmul.f32 %v479_v7, %v479_v7  ;;  %3127 = vmatmul.msk.f32.gmra.mxu2 %vm4895_vm0, %v479_v7 }
 0x3d3   :  { %v641_v10 = vsel %vm4895_vm0, %v615_v8, 0.0 }
 0x3d4   :  { %642 = vadd.xlane.f32.xlu0 %v641_v10 }
 0x3d8   :  { %v480_v11 = vpop.trf.xlu2 }
 0x3d9   :  { %v616_v12 = vmul.f32 %v480_v11, %v480_v11  ;;  %3128 = vmatmul.msk.f32.gmra.mxu2 %vm4895_vm0, %v480_v11 }
 0x3db   :  { %v644_v13 = vsel %vm4895_vm0, %v616_v12, 0.0 }
 0x3dc   :  { %645 = vadd.xlane.f32.xlu1 %v644_v13  ;;  %v326_v13 = vlaneseq }
 0x3e0   :  { %v481_v14 = vpop.trf.xlu2 }
 0x3e1   :  { %v617_v15 = vmul.f32 %v481_v14, %v481_v14  ;;  %3129 = vmatmul.msk.f32.gmra.mxu2 %vm4895_vm0, %v481_v14 }
 0x3e3   :  { %v647_v16 = vsel %vm4895_vm0, %v617_v15, 0.0 }
 0x3e4   :  { %648 = vadd.xlane.f32.xlu0 %v647_v16 }
 0x3e8   :  { %v482_v25 = vpop.trf.xlu2 }
 0x3e9   :  { %3130 = vmatmul.msk.f32.gmra.mxu2 %vm4895_vm0, %v482_v25 }
 0x3f0   :  { %v483_v30 = vpop.trf.xlu2 }
 0x3f1   :  { %3131 = vmatmul.msk.f32.gmra.mxu2 %vm4895_vm0, %v483_v30 }
 0x3f5   :  { %399 = vperm.xlu1 %3428, %v393_v17  }
 0x3f8   :  { %633 = vadd.xlane.f32.xlu2 %v632_v20  ;;  %404 = vperm.xlu0 %3427, %v394_v19   ;;  %v484_v32 = vpop.trf.xlu2  ;;  %v2883_v20 = vld [vmem:[%s4892_s1 + $0x3f0] sm:$0xff] }
 0x3f9   :  { %3132 = vmatmul.msk.f32.gmra.mxu2 %vm4895_vm0, %v484_v32 }
 0x3fd   :  { %409 = vperm.xlu1 %3428, %v395_v21   ;;  %v3771_v21 = vshrl.u32 %v326_v13, 7 }
 0x3ff   :  { %v3806_v56 = vadd.s32 56, %v3771_v21 }
 0x400   :  { %414 = vperm.xlu0 %3427, %v396_v22   ;;  %v485_v34 = vpop.trf.xlu2 }
 0x401   :  { %3133 = vmatmul.msk.f32.gmra.mxu2 %vm4895_vm0, %v485_v34 }
 0x405   :  { %1424 = vperm.xlu1 %3428, %v1406_v23  }
 0x408   :  { %1419 = vperm.xlu0 %3427, %v1405_v24   ;;  %v486_v36 = vpop.trf.xlu2 }
 0x409   :  { %3134 = vmatmul.msk.f32.gmra.mxu2 %vm4895_vm0, %v486_v36 }
 0x40d   :  { %1414 = vperm.xlu1 %3428, %v1404_v26   ;;  %v3775_v26 = vadd.s32 40, %v3771_v21 }
 0x410   :  { %2462 = vperm.xlu2 %3429, %v2452_v27   ;;  %1409 = vperm.xlu0 %3427, %v1403_v28   ;;  %v487_v39 = vpop.trf.xlu2 }
 0x411   :  { %3135 = vmatmul.msk.f32.gmra.mxu2 %vm4895_vm0, %v487_v39 }
 0x415   :  { %1443 = vperm.xlu1 %3428, %v1440_v29   ;;  %v3778_v29 = vadd.s32 8, %v3771_v21 }
 0x418   :  { %2502 = vperm.xlu2 %3429, %v2492_v31   ;;  %v488_v42 = vpop.trf.xlu2  ;;  %v3781_v31 = vadd.s32 32, %v3771_v21 }
 0x419   :  { %3136 = vmatmul.msk.f32.gmra.mxu2 %vm4895_vm0, %v488_v42  ;;  %v2962_v42 = vld [vmem:[%s4892_s1 + $0x440] sm:$0xff] }
 0x41f   :  { %v628_v51 = vpop.xlane.xlu0 %627 }
 0x420   :  { %2589 = vperm.xlu2 %3429, %v2571_v33   ;;  %v489_v52 = vpop.trf.xlu2  ;;  %v674_v12 = vadd.f32 %v628_v51, %v3759_v0 }
 0x421   :  { %3137 = vmatmul.msk.f32.gmra.mxu2 %vm4895_vm0, %v489_v52 }
 0x427   :  { %v631_v60 = vpop.xlane.xlu1 %630 }
 0x428   :  { %2579 = vperm.xlu2 %3429, %v2569_v35   ;;  %v675_v8 = vadd.f32 %v631_v60, %v3759_v0 }
 0x42c   :  { %v555_v37 = vpop.f32.mrf.mxu2 }
 0x42d   :  { %v690_v9 = vmul.f32 2.0, %v555_v37 }
 0x42f   :  { %v706_v16 = vsub.f32 %v674_v12, %v690_v9 }
 0x430   :  { %2666 = vperm.xlu2 %3429, %v2648_v38  }
 0x431   :  { %v722_v25 = vmax.f32 %v706_v16, 0.0 }
 0x433   :  { %v754_v35 = vand.u32 4294967168, %v722_v25 }
 0x434   :  { %v558_v40 = vpop.f32.mrf.mxu2 }
 0x435   :  { %v691_v5 = vmul.f32 2.0, %v558_v40  ;;  %v3798_v52 = vor.u32 %v754_v35, %v3771_v21 }
 0x437   :  { %v637_v57 = vpop.xlane.xlu0 %636  ;;  %v707_v14 = vsub.f32 %v675_v8, %v691_v5 }
 0x438   :  { %2656 = vperm.xlu2 %3429, %v2646_v41   ;;  %v677_v24 = vadd.f32 %v637_v57, %v3759_v0 }
 0x439   :  { %v723_v22 = vmax.f32 %v707_v14, 0.0 }
 0x43b   :  { %v755_v30 = vand.u32 4294967168, %v723_v22 }
 0x43c   :  { %v3746_v44 = vpop.f32.mrf.mxu2 }
 0x43d   :  { %v3791_v43 = vor.u32 %v755_v30, %v3778_v29 }
 0x43f   :  { %v640_v2 = vpop.xlane.xlu1 %639 }
 0x440   :  { %2722 = vperm.xlu2 %3429, %v2719_v45   ;;  %v678_v10 = vadd.f32 %v640_v2, %v3759_v0 }
 0x444   :  { %v564_v55 = vpop.f32.mrf.mxu2 }
 0x445   :  { %v693_v19 = vmul.f32 2.0, %v564_v55  ;;  %v3803_v55 = vadd.s32 24, %v3771_v21 }
 0x447   :  { %v643_v63 = vpop.xlane.xlu0 %642  ;;  %v709_v28 = vsub.f32 %v677_v24, %v693_v19 }
 0x448   :  { %2859 = vperm.xlu2 %3429, %v2845_v54   ;;  %v679_v6 = vadd.f32 %v643_v63, %v3759_v0 }
 0x449   :  { %v725_v39 = vmax.f32 %v709_v28, 0.0 }
 0x44b   :  { %v757_v54 = vand.u32 4294967168, %v725_v39 }
 0x44c   :  { %v567_v59 = vpop.f32.mrf.mxu2 }
 0x44d   :  { %v694_v7 = vmul.f32 2.0, %v567_v59 }
 0x44f   :  { %v710_v15 = vsub.f32 %v678_v10, %v694_v7  ;;  %v646_v34 = vpop.xlane.xlu1 %645 }
 0x450   :  { %2849 = vperm.xlu2 %3429, %v2843_v61   ;;  %v680_v47 = vadd.f32 %v646_v34, %v3759_v0  ;;  %v692_v61 = vmul.f32 2.0, %v3746_v44  ;;  %v3826_v44 = vadd.s32 48, %v3771_v21  ;;  %v3845_v34 = vadd.s32 120, %v3771_v21 }
 0x451   :  { %v726_v23 = vmax.f32 %v710_v15, 0.0 }
 0x453   :  { %v758_v32 = vand.u32 4294967168, %v726_v23 }
 0x454   :  { %v570_v1 = vpop.f32.mrf.mxu2 }
 0x455   :  { %v695_v3 = vmul.f32 2.0, %v570_v1  ;;  %v3794_v45 = vor.u32 %v758_v32, %v3781_v31  ;;  %v3815_v1 = vor.u32 %v757_v54, %v3803_v55  ;;  %v3496_v54 = vmov 1.0|1.0  }
 0x457   :  { %v711_v11 = vsub.f32 %v679_v6, %v695_v3  ;;  %v649_v33 = vpop.xlane.xlu0 %648  ;;  %vm836_vm3 = vcmp.lt.s32.totalorder %v3798_v52, %v3794_v45 }
 0x458   :  { %2899 = vperm.xlu2 %3429, %v2885_v4   ;;  %v681_v40 = vadd.f32 %v649_v33, %v3759_v0  ;;  %v837_v2 = vsel %vm836_vm3, %v3798_v52, %v3794_v45  ;;  %v2960_v4 = vld [vmem:[%s4892_s1 + $0x430] sm:$0xff]  ;;  %v3842_v33 = vadd.s32 112, %v3771_v21 }
 0x459   :  { %v727_v17 = vmax.f32 %v711_v11, 0.0  ;;  %vm844_vm6 = vcmp.lt.s32.totalorder %v837_v2, 2147483647 }
 0x45a   :  { %v845_v11 = vsel %vm844_vm6, %v837_v2, 2147483647 }
 0x45b   :  { %v759_v27 = vand.u32 4294967168, %v727_v17  ;;  %vm852_vm9 = vcmp.lt.s32.totalorder %v845_v11, 2147483647 }
 0x45c   :  { %v573_v18 = vpop.f32.mrf.mxu2  ;;  %v853_v17 = vsel %vm852_vm9, %v845_v11, 2147483647 }
 0x45d   :  { %v3784_v36 = vor.u32 %v759_v27, %v3775_v26  ;;  %v696_v37 = vmul.f32 2.0, %v573_v18 }
 0x45f   :  { %vm838_vm2 = vcmp.lt.s32.totalorder %v3791_v43, %v3784_v36  ;;  %v712_v53 = vsub.f32 %v680_v47, %v696_v37  ;;  %v3850_v37 = vadd.s32 96, %v3771_v21  ;;  %v3865_v47 = vadd.s32 64, %v3771_v21 }
 0x460   :  { %2889 = vperm.xlu2 %3429, %v2883_v20   ;;  %v839_v58 = vsel %vm838_vm2, %v3791_v43, %v3784_v36 }
 0x461   :  { %v728_v62 = vmax.f32 %v712_v53, 0.0  ;;  %vm846_vm4 = vcmp.lt.s32.totalorder %v839_v58, 2147483647  ;;  %v3878_v53 = vadd.s32 72, %v3771_v21 }
 0x462   :  { %v847_v9 = vsel %vm846_vm4, %v839_v58, 2147483647 }
 0x463   :  { %v760_v6 = vand.u32 4294967168, %v728_v62  ;;  %vm854_vm8 = vcmp.lt.s32.totalorder %v847_v9, 2147483647 }
 0x464   :  { %v576_v38 = vpop.f32.mrf.mxu2  ;;  %v855_v15 = vsel %vm854_vm8, %v847_v9, 2147483647 }
 0x465   :  { %v697_v41 = vmul.f32 2.0, %v576_v38  ;;  %v776_v12 = vor.u32 %v760_v6, %v3826_v44  ;;  %vm860_vm13 = vcmp.lt.s32.totalorder %v853_v17, %v855_v15  ;;  %v3853_v38 = vadd.s32 104, %v3771_v21 }
 0x466   :  { %v861_v22 = vsel %vm860_vm13, %v853_v17, %v855_v15 }
 0x467   :  { %v713_v51 = vsub.f32 %v681_v40, %v697_v41  ;;  %v3859_v40 = vadd.s32 80, %v3771_v21  ;;  %v3862_v41 = vadd.s32 88, %v3771_v21 }
 0x468   :  { %2976 = vperm.xlu2 %3429, %v2962_v42  }
 0x469   :  { %v729_v57 = vmax.f32 %v713_v51, 0.0  ;;  %v3871_v51 = vpop.f32.mrf.mxu1 }
 0x46b   :  { %v761_v59 = vand.u32 4294967168, %v729_v57  ;;  %v634_v60 = vpop.xlane.xlu2 %633 }
 0x46c   :  { %v676_v63 = vadd.f32 %v634_v60, %v3759_v0  ;;  %v3831_v0 = vadd.s32 16, %v3771_v21  ;;  %v579_v42 = vpop.f32.mrf.mxu2 }
 0x46d   :  { %v3820_v3 = vor.u32 %v761_v59, %v3806_v56 }
 0x46e   :  { %v708_v5 = vsub.f32 %v676_v63, %v692_v61 }
 0x46f   :  { %vm842_vm5 = vcmp.lt.s32.totalorder %v3815_v1, %v3820_v3 }
 0x470   :  { %v843_v7 = vsel %vm842_vm5, %v3815_v1, %v3820_v3  ;;  %v724_v8 = vmax.f32 %v708_v5, 0.0  ;;  %2966 = vperm.xlu2 %3429, %v2960_v4  }
 0x471   :  { %vm850_vm7 = vcmp.lt.s32.totalorder %v843_v7, 2147483647  ;;  %v449_v6 = vpop.f32.mrf.mxu1 }
 0x472   :  { %v756_v10 = vand.u32 4294967168, %v724_v8  ;;  %v851_v14 = vsel %vm850_vm7, %v843_v7, 2147483647 }
 0x473   :  { %vm858_vm11 = vcmp.lt.s32.totalorder %v851_v14, 2147483647 }
 0x474   :  { %v3837_v13 = vor.u32 %v756_v10, %v3831_v0  ;;  %v859_v19 = vsel %vm858_vm11, %v851_v14, 2147483647  ;;  %v582_v4 = vpop.f32.mrf.mxu2 }
 0x476   :  { %vm840_vm10 = vcmp.lt.s32.totalorder %v3837_v13, %v776_v12 }
 0x477   :  { %v841_v16 = vsel %vm840_vm10, %v3837_v13, %v776_v12 }
 0x478   :  { %vm848_vm12 = vcmp.lt.s32.totalorder %v841_v16, 2147483647 }
 0x479   :  { %v849_v18 = vsel %vm848_vm12, %v841_v16, 2147483647  ;;  %v3993_v17 = vpop.f32.mrf.mxu1 }
 0x47a   :  { %vm856_vm14 = vcmp.lt.s32.totalorder %v849_v18, 2147483647 }
 0x47b   :  { %v857_v20 = vsel %vm856_vm14, %v849_v18, 2147483647  ;;  %v405_v18 = vpop.permute.xlu0 %404 }
 0x47c   :  { %vm862_vm15 = vcmp.lt.s32.totalorder %v857_v20, %v859_v19  ;;  %v585_v14 = vpop.f32.mrf.mxu2 }
 0x47d   :  { %v863_v23 = vsel %vm862_vm15, %v857_v20, %v859_v19 }
 0x47e   :  { %vm864_vm2 = vcmp.lt.s32.totalorder %v861_v22, %v863_v23 }
 0x47f   :  { %v865_v24 = vsel %vm864_vm2, %v861_v22, %v863_v23  ;;  %v400_v23 = vpop.permute.xlu1 %399 }
 0x480   :  { %v866_v25 = vrot.slane %v865_v24, 4 }
 0x481   :  { %v455_v42 = vpop.f32.mrf.mxu1 }
 0x482   :  { %vm867_vm3 = vcmp.lt.s32.totalorder %v865_v24, %v866_v25 }
 0x483   :  { %v868_v27 = vsel %vm867_vm3, %v865_v24, %v866_v25  ;;  %v450_v25 = vadd.f32 %v449_v6, %v405_v18 }
 0x484   :  { %v869_v28 = vrot.slane %v868_v27, 2  ;;  %v588_v22 = vpop.f32.mrf.mxu2 }
 0x486   :  { %vm870_vm4 = vcmp.lt.s32.totalorder %v868_v27, %v869_v28 }
 0x487   :  { %v871_v30 = vsel %vm870_vm4, %v868_v27, %v869_v28  ;;  %v447_v28 = vadd.f32 %v3871_v51, %v400_v23  ;;  %v410_v6 = vpop.permute.xlu1 %409 }
 0x488   :  { %v872_v32 = vrot.slane %v871_v30, 1 }
 0x48a   :  { %vm873_vm5 = vcmp.lt.s32.totalorder %v871_v30, %v872_v32 }
 0x48b   :  { %v3847_v35 = vsel %vm873_vm5, %v871_v30, %v872_v32  ;;  %v4019_v32 = vpack.c.bf16 %v450_v25, %v447_v28 }
 0x48c   :  { %v3856_v39 = vand.u32 127, %v3847_v35 }
 0x48e   :  { %vm895_vm6 = vcmp.eq.s32.totalorder %v3842_v33, %v3856_v39  ;;  %vm896_vm7 = vcmp.eq.s32.totalorder %v3845_v34, %v3856_v39  ;;  %vm893_vm9 = vcmp.eq.s32.totalorder %v3850_v37, %v3856_v39  ;;  %vm894_vm10 = vcmp.eq.s32.totalorder %v3853_v38, %v3856_v39 }
 0x48f   :  { %vm3154_vm8 = vmpackc.low %vm896_vm7, %vm895_vm6  ;;  %vm891_vm11 = vcmp.eq.s32.totalorder %v3859_v40, %v3856_v39  ;;  %vm892_vm12 = vcmp.eq.s32.totalorder %v3862_v41, %v3856_v39  ;;  %vm887_vm13 = vcmp.eq.s32.totalorder %v3826_v44, %v3856_v39  ;;  %vm888_vm14 = vcmp.eq.s32.totalorder %v3806_v56, %v3856_v39 }
 0x490   :  { %3155 = vmatpush.bf16.msk.msra.mxu3 %vm3154_vm8, %v3496_v54  ;;  %vm889_vm15 = vcmp.eq.s32.totalorder %v3865_v47, %v3856_v39  ;;  %v3894_v57 = vsel %vm887_vm13, 2147483647, %v776_v12  ;;  %vm4898_vm2 = vcmp.eq.s32.totalorder %v3771_v21, %v3856_v39  ;;  %vm4897_vm3 = vcmp.eq.s32.totalorder %v3778_v29, %v3856_v39  ;;  %vm3156_vm6 = vmpackc.low %vm894_vm10, %vm893_vm9 }
 0x491   :  { %v3904_v58 = vsel %vm888_vm14, 2147483647, %v3820_v3  ;;  %vm885_vm4 = vcmp.eq.s32.totalorder %v3781_v31, %v3856_v39  ;;  %vm886_vm5 = vcmp.eq.s32.totalorder %v3775_v26, %v3856_v39  ;;  %v3914_v59 = vsel %vm4898_vm2, 2147483647, %v3798_v52 }
 0x492   :  { %v3926_v60 = vsel %vm4897_vm3, 2147483647, %v3791_v43  ;;  %v3932_v61 = vsel %vm885_vm4, 2147483647, %v3794_v45  ;;  %v3938_v52 = vsel %vm886_vm5, 2147483647, %v3784_v36  ;;  %vm4900_vm7 = vcmp.eq.s32.totalorder %v3831_v0, %v3856_v39 }
 0x493   :  { %vm980_vm8 = vcmp.lt.s32.totalorder %v3914_v59, %v3932_v61  ;;  %vm982_vm9 = vcmp.lt.s32.totalorder %v3926_v60, %v3938_v52  ;;  %vm4899_vm10 = vcmp.eq.s32.totalorder %v3803_v55, %v3856_v39  ;;  %v3953_v36 = vsel %vm4900_vm7, 2147483647, %v3837_v13 }
 0x494   :  { %3157 = vmatpush.bf16.msk.msra.mxu3 %vm3156_vm6, %v3496_v54  ;;  %v981_v43 = vsel %vm980_vm8, %v3914_v59, %v3932_v61  ;;  %v983_v45 = vsel %vm982_vm9, %v3926_v60, %v3938_v52  ;;  %v3963_v62 = vsel %vm4899_vm10, 2147483647, %v3815_v1  ;;  %vm984_vm6 = vcmp.lt.s32.totalorder %v3953_v36, %v3894_v57  ;;  %vm3158_vm9 = vmpackc.low %vm892_vm12, %vm891_vm11 }
 0x495   :  { %vm988_vm0 = vcmp.lt.s32.totalorder %v981_v43, 2147483647  ;;  %vm990_vm1 = vcmp.lt.s32.totalorder %v983_v45, 2147483647  ;;  %v985_v63 = vsel %vm984_vm6, %v3953_v36, %v3894_v57  ;;  %vm986_vm8 = vcmp.lt.s32.totalorder %v3963_v62, %v3904_v58 }
 0x496   :  { %v989_v1 = vsel %vm988_vm0, %v981_v43, 2147483647  ;;  %v991_v2 = vsel %vm990_vm1, %v983_v45, 2147483647  ;;  %v987_v3 = vsel %vm986_vm8, %v3963_v62, %v3904_v58  ;;  %vm992_vm3 = vcmp.lt.s32.totalorder %v985_v63, 2147483647  ;;  %v415_v43 = vpop.permute.xlu0 %414 }
 0x497   :  { %vm890_vm6 = vcmp.eq.s32.totalorder %v3878_v53, %v3856_v39  ;;  %vm996_vm2 = vcmp.lt.s32.totalorder %v989_v1, 2147483647  ;;  %vm998_vm10 = vcmp.lt.s32.totalorder %v991_v2, 2147483647  ;;  %v993_v5 = vsel %vm992_vm3, %v985_v63, 2147483647 }
 0x498   :  { %3159 = vmatpush.bf16.msk.msra.mxu3 %vm3158_vm9, %v3496_v54  ;;  %v997_v7 = vsel %vm996_vm2, %v989_v1, 2147483647  ;;  %v999_v8 = vsel %vm998_vm10, %v991_v2, 2147483647  ;;  %vm994_vm7 = vcmp.lt.s32.totalorder %v987_v3, 2147483647  ;;  %vm3160_vm1 = vmpackc.low %vm890_vm6, %vm889_vm15  ;;  %vm4917_vm6 = vcmp.eq.s32.totalorder %v3778_v29, %v3856_v39 }
 0x499   :  { %vm1004_vm11 = vcmp.lt.s32.totalorder %v997_v7, %v999_v8  ;;  %v995_v9 = vsel %vm994_vm7, %v987_v3, 2147483647  ;;  %vm1000_vm0 = vcmp.lt.s32.totalorder %v993_v5, 2147483647  ;;  %vm3162_vm2 = vmpackc.low %vm888_vm14, %vm887_vm13  ;;  %vm4914_vm13 = vcmp.eq.s32.totalorder %v3831_v0, %v3856_v39 }
 0x49a   :  { %v1001_v10 = vsel %vm1000_vm0, %v993_v5, 2147483647  ;;  %vm1002_vm12 = vcmp.lt.s32.totalorder %v995_v9, 2147483647  ;;  %v1005_v11 = vsel %vm1004_vm11, %v997_v7, %v999_v8  ;;  %vm3164_vm15 = vmpackc.low %vm886_vm5, %vm885_vm4  ;;  %vm4915_vm14 = vcmp.eq.s32.totalorder %v3803_v55, %v3856_v39 }
 0x49b   :  { %v1003_v12 = vsel %vm1002_vm12, %v995_v9, 2147483647  ;;  %vm3166_vm10 = vmpackc.low %vm4915_vm14, %vm4914_vm13  ;;  %vm4916_vm5 = vcmp.eq.s32.totalorder %v3771_v21, %v3856_v39  ;;  %v591_v39 = vpop.f32.mrf.mxu2  ;;  %v456_v51 = vadd.f32 %v455_v42, %v415_v43  ;;  %v876_v43 = vand.u32 4294967168, %v3847_v35 }
 0x49c   :  { %3161 = vmatpush.bf16.msk.msra.mxu3 %vm3160_vm1, %v3496_v54  ;;  %vm1006_vm8 = vcmp.lt.s32.totalorder %v1001_v10, %v1003_v12  ;;  %vm3168_vm11 = vmpackc.low %vm4917_vm6, %vm4916_vm5 }
 0x49d   :  { %v1007_v13 = vsel %vm1006_vm8, %v1001_v10, %v1003_v12  ;;  %v878_v39 = vmul.f32 -10.0, %v876_v43 }
 0x49e   :  { %vm1008_vm3 = vcmp.lt.s32.totalorder %v1005_v11, %v1007_v13 }
 0x49f   :  { %v1009_v15 = vsel %vm1008_vm3, %v1005_v11, %v1007_v13  ;;  %v453_v11 = vadd.f32 %v3993_v17, %v410_v6 }
 0x4a0   :  { %3163 = vmatpush.bf16.msk.msra.mxu3 %vm3162_vm2, %v3496_v54  ;;  %v1010_v16 = vrot.slane %v1009_v15, 4 }
 0x4a1   :  { %v4105_v14 = vpack.c.bf16 %v456_v51, %v453_v11 }
 0x4a2   :  { %vm1011_vm7 = vcmp.lt.s32.totalorder %v1009_v15, %v1010_v16 }
 0x4a3   :  { %v1012_v19 = vsel %vm1011_vm7, %v1009_v15, %v1010_v16  ;;  %v594_v5 = vpop.f32.mrf.mxu2 }
 0x4a4   :  { %3165 = vmatpush.bf16.msk.msra.mxu3 %vm3164_vm15, %v3496_v54  ;;  %v1013_v20 = vrot.slane %v1012_v19, 2 }
 0x4a6   :  { %vm1014_vm9 = vcmp.lt.s32.totalorder %v1012_v19, %v1013_v20 }
 0x4a7   :  { %v1015_v24 = vsel %vm1014_vm9, %v1012_v19, %v1013_v20 }
 0x4a8   :  { %3167 = vmatpush.bf16.msk.msra.mxu3 %vm3166_vm10, %v3496_v54  ;;  %v1016_v27 = vrot.slane %v1015_v24, 1 }
 0x4aa   :  { %vm1017_vm4 = vcmp.lt.s32.totalorder %v1015_v24, %v1016_v27 }
 0x4ab   :  { %v4016_v30 = vsel %vm1017_vm4, %v1015_v24, %v1016_v27  ;;  %v597_v17 = vpop.f32.mrf.mxu2 }
 0x4ac   :  { %3169 = vmatpush.bf16.msk.msra.mxu3 %vm3168_vm11, %v3496_v54  ;;  %v4022_v45 = vand.u32 127, %v4016_v30 }
 0x4ae   :  { %vm1039_vm0 = vcmp.eq.s32.totalorder %v3842_v33, %v4022_v45  ;;  %vm1040_vm1 = vcmp.eq.s32.totalorder %v3845_v34, %v4022_v45  ;;  %vm1037_vm8 = vcmp.eq.s32.totalorder %v3850_v37, %v4022_v45  ;;  %vm1038_vm2 = vcmp.eq.s32.totalorder %v3853_v38, %v4022_v45 }
 0x4af   :  { %945 = vmatmul.bf16.vlgmr.msra.gmra.mxu3 %v4019_v32  ;;  %vm3186_vm12 = vmpackc.low %vm1040_vm1, %vm1039_vm0  ;;  %vm1035_vm3 = vcmp.eq.s32.totalorder %v3859_v40, %v4022_v45  ;;  %vm1036_vm15 = vcmp.eq.s32.totalorder %v3862_v41, %v4022_v45  ;;  %vm1031_vm7 = vcmp.eq.s32.totalorder %v3826_v44, %v4022_v45  ;;  %vm1032_vm13 = vcmp.eq.s32.totalorder %v3806_v56, %v4022_v45 }
 0x4b0   :  { %3187 = vmatpush.bf16.msk.msrb.mxu0 %vm3186_vm12, %v3496_v54  ;;  %vm1033_vm14 = vcmp.eq.s32.totalorder %v3865_v47, %v4022_v45  ;;  %v1118_v63 = vsel %vm1031_vm7, 2147483647, %v3894_v57  ;;  %vm4902_vm10 = vcmp.eq.s32.totalorder %v3771_v21, %v4022_v45  ;;  %vm4901_vm9 = vcmp.eq.s32.totalorder %v3778_v29, %v4022_v45  ;;  %vm3188_vm6 = vmpackc.low %vm1038_vm2, %vm1037_vm8 }
 0x4b1   :  { %v1119_v1 = vsel %vm1032_vm13, 2147483647, %v3904_v58  ;;  %vm1029_vm4 = vcmp.eq.s32.totalorder %v3781_v31, %v4022_v45  ;;  %vm4905_vm5 = vcmp.eq.s32.totalorder %v3775_v26, %v4022_v45  ;;  %v1112_v57 = vsel %vm4902_vm10, 2147483647, %v3914_v59 }
 0x4b2   :  { %v1113_v58 = vsel %vm4901_vm9, 2147483647, %v3926_v60  ;;  %v1116_v2 = vsel %vm1029_vm4, 2147483647, %v3932_v61  ;;  %v1117_v3 = vsel %vm4905_vm5, 2147483647, %v3938_v52  ;;  %vm4904_vm11 = vcmp.eq.s32.totalorder %v3831_v0, %v4022_v45 }
 0x4b3   :  { %vm1128_vm0 = vcmp.lt.s32.totalorder %v1112_v57, %v1116_v2  ;;  %vm1130_vm1 = vcmp.lt.s32.totalorder %v1113_v58, %v1117_v3  ;;  %vm4903_vm12 = vcmp.eq.s32.totalorder %v3803_v55, %v4022_v45  ;;  %v1114_v59 = vsel %vm4904_vm11, 2147483647, %v3953_v36  ;;  %v600_v24 = vpop.f32.mrf.mxu2 }
 0x4b4   :  { %3189 = vmatpush.bf16.msk.msrb.mxu0 %vm3188_vm6, %v3496_v54  ;;  %v1129_v60 = vsel %vm1128_vm0, %v1112_v57, %v1116_v2  ;;  %v1131_v61 = vsel %vm1130_vm1, %v1113_v58, %v1117_v3  ;;  %v1115_v52 = vsel %vm4903_vm12, 2147483647, %v3963_v62  ;;  %vm1132_vm8 = vcmp.lt.s32.totalorder %v1114_v59, %v1118_v63  ;;  %vm3190_vm0 = vmpackc.low %vm1036_vm15, %vm1035_vm3 }
 0x4b5   :  { %vm1136_vm2 = vcmp.lt.s32.totalorder %v1129_v60, 2147483647  ;;  %vm1138_vm6 = vcmp.lt.s32.totalorder %v1131_v61, 2147483647  ;;  %v1133_v4 = vsel %vm1132_vm8, %v1114_v59, %v1118_v63  ;;  %vm1134_vm9 = vcmp.lt.s32.totalorder %v1115_v52, %v1119_v1 }
 0x4b6   :  { %v1137_v36 = vsel %vm1136_vm2, %v1129_v60, 2147483647  ;;  %v1139_v7 = vsel %vm1138_vm6, %v1131_v61, 2147483647  ;;  %v1135_v8 = vsel %vm1134_vm9, %v1115_v52, %v1119_v1  ;;  %vm1140_vm1 = vcmp.lt.s32.totalorder %v1133_v4, 2147483647 }
 0x4b7   :  { %vm1034_vm10 = vcmp.eq.s32.totalorder %v3878_v53, %v4022_v45  ;;  %vm1144_vm8 = vcmp.lt.s32.totalorder %v1137_v36, 2147483647  ;;  %vm1146_vm12 = vcmp.lt.s32.totalorder %v1139_v7, 2147483647  ;;  %v1141_v62 = vsel %vm1140_vm1, %v1133_v4, 2147483647 }
 0x4b8   :  { %3191 = vmatpush.bf16.msk.msrb.mxu0 %vm3190_vm0, %v3496_v54  ;;  %v1145_v9 = vsel %vm1144_vm8, %v1137_v36, 2147483647  ;;  %v1147_v10 = vsel %vm1146_vm12, %v1139_v7, 2147483647  ;;  %vm1142_vm11 = vcmp.lt.s32.totalorder %v1135_v8, 2147483647  ;;  %vm3192_vm15 = vmpackc.low %vm1034_vm10, %vm1033_vm14  ;;  %vm4922_vm8 = vcmp.eq.s32.totalorder %v3778_v29, %v4022_v45 }
 0x4b9   :  { %vm1152_vm5 = vcmp.lt.s32.totalorder %v1145_v9, %v1147_v10  ;;  %v1143_v12 = vsel %vm1142_vm11, %v1135_v8, 2147483647  ;;  %vm1148_vm3 = vcmp.lt.s32.totalorder %v1141_v62, 2147483647  ;;  %vm3194_vm14 = vmpackc.low %vm1032_vm13, %vm1031_vm7  ;;  %vm4919_vm7 = vcmp.eq.s32.totalorder %v3831_v0, %v4022_v45 }
 0x4ba   :  { %v1149_v13 = vsel %vm1148_vm3, %v1141_v62, 2147483647  ;;  %vm1150_vm9 = vcmp.lt.s32.totalorder %v1143_v12, 2147483647  ;;  %v1153_v15 = vsel %vm1152_vm5, %v1145_v9, %v1147_v10  ;;  %vm4918_vm5 = vcmp.eq.s32.totalorder %v3775_v26, %v4022_v45 }
 0x4bb   :  { %v1151_v16 = vsel %vm1150_vm9, %v1143_v12, 2147483647  ;;  %vm3196_vm11 = vmpackc.low %vm4918_vm5, %vm1029_vm4  ;;  %vm4920_vm13 = vcmp.eq.s32.totalorder %v3803_v55, %v4022_v45  ;;  %vm4921_vm4 = vcmp.eq.s32.totalorder %v3771_v21, %v4022_v45  ;;  %v1020_v45 = vand.u32 4294967168, %v4016_v30 }
 0x4bc   :  { %3193 = vmatpush.bf16.msk.msrb.mxu0 %vm3192_vm15, %v3496_v54  ;;  %vm1154_vm2 = vcmp.lt.s32.totalorder %v1149_v13, %v1151_v16  ;;  %vm3198_vm6 = vmpackc.low %vm4920_vm13, %vm4919_vm7  ;;  %v879_v63 = vmul.f32 1.442695, %v878_v39 }
 0x4bd   :  { %v1155_v18 = vsel %vm1154_vm2, %v1149_v13, %v1151_v16  ;;  %vm3200_vm3 = vmpackc.low %vm4922_vm8, %vm4921_vm4  ;;  %v1022_v51 = vmul.f32 -10.0, %v1020_v45  ;;  %v1354_v16 = vld [vmem:[%s4892_s1 + $0x190] sm:$0xff] }
 0x4be   :  { %vm1156_vm10 = vcmp.lt.s32.totalorder %v1153_v15, %v1155_v18  ;;  %3430 = vpow2.f32 %v879_v63 }
 0x4bf   :  { %950 = vmatmul.bf16.gmra.mxu3 %v4105_v14  ;;  %v1157_v19 = vsel %vm1156_vm10, %v1153_v15, %v1155_v18  ;;  %v1023_v1 = vmul.f32 1.442695, %v1022_v51 }
 0x4c0   :  { %3195 = vmatpush.bf16.msk.msrb.mxu0 %vm3194_vm14, %v3496_v54  ;;  %v1158_v20 = vrot.slane %v1157_v19, 4 }
 0x4c1   :  { %3432 = vpow2.f32 %v1023_v1 }
 0x4c2   :  { %vm1159_vm12 = vcmp.lt.s32.totalorder %v1157_v19, %v1158_v20 }
 0x4c3   :  { %v1160_v22 = vsel %vm1159_vm12, %v1157_v19, %v1158_v20 }
 0x4c4   :  { %3197 = vmatpush.bf16.msk.msrb.mxu0 %vm3196_vm11, %v3496_v54  ;;  %v1161_v23 = vrot.slane %v1160_v22, 2 }
 0x4c6   :  { %vm1162_vm0 = vcmp.lt.s32.totalorder %v1160_v22, %v1161_v23 }
 0x4c7   :  { %v1163_v25 = vsel %vm1162_vm0, %v1160_v22, %v1161_v23 }
 0x4c8   :  { %3199 = vmatpush.bf16.msk.msrb.mxu0 %vm3198_vm6, %v3496_v54  ;;  %v1164_v27 = vrot.slane %v1163_v25, 1 }
 0x4ca   :  { %vm1165_vm1 = vcmp.lt.s32.totalorder %v1163_v25, %v1164_v27 }
 0x4cb   :  { %v4136_v28 = vsel %vm1165_vm1, %v1163_v25, %v1164_v27 }
 0x4cc   :  { %3201 = vmatpush.bf16.msk.msrb.mxu0 %vm3200_vm3, %v3496_v54  ;;  %v1167_v42 = vand.u32 127, %v4136_v28  ;;  %v1168_v4 = vand.u32 4294967168, %v4136_v28  ;;  %v1355_v28 = vld [vmem:[%s4892_s1 + $0x198] sm:$0xff] }
 0x4ce   :  { %vm1187_vm15 = vcmp.eq.s32.totalorder %v3842_v33, %v1167_v42  ;;  %vm1188_vm9 = vcmp.eq.s32.totalorder %v3845_v34, %v1167_v42  ;;  %vm1185_vm14 = vcmp.eq.s32.totalorder %v3850_v37, %v1167_v42  ;;  %vm1186_vm10 = vcmp.eq.s32.totalorder %v3853_v38, %v1167_v42 }
 0x4cf   :  { %1089 = vmatmul.bf16.vlgmr.msrb.gmra.mxu0 %v4019_v32  ;;  %vm3218_vm2 = vmpackc.low %vm1188_vm9, %vm1187_vm15  ;;  %vm1183_vm11 = vcmp.eq.s32.totalorder %v3859_v40, %v1167_v42  ;;  %vm1184_vm12 = vcmp.eq.s32.totalorder %v3862_v41, %v1167_v42  ;;  %vm1181_vm13 = vcmp.eq.s32.totalorder %v3865_v47, %v1167_v42  ;;  %vm1182_vm6 = vcmp.eq.s32.totalorder %v3878_v53, %v1167_v42 }
 0x4d0   :  { %3414 = vmatpush.bf16.msk.msrb.mxu1 %vm3218_vm2, %v3496_v54  ;;  %3219 = vmatpush.bf16.msk.msra.mxu0 %vm3218_vm2, %v3496_v54  ;;  %vm3220_vm5 = vmpackc.low %vm1186_vm10, %vm1185_vm14  ;;  %vm1179_vm1 = vcmp.eq.s32.totalorder %v3826_v44, %v1167_v42  ;;  %vm1180_vm4 = vcmp.eq.s32.totalorder %v3806_v56, %v1167_v42  ;;  %vm1177_vm3 = vcmp.eq.s32.totalorder %v3781_v31, %v1167_v42  ;;  %v1170_v7 = vmul.f32 -10.0, %v1168_v4 }
 0x4d1   :  { %vm3222_vm7 = vmpackc.low %vm1184_vm12, %vm1183_vm11  ;;  %vm1178_vm15 = vcmp.eq.s32.totalorder %v3775_v26, %v1167_v42  ;;  %vm1175_vm2 = vcmp.eq.s32.totalorder %v3831_v0, %v1167_v42  ;;  %vm1176_vm14 = vcmp.eq.s32.totalorder %v3803_v55, %v1167_v42  ;;  %vm1174_vm11 = vcmp.eq.s32.totalorder %v3778_v29, %v1167_v42 }
 0x4d2   :  { %vm3224_vm0 = vmpackc.low %vm1182_vm6, %vm1181_vm13  ;;  %v1171_v10 = vmul.f32 1.442695, %v1170_v7 }
 0x4d3   :  { %vm3226_vm8 = vmpackc.low %vm1180_vm4, %vm1179_vm1 }
 0x4d4   :  { %3415 = vmatpush.bf16.msk.msrb.mxu1 %vm3220_vm5, %v3496_v54  ;;  %3221 = vmatpush.bf16.msk.msra.mxu0 %vm3220_vm5, %v3496_v54  ;;  %vm3228_vm9 = vmpackc.low %vm1178_vm15, %vm1177_vm3  ;;  %vm1173_vm5 = vcmp.eq.s32.totalorder %v3771_v21, %v1167_v42  ;;  %3434 = vpow2.f32 %v1171_v10 }
 0x4d5   :  { %vm3230_vm10 = vmpackc.low %vm1176_vm14, %vm1175_vm2 }
 0x4d6   :  { %vm3232_vm12 = vmpackc.low %vm1174_vm11, %vm1173_vm5  ;;  %vm4936_vm5 = vcmask 64512  }
 0x4d7   :  { %vm4937_vm11 = vmmov %vm4936_vm5 }
 0x4d8   :  { %3416 = vmatpush.bf16.msk.msrb.mxu1 %vm3222_vm7, %v3496_v54  ;;  %3223 = vmatpush.bf16.msk.msra.mxu0 %vm3222_vm7, %v3496_v54  ;;  %vm4923_vm7 = vcmask 261120  }
 0x4d9   :  { %vm4924_vm13 = vmmov %vm4923_vm7 }
 0x4da   :  { %vm4925_vm6 = vmmov %vm4923_vm7 }
 0x4dc   :  { %3417 = vmatpush.bf16.msk.msrb.mxu1 %vm3224_vm0, %v3496_v54  ;;  %3225 = vmatpush.bf16.msk.msra.mxu0 %vm3224_vm0, %v3496_v54  ;;  %vm4926_vm0 = vmmov %vm4925_vm6 }
 0x4dd   :  { %vm4927_vm1 = vmmov %vm4926_vm0 }
 0x4de   :  { %vm4928_vm4 = vmmov %vm4926_vm0 }
 0x4df   :  { %1094 = vmatmul.bf16.gmra.mxu0 %v4105_v14  ;;  %vm4930_vm3 = vmmov %vm4926_vm0 }
 0x4e0   :  { %3418 = vmatpush.bf16.msk.msrb.mxu1 %vm3226_vm8, %v3496_v54  ;;  %3227 = vmatpush.bf16.msk.msra.mxu0 %vm3226_vm8, %v3496_v54  ;;  %vm4929_vm8 = vmmov %vm4926_vm0 }
 0x4e1   :  { %vm4931_vm15 = vmmov %vm4926_vm0 }
 0x4e2   :  { %vm4933_vm2 = vmmov %vm4926_vm0 }
 0x4e3   :  { %vm4934_vm14 = vmmov %vm4926_vm0 }
 0x4e4   :  { %3419 = vmatpush.bf16.msk.msrb.mxu1 %vm3228_vm9, %v3496_v54  ;;  %3229 = vmatpush.bf16.msk.msra.mxu0 %vm3228_vm9, %v3496_v54  ;;  %vm4932_vm9 = vmmov %vm4926_vm0 }
 0x4e8   :  { %3420 = vmatpush.bf16.msk.msrb.mxu1 %vm3230_vm10, %v3496_v54  ;;  %3231 = vmatpush.bf16.msk.msra.mxu0 %vm3230_vm10, %v3496_v54  ;;  %vm4935_vm10 = vmmov %vm4926_vm0 }
 0x4ec   :  { %3421 = vmatpush.bf16.msk.msrb.mxu1 %vm3232_vm12, %v3496_v54  ;;  %3233 = vmatpush.bf16.msk.msra.mxu0 %vm3232_vm12, %v3496_v54  ;;  %vm4938_vm12 = vmmov %vm4936_vm5 }
 0x4ef   :  { %1242 = vmatmul.bf16.vlgmr.msrb.gmra.mxu1 %v4105_v14  ;;  %1237 = vmatmul.bf16.vlgmr.msra.gmra.mxu0 %v4019_v32 }
 0x4f0   :  { %1382 = vmatpush.msra.mxu1 %v3637_v46  ;;  %v3431_v46 = vpop.eup %3430 }
 0x4f1   :  { %v3433_v58 = vpop.eup %3432 }
 0x4f2   :  { %1383 = vmatpush.msra.mxu1 %v3639_v48  ;;  %v3435_v18 = vpop.eup %3434 }
 0x4f4   :  { %1384 = vmatpush.msra.mxu1 %v3643_v49 }
 0x4f6   :  { %1385 = vmatpush.msra.mxu1 %v3647_v50 }
 0x4ff   :  { %3242 = vmatmul.msk.f32.vlgmr.msra.gmra.mxu1 %vm4923_vm7, %v1354_v16  ;;  %vm4939_vm7 = vmmov %vm4936_vm5 }
 0x507   :  { %3243 = vmatmul.msk.f32.gmra.mxu1 %vm4924_vm13, %v1355_v28  ;;  %vm4940_vm13 = vmmov %vm4936_vm5 }
 0x532   :  { %v946_v57 = vpop.f32.mrf.mxu3 }
 0x533   :  { %v956_v2 = vmul.f32 %v3431_v46, %v946_v57 }
 0x53a   :  { %v948_v3 = vpop.f32.mrf.mxu3 }
 0x53b   :  { %v957_v60 = vmul.f32 %v3431_v46, %v948_v3  ;;  %v1357_v3 = vld [vmem:[%s4892_s1 + $0x1a8] sm:$0xff] }
 0x542   :  { %v951_v52 = vpop.f32.mrf.mxu3 }
 0x543   :  { %v958_v6 = vmul.f32 %v3431_v46, %v951_v52  ;;  %v1267_v52 = vld [vmem:[%s4892_s1 + $0x168] sm:$0xff] }
 0x54a   :  { %v953_v9 = vpop.f32.mrf.mxu3 }
 0x54b   :  { %v959_v12 = vmul.f32 %v3431_v46, %v953_v9  ;;  %v1356_v46 = vld [vmem:[%s4892_s1 + $0x1a0] sm:$0xff] }
 0x54c   :  { %v1090_v32 = vpop.f32.mrf.mxu0  ;;  %3244 = vmatmul.msk.f32.gmra.mxu1 %vm4925_vm6, %v1356_v46  ;;  %vm4941_vm6 = vmmov %vm4936_vm5 }
 0x54d   :  { %v1100_v48 = vmul.f32 %v3433_v58, %v1090_v32 }
 0x54f   :  { %v1104_v49 = vadd.f32 %v1100_v48, %v956_v2  ;;  %v1108_v59 = vmax.f32 %v956_v2, %v1100_v48  ;;  %v1268_v48 = vld [vmem:[%s4892_s1 + $0x170] sm:$0xff] }
 0x554   :  { %v1092_v50 = vpop.f32.mrf.mxu0  ;;  %3245 = vmatmul.msk.f32.gmra.mxu1 %vm4927_vm1, %v1357_v3 }
 0x555   :  { %v1101_v35 = vmul.f32 %v3433_v58, %v1092_v50  ;;  %v1269_v50 = vld [vmem:[%s4892_s1 + $0x178] sm:$0xff] }
 0x557   :  { %v1105_v61 = vadd.f32 %v1101_v35, %v957_v60  ;;  %v1109_v30 = vmax.f32 %v957_v60, %v1101_v35  ;;  %v1265_v60 = vld [vmem:[%s4892_s1 + $0x158] sm:$0xff]  ;;  %v1270_v35 = vld [vmem:[%s4892_s1 + $0x180] sm:$0xff] }
 0x55c   :  { %v1095_v5 = vpop.f32.mrf.mxu0 }
 0x55d   :  { %v1102_v36 = vmul.f32 %v3433_v58, %v1095_v5 }
 0x55f   :  { %v1106_v8 = vadd.f32 %v1102_v36, %v958_v6  ;;  %v1110_v62 = vmax.f32 %v958_v6, %v1102_v36 }
 0x564   :  { %v1097_v11 = vpop.f32.mrf.mxu0 }
 0x565   :  { %v1103_v13 = vmul.f32 %v3433_v58, %v1097_v11  ;;  %v1425_v11 = vpop.permute.xlu1 %1424 }
 0x567   :  { %v1107_v14 = vadd.f32 %v1103_v13, %v959_v12  ;;  %v1111_v15 = vmax.f32 %v959_v12, %v1103_v13  ;;  %v1420_v13 = vpop.permute.xlu0 %1419 }
 0x56c   :  { %v1243_v17 = vpop.f32.mrf.mxu1  ;;  %v1238_v19 = vpop.f32.mrf.mxu0 }
 0x56d   :  { %v1250_v20 = vmul.f32 %v3435_v18, %v1243_v17  ;;  %v1248_v22 = vmul.f32 %v3435_v18, %v1238_v19 }
 0x56f   :  { %v1254_v23 = vadd.f32 %v1250_v20, %v1106_v8  ;;  %v1258_v24 = vmax.f32 %v1110_v62, %v1250_v20  ;;  %v1252_v25 = vadd.f32 %v1248_v22, %v1104_v49  ;;  %v1256_v27 = vmax.f32 %v1108_v59, %v1248_v22  ;;  %v1264_v59 = vld [vmem:[%s4892_s1 + $0x150] sm:$0xff] }
 0x571   :  { %v1262_v32 = vmul.f32 0.33333334, %v1254_v23  ;;  %v1260_v49 = vmul.f32 0.33333334, %v1252_v25 }
 0x574   :  { %v1245_v42 = vpop.f32.mrf.mxu1  ;;  %v1240_v43 = vpop.f32.mrf.mxu0 }
 0x575   :  { %v1251_v45 = vmul.f32 %v3435_v18, %v1245_v42  ;;  %v1249_v39 = vmul.f32 %v3435_v18, %v1240_v43  ;;  %v1410_v43 = vpop.permute.xlu0 %1409 }
 0x577   :  { %v1255_v51 = vadd.f32 %v1251_v45, %v1107_v14  ;;  %v1259_v63 = vmax.f32 %v1111_v15, %v1251_v45  ;;  %v1253_v1 = vadd.f32 %v1249_v39, %v1105_v61  ;;  %v1257_v57 = vmax.f32 %v1109_v30, %v1249_v39  ;;  %v1266_v61 = vld [vmem:[%s4892_s1 + $0x160] sm:$0xff]  ;;  %v1271_v30 = vld [vmem:[%s4892_s1 + $0x188] sm:$0xff] }
 0x579   :  { %v1263_v58 = vmul.f32 0.33333334, %v1255_v51  ;;  %1296 = vmatpush.msrb.mxu3 %v1259_v63  ;;  %v1261_v2 = vmul.f32 0.33333334, %v1253_v1 }
 0x57b   :  { %1297 = vmatpush.msrb.mxu3 %v1258_v24  ;;  %1337 = vmatpush.msrb.mxu0 %v1263_v58 }
 0x57c   :  { %v1387_v4 = vpop.f32.mrf.mxu1 }
 0x57d   :  { %1338 = vmatpush.msrb.mxu0 %v1262_v32  ;;  %1298 = vmatpush.msrb.mxu3 %v1257_v57 }
 0x57f   :  { %1299 = vmatpush.msrb.mxu3 %v1256_v27  ;;  %1339 = vmatpush.msrb.mxu0 %v1261_v2  ;;  %v1415_v27 = vpop.permute.xlu1 %1414  ;;  %v1439_v2 = vld [vmem:[%s4892_s1 + $0x1d0] sm:$0xff] }
 0x580   :  { %3234 = vmatmul.msk.f32.vlgmr.msrb.gmra.mxu3 %vm4926_vm0, %v1268_v48  ;;  %vm4942_vm0 = vmmov %vm4936_vm5 }
 0x581   :  { %1340 = vmatpush.msrb.mxu0 %v1260_v49 }
 0x582   :  { %3238 = vmatmul.msk.f32.vlgmr.msrb.gmra.mxu0 %vm4928_vm4, %v1264_v59  ;;  %vm4943_vm4 = vmmov %vm4942_vm0 }
 0x584   :  { %v1390_v7 = vpop.f32.mrf.mxu1 }
 0x587   :  { %v1444_v48 = vpop.permute.xlu1 %1443 }
 0x588   :  { %3235 = vmatmul.msk.f32.gmra.mxu3 %vm4929_vm8, %v1269_v50  ;;  %vm4944_vm8 = vmmov %vm4942_vm0 }
 0x58a   :  { %3239 = vmatmul.msk.f32.gmra.mxu0 %vm4930_vm3, %v1265_v60  ;;  %vm4945_vm3 = vmmov %vm4927_vm1 }
 0x590   :  { %3236 = vmatmul.msk.f32.gmra.mxu3 %vm4931_vm15, %v1270_v35  ;;  %vm4946_vm15 = vmmov %vm4942_vm0 }
 0x592   :  { %3240 = vmatmul.msk.f32.gmra.mxu0 %vm4932_vm9, %v1266_v61  ;;  %vm4947_vm9 = vmmov %vm4942_vm0 }
 0x598   :  { %3237 = vmatmul.msk.f32.gmra.mxu3 %vm4933_vm2, %v1271_v30  ;;  %vm4948_vm2 = vmmov %vm4927_vm1 }
 0x59a   :  { %3241 = vmatmul.msk.f32.gmra.mxu0 %vm4934_vm14, %v1267_v52  ;;  %vm4949_vm14 = vmmov %vm4942_vm0 }
 0x5c9   :  { %v1393_v9 = vpop.f32.mrf.mxu1 }
 0x5d1   :  { %v1396_v19 = vpop.f32.mrf.mxu1 }
 0x5ff   :  { %v1342_v5 = vpop.f32.mrf.mxu0 }
 0x603   :  { %v1301_v6 = vpop.f32.mrf.mxu3 }
 0x604   :  { %v1343_v16 = vadd.f32 %v1342_v5, %v1301_v6 }
 0x606   :  { %v1399_v23 = vadd.f32 %v1387_v4, %v1343_v16 }
 0x607   :  { %v1345_v36 = vpop.f32.mrf.mxu0 }
 0x608   :  { %v1427_v45 = vadd.f32 %v1410_v43, %v1399_v23 }
 0x60a   :  { %v1431_v57 = vmul.f32 0.01, %v1427_v45 }
 0x60b   :  { %v1304_v8 = vpop.f32.mrf.mxu3 }
 0x60c   :  { %v1346_v14 = vadd.f32 %v1345_v36, %v1304_v8  ;;  %v4240_v32 = vmax.f32 %v1427_v45, %v1431_v57  ;;  %v1469_v36 = vld [vmem:[%s4892_s1 + $0x1e0] sm:$0xff]  ;;  %v1476_v45 = vld [vmem:[%s4892_s1 + $0x218] sm:$0xff]  ;;  %v2453_v57 = vld [vmem:[%s4892_s1 + $0x290] sm:$0xff] }
 0x60e   :  { %v1400_v20 = vadd.f32 %v1390_v7, %v1346_v14 }
 0x60f   :  { %v1348_v62 = vpop.f32.mrf.mxu0 }
 0x610   :  { %v1428_v28 = vadd.f32 %v1415_v27, %v1400_v20 }
 0x612   :  { %v1432_v63 = vmul.f32 0.01, %v1428_v28 }
 0x613   :  { %v1307_v10 = vpop.f32.mrf.mxu3 }
 0x614   :  { %v1349_v12 = vadd.f32 %v1348_v62, %v1307_v10  ;;  %v4237_v58 = vmax.f32 %v1428_v28, %v1432_v63  ;;  %v1474_v28 = vld [vmem:[%s4892_s1 + $0x208] sm:$0xff] }
 0x616   :  { %v1401_v18 = vadd.f32 %v1393_v9, %v1349_v12  ;;  %v1470_v9 = vld [vmem:[%s4892_s1 + $0x1e8] sm:$0xff] }
 0x617   :  { %v1351_v15 = vpop.f32.mrf.mxu0 }
 0x618   :  { %v1429_v24 = vadd.f32 %v1420_v13, %v1401_v18  ;;  %v1471_v13 = vld [vmem:[%s4892_s1 + $0x1f0] sm:$0xff] }
 0x61a   :  { %v1433_v39 = vmul.f32 0.01, %v1429_v24 }
 0x61b   :  { %v1310_v17 = vpop.f32.mrf.mxu3 }
 0x61c   :  { %v1352_v22 = vadd.f32 %v1351_v15, %v1310_v17  ;;  %v4234_v46 = vmax.f32 %v1429_v24, %v1433_v39  ;;  %v1473_v24 = vld [vmem:[%s4892_s1 + $0x200] sm:$0xff] }
 0x61e   :  { %v1402_v25 = vadd.f32 %v1396_v19, %v1352_v22  ;;  %v1472_v19 = vld [vmem:[%s4892_s1 + $0x1f8] sm:$0xff] }
 0x620   :  { %v1430_v42 = vadd.f32 %v1425_v11, %v1402_v25  ;;  %v3034_v25 = vld [vmem:[%s4892_s1 + $0x458] sm:$0xf] }
 0x622   :  { %v1434_v51 = vmul.f32 0.01, %v1430_v42 }
 0x624   :  { %v4231_v1 = vmax.f32 %v1430_v42, %v1434_v51  ;;  %v1475_v42 = vld [vmem:[%s4892_s1 + $0x210] sm:$0xff]  ;;  %v2454_v51 = vld [vmem:[%s4892_s1 + $0x298] sm:$0xff] }
 0x626   :  { %1461 = vmatpush.msra.mxu3 %v4231_v1 }
 0x628   :  { %1462 = vmatpush.msra.mxu3 %v4234_v46 }
 0x62a   :  { %1463 = vmatpush.msra.mxu3 %v4237_v58 }
 0x62c   :  { %1464 = vmatpush.msra.mxu3 %v4240_v32 }
 0x62d   :  { %3246 = vmatmul.msk.f32.vlgmr.msra.gmra.mxu3 %vm4935_vm10, %v1439_v2  ;;  %vm4950_vm10 = vmmov %vm4942_vm0 }
 0x62e   :  { %1521 = vmatpush.msrb.mxu3 %v4231_v1 }
 0x630   :  { %1522 = vmatpush.msrb.mxu3 %v4234_v46 }
 0x632   :  { %1523 = vmatpush.msrb.mxu3 %v4237_v58 }
 0x634   :  { %1524 = vmatpush.msrb.mxu3 %v4240_v32 }
 0x635   :  { %3247 = vmatmul.msk.f32.vlgmr.msrb.gmra.mxu3 %vm4927_vm1, %v1469_v36  ;;  %v2493_v36 = vld [vmem:[%s4892_s1 + $0x2d0] sm:$0xff] }
 0x63d   :  { %3248 = vmatmul.msk.f32.gmra.mxu3 %vm4945_vm3, %v1470_v9  ;;  %vm4960_vm3 = vmmov %vm4942_vm0 }
 0x645   :  { %3249 = vmatmul.msk.f32.gmra.mxu3 %vm4948_vm2, %v1471_v13 }
 0x6b0   :  { %v1466_v3 = vpop.f32.mrf.mxu3 }
 0x6b1   :  { %v4251_v49 = vadd.f32 %v1466_v3, %v1444_v48 }
 0x6b3   :  { %1538 = vxpose.xlu0.b32.start.end [1/1] (short) %v4251_v49, 128  ;;  %1633 = vmatpush.msra.mxu0 %v4251_v49 }
 0x757   :  { %v1554_v59 = vpop.trf.xlu0 }
 0x758   :  { %v1690_v50 = vmul.f32 %v1554_v59, %v1554_v59  ;;  %3251 = vmatmul.msk.f32.vlgmr.msra.gmra.mxu0 %vm4936_vm5, %v1554_v59  ;;  %vm4951_vm5 = vmmov %vm4942_vm0  ;;  %v2451_v59 = vld [vmem:[%s4892_s1 + $0x280] sm:$0xff] }
 0x75a   :  { %v1706_v60 = vsel %vm4937_vm11, %v1690_v50, 0.0  ;;  %vm4952_vm11 = vmmov %vm4927_vm1 }
 0x75b   :  { %1707 = vadd.xlane.f32.xlu1 %v1706_v60  ;;  %3250 = vmatmul.msk.f32.gmra.mxu3 %vm4952_vm11, %v1472_v19  ;;  %vm4957_vm1 = vmmov %vm4942_vm0 }
 0x75f   :  { %v1555_v35 = vpop.trf.xlu0 }
 0x760   :  { %3252 = vmatmul.msk.f32.gmra.mxu0 %vm4938_vm12, %v1555_v35  ;;  %vm4953_vm12 = vmmov %vm4942_vm0  ;;  %v1691_v22 = vmul.f32 %v1555_v35, %v1555_v35 }
 0x767   :  { %v1556_v61 = vpop.trf.xlu0 }
 0x768   :  { %v1692_v30 = vmul.f32 %v1556_v61, %v1556_v61  ;;  %3253 = vmatmul.msk.f32.gmra.mxu0 %vm4939_vm7, %v1556_v61  ;;  %vm4954_vm7 = vmmov %vm4942_vm0  ;;  %v2494_v61 = vld [vmem:[%s4892_s1 + $0x2d8] sm:$0xff] }
 0x769   :  { %v1709_v23 = vsel %vm4954_vm7, %v1691_v22, 0.0 }
 0x76a   :  { %v1712_v52 = vsel %vm4940_vm13, %v1692_v30, 0.0  ;;  %vm4955_vm13 = vmmov %vm4942_vm0  ;;  %v1683_v30 = vmul.f32 %v4251_v49, %v4251_v49  ;;  %v2491_v49 = vld [vmem:[%s4892_s1 + $0x2c0] sm:$0xff] }
 0x76b   :  { %1713 = vadd.xlane.f32.xlu1 %v1712_v52 }
 0x76f   :  { %v1557_v4 = vpop.trf.xlu0 }
 0x770   :  { %v1693_v5 = vmul.f32 %v1557_v4, %v1557_v4  ;;  %3254 = vmatmul.msk.f32.gmra.mxu0 %vm4941_vm6, %v1557_v4  ;;  %vm4956_vm6 = vmmov %vm4942_vm0 }
 0x772   :  { %v1715_v6 = vsel %vm4942_vm0, %v1693_v5, 0.0  ;;  %v1684_v5 = vrot.slane %v1683_v30, 4 }
 0x773   :  { %1716 = vadd.xlane.f32.xlu1 %v1715_v6 }
 0x777   :  { %v1558_v7 = vpop.trf.xlu0 }
 0x778   :  { %v1694_v8 = vmul.f32 %v1558_v7, %v1558_v7  ;;  %3255 = vmatmul.msk.f32.gmra.mxu0 %vm4943_vm4, %v1558_v7  ;;  %vm4958_vm4 = vmmov %vm4942_vm0  ;;  %v1685_v7 = vadd.f32 %v1684_v5, %v1683_v30 }
 0x77a   :  { %v1718_v62 = vsel %vm4944_vm8, %v1694_v8, 0.0  ;;  %vm4959_vm8 = vmmov %vm4942_vm0  ;;  %v1686_v9 = vrot.slane %v1685_v7, 2 }
 0x77b   :  { %1719 = vadd.xlane.f32.xlu1 %v1718_v62 }
 0x77f   :  { %v1559_v10 = vpop.trf.xlu0 }
 0x780   :  { %v1695_v11 = vmul.f32 %v1559_v10, %v1559_v10  ;;  %3256 = vmatmul.msk.f32.gmra.mxu0 %vm4946_vm15, %v1559_v10  ;;  %vm4961_vm15 = vmmov %vm4942_vm0 }
 0x782   :  { %v1721_v12 = vsel %vm4947_vm9, %v1695_v11, 0.0  ;;  %v1687_v11 = vadd.f32 %v1686_v9, %v1685_v7 }
 0x783   :  { %1722 = vadd.xlane.f32.xlu1 %v1721_v12 }
 0x784   :  { %v1688_v13 = vrot.slane %v1687_v11, 1 }
 0x787   :  { %v1560_v14 = vpop.trf.xlu0 }
 0x788   :  { %v1696_v15 = vmul.f32 %v1560_v14, %v1560_v14  ;;  %3257 = vmatmul.msk.f32.gmra.mxu0 %vm4949_vm14, %v1560_v14 }
 0x78a   :  { %v1724_v16 = vsel %vm4950_vm10, %v1696_v15, 0.0  ;;  %v2570_v15 = vld [vmem:[%s4892_s1 + $0x310] sm:$0xff] }
 0x78b   :  { %1725 = vadd.xlane.f32.xlu1 %v1724_v16  ;;  %v1689_v16 = vadd.f32 %v1688_v13, %v1687_v11 }
 0x78f   :  { %v1561_v18 = vpop.trf.xlu0 }
 0x790   :  { %v1697_v17 = vmul.f32 %v1561_v18, %v1561_v18  ;;  %3258 = vmatmul.msk.f32.gmra.mxu0 %vm4951_vm5, %v1561_v18 }
 0x792   :  { %v1727_v20 = vsel %vm4953_vm12, %v1697_v17, 0.0 }
 0x793   :  { %1728 = vadd.xlane.f32.xlu1 %v1727_v20 }
 0x797   :  { %v1562_v27 = vpop.trf.xlu0 }
 0x798   :  { %3259 = vmatmul.msk.f32.gmra.mxu0 %vm4955_vm13, %v1562_v27 }
 0x79c   :  { %1710 = vadd.xlane.f32.xlu0 %v1709_v23 }
 0x79f   :  { %v1563_v43 = vpop.trf.xlu0 }
 0x7a0   :  { %3260 = vmatmul.msk.f32.gmra.mxu0 %vm4956_vm6, %v1563_v43  ;;  %v2568_v43 = vld [vmem:[%s4892_s1 + $0x300] sm:$0xff] }
 0x7a7   :  { %v1564_v39 = vpop.trf.xlu0 }
 0x7a8   :  { %3261 = vmatmul.msk.f32.gmra.mxu0 %vm4942_vm0, %v1564_v39 }
 0x7ac   :  { %1479 = vperm.xlu1 %3428, %v1473_v24  }
 0x7af   :  { %v1565_v63 = vpop.trf.xlu0 }
 0x7b0   :  { %3037 = vperm.xlu0 %3427, %v3034_v25   ;;  %3262 = vmatmul.msk.f32.gmra.mxu0 %vm4957_vm1, %v1565_v63 }
 0x7b4   :  { %1484 = vperm.xlu1 %3428, %v1474_v28  }
 0x7b7   :  { %v1566_v3 = vpop.trf.xlu0 }
 0x7b8   :  { %3263 = vmatmul.msk.f32.gmra.mxu0 %vm4958_vm4, %v1566_v3 }
 0x7bc   :  { %1489 = vperm.xlu1 %3428, %v1475_v42  }
 0x7bf   :  { %v1567_v35 = vpop.trf.xlu0 }
 0x7c0   :  { %3264 = vmatmul.msk.f32.gmra.mxu0 %vm4959_vm8, %v1567_v35 }
 0x7c4   :  { %1494 = vperm.xlu1 %3428, %v1476_v45  }
 0x7c7   :  { %v1568_v6 = vpop.trf.xlu0 }
 0x7c8   :  { %3265 = vmatmul.msk.f32.gmra.mxu0 %vm4960_vm3, %v1568_v6 }
 0x7cc   :  { %2472 = vperm.xlu1 %3428, %v2454_v51  }
 0x7ce   :  { %v1708_v48 = vpop.xlane.xlu1 %1707 }
 0x7cf   :  { %v1569_v10 = vpop.trf.xlu0  ;;  %v1754_v23 = vadd.f32 %v1708_v48, %v1689_v16 }
 0x7d0   :  { %3266 = vmatmul.msk.f32.gmra.mxu0 %vm4961_vm15, %v1569_v10 }
 0x7d4   :  { %2467 = vperm.xlu1 %3428, %v2453_v57  }
 0x7d5   :  { %v1635_v2 = vpop.f32.mrf.mxu0 }
 0x7d6   :  { %v1770_v17 = vmul.f32 2.0, %v1635_v2 }
 0x7d8   :  { %v1786_v27 = vsub.f32 %v1754_v23, %v1770_v17  ;;  %v2645_v23 = vld [vmem:[%s4892_s1 + $0x340] sm:$0xff] }
 0x7da   :  { %v1802_v39 = vmax.f32 %v1786_v27, 0.0 }
 0x7dc   :  { %2457 = vperm.xlu1 %3428, %v2451_v59  }
 0x7dd   :  { %v4316_v50 = vpop.f32.mrf.mxu0 }
 0x7de   :  { %v1714_v60 = vpop.xlane.xlu1 %1713 }
 0x7df   :  { %v1756_v24 = vadd.f32 %v1714_v60, %v1689_v16 }
 0x7e4   :  { %2512 = vperm.xlu1 %3428, %v2494_v61   ;;  %v1834_v61 = vand.u32 4294967168, %v1802_v39 }
 0x7e5   :  { %v1641_v52 = vpop.f32.mrf.mxu0 }
 0x7e6   :  { %v1717_v4 = vpop.xlane.xlu1 %1716  ;;  %v1772_v19 = vmul.f32 2.0, %v1641_v52  ;;  %v2647_v52 = vld [vmem:[%s4892_s1 + $0x350] sm:$0xff] }
 0x7e7   :  { %v1757_v35 = vadd.f32 %v1717_v4, %v1689_v16  ;;  %v4345_v4 = vor.u32 %v1834_v61, %v3771_v21 }
 0x7e8   :  { %v1788_v28 = vsub.f32 %v1756_v24, %v1772_v19 }
 0x7ea   :  { %v1804_v51 = vmax.f32 %v1788_v28, 0.0 }
 0x7ec   :  { %2507 = vperm.xlu1 %3428, %v2493_v36   ;;  %v1836_v30 = vand.u32 4294967168, %v1804_v51 }
 0x7ed   :  { %v1644_v8 = vpop.f32.mrf.mxu0 }
 0x7ee   :  { %v1720_v62 = vpop.xlane.xlu1 %1719  ;;  %v1773_v57 = vmul.f32 2.0, %v1644_v8  ;;  %v4348_v10 = vor.u32 %v1836_v30, %v3831_v0 }
 0x7ef   :  { %v1758_v20 = vadd.f32 %v1720_v62, %v1689_v16 }
 0x7f0   :  { %v1789_v5 = vsub.f32 %v1757_v35, %v1773_v57 }
 0x7f2   :  { %v1805_v11 = vmax.f32 %v1789_v5, 0.0 }
 0x7f4   :  { %2497 = vperm.xlu1 %3428, %v2491_v49   ;;  %v1837_v24 = vand.u32 4294967168, %v1805_v11 }
 0x7f5   :  { %v1647_v12 = vpop.f32.mrf.mxu0 }
 0x7f6   :  { %v1723_v14 = vpop.xlane.xlu1 %1722  ;;  %v1774_v18 = vmul.f32 2.0, %v1647_v12 }
 0x7f7   :  { %v1759_v6 = vadd.f32 %v1723_v14, %v1689_v16 }
 0x7f8   :  { %v1790_v25 = vsub.f32 %v1758_v20, %v1774_v18 }
 0x7fa   :  { %v1806_v45 = vmax.f32 %v1790_v25, 0.0 }
 0x7fc   :  { %2584 = vperm.xlu1 %3428, %v2570_v15   ;;  %v1838_v59 = vand.u32 4294967168, %v1806_v45  ;;  %v1771_v15 = vmul.f32 2.0, %v4316_v50 }
 0x7fd   :  { %v1650_v22 = vpop.f32.mrf.mxu0 }
 0x7fe   :  { %v1726_v42 = vpop.xlane.xlu1 %1725  ;;  %v1775_v48 = vmul.f32 2.0, %v1650_v22  ;;  %v4342_v7 = vor.u32 %v1838_v59, %v3781_v31  ;;  %v2846_v59 = vld [vmem:[%s4892_s1 + $0x3c8] sm:$0xff] }
 0x7ff   :  { %v1760_v2 = vadd.f32 %v1726_v42, %v1689_v16 }
 0x800   :  { %v1791_v8 = vsub.f32 %v1759_v6, %v1775_v48  ;;  %vm1884_vm9 = vcmp.lt.s32.totalorder %v4345_v4, %v4342_v7 }
 0x801   :  { %v1885_v27 = vsel %vm1884_vm9, %v4345_v4, %v4342_v7 }
 0x802   :  { %v1807_v17 = vmax.f32 %v1791_v8, 0.0  ;;  %vm1892_vm10 = vcmp.lt.s32.totalorder %v1885_v27, 2147483647 }
 0x804   :  { %2574 = vperm.xlu1 %3428, %v2568_v43   ;;  %v1839_v28 = vand.u32 4294967168, %v1807_v17 }
 0x805   :  { %v1653_v63 = vpop.f32.mrf.mxu0 }
 0x806   :  { %v1776_v3 = vmul.f32 2.0, %v1653_v63  ;;  %v1729_v62 = vpop.xlane.xlu1 %1728  ;;  %v4370_v63 = vor.u32 %v1839_v28, %v3775_v26 }
 0x807   :  { %v1761_v13 = vadd.f32 %v1729_v62, %v1689_v16  ;;  %v2844_v62 = vld [vmem:[%s4892_s1 + $0x3b8] sm:$0xff] }
 0x808   :  { %v1792_v60 = vsub.f32 %v1760_v2, %v1776_v3  ;;  %v1893_v2 = vsel %vm1892_vm10, %v1885_v27, 2147483647 }
 0x809   :  { %vm1900_vm13 = vcmp.lt.s32.totalorder %v1893_v2, 2147483647 }
 0x80a   :  { %v1808_v36 = vmax.f32 %v1792_v60, 0.0 }
 0x80c   :  { %v1840_v9 = vand.u32 4294967168, %v1808_v36  ;;  %2661 = vperm.xlu1 %3428, %v2647_v52   ;;  %v1901_v52 = vsel %vm1900_vm13, %v1893_v2, 2147483647 }
 0x80d   :  { %v1656_v49 = vpop.f32.mrf.mxu0 }
 0x80e   :  { %v4351_v12 = vor.u32 %v1840_v9, %v3826_v44  ;;  %v1777_v14 = vmul.f32 2.0, %v1656_v49 }
 0x80f   :  { %v1711_v18 = vpop.xlane.xlu0 %1710 }
 0x810   :  { %vm1888_vm2 = vcmp.lt.s32.totalorder %v4348_v10, %v4351_v12  ;;  %v1793_v19 = vsub.f32 %v1761_v13, %v1777_v14  ;;  %v1755_v20 = vadd.f32 %v1711_v18, %v1689_v16  ;;  %v4366_v16 = vor.u32 %v1837_v24, %v3803_v55  ;;  %v2886_v13 = vld [vmem:[%s4892_s1 + $0x408] sm:$0xff] }
 0x811   :  { %v1889_v22 = vsel %vm1888_vm2, %v4348_v10, %v4351_v12 }
 0x812   :  { %v1809_v25 = vmax.f32 %v1793_v19, 0.0  ;;  %v1787_v50 = vsub.f32 %v1755_v20, %v1771_v15  ;;  %vm1896_vm14 = vcmp.lt.s32.totalorder %v1889_v22, 2147483647  ;;  %v2884_v20 = vld [vmem:[%s4892_s1 + $0x3f8] sm:$0xff] }
 0x813   :  { %v1897_v51 = vsel %vm1896_vm14, %v1889_v22, 2147483647  ;;  %v4406_v22 = vpop.f32.mrf.mxu3 }
 0x814   :  { %v1841_v42 = vand.u32 4294967168, %v1809_v25  ;;  %v1803_v43 = vmax.f32 %v1787_v50, 0.0  ;;  %2651 = vperm.xlu1 %3428, %v2645_v23   ;;  %vm1904_vm11 = vcmp.lt.s32.totalorder %v1897_v51, 2147483647 }
 0x815   :  { %v1905_v60 = vsel %vm1904_vm11, %v1897_v51, 2147483647  ;;  %v1659_v18 = vpop.f32.mrf.mxu0 }
 0x816   :  { %v1857_v45 = vor.u32 %v1841_v42, %v3806_v56  ;;  %v1835_v39 = vand.u32 4294967168, %v1803_v43 }
 0x818   :  { %vm1890_vm5 = vcmp.lt.s32.totalorder %v4366_v16, %v1857_v45  ;;  %v4374_v57 = vor.u32 %v1835_v39, %v3778_v29 }
 0x819   :  { %v1891_v3 = vsel %vm1890_vm5, %v4366_v16, %v1857_v45 }
 0x81a   :  { %vm1898_vm12 = vcmp.lt.s32.totalorder %v1891_v3, 2147483647  ;;  %vm1886_vm7 = vcmp.lt.s32.totalorder %v4374_v57, %v4370_v63 }
 0x81b   :  { %v1899_v35 = vsel %vm1898_vm12, %v1891_v3, 2147483647  ;;  %v1887_v48 = vsel %vm1886_vm7, %v4374_v57, %v4370_v63 }
 0x81c   :  { %vm1906_vm6 = vcmp.lt.s32.totalorder %v1899_v35, 2147483647  ;;  %vm1894_vm0 = vcmp.lt.s32.totalorder %v1887_v48, 2147483647  ;;  %2864 = vperm.xlu1 %3428, %v2846_v59   ;;  %v1529_v59 = vpop.f32.mrf.mxu3 }
 0x81d   :  { %v1907_v61 = vsel %vm1906_vm6, %v1899_v35, 2147483647  ;;  %v1895_v30 = vsel %vm1894_vm0, %v1887_v48, 2147483647 }
 0x81e   :  { %vm1910_vm1 = vcmp.lt.s32.totalorder %v1905_v60, %v1907_v61  ;;  %vm1902_vm4 = vcmp.lt.s32.totalorder %v1895_v30, 2147483647  ;;  %v4408_v23 = vpop.permute.xlu1 %1479 }
 0x81f   :  { %v1903_v5 = vsel %vm1902_vm4, %v1895_v30, 2147483647  ;;  %v1911_v6 = vsel %vm1910_vm1, %v1905_v60, %v1907_v61  ;;  %v2961_v61 = vld [vmem:[%s4892_s1 + $0x438] sm:$0xff] }
 0x820   :  { %vm1908_vm8 = vcmp.lt.s32.totalorder %v1901_v52, %v1903_v5 }
 0x821   :  { %v1909_v36 = vsel %vm1908_vm8, %v1901_v52, %v1903_v5 }
 0x822   :  { %vm1912_vm3 = vcmp.lt.s32.totalorder %v1909_v36, %v1911_v6 }
 0x823   :  { %v1913_v8 = vsel %vm1912_vm3, %v1909_v36, %v1911_v6 }
 0x824   :  { %v1914_v9 = vrot.slane %v1913_v8, 4  ;;  %2854 = vperm.xlu1 %3428, %v2844_v62  }
 0x826   :  { %vm1915_vm15 = vcmp.lt.s32.totalorder %v1913_v8, %v1914_v9  ;;  %v1485_v35 = vpop.permute.xlu1 %1484 }
 0x827   :  { %v1916_v49 = vsel %vm1915_vm15, %v1913_v8, %v1914_v9  ;;  %v4538_v8 = vpop.f32.mrf.mxu3 }
 0x828   :  { %v1917_v11 = vrot.slane %v1916_v49, 2 }
 0x82a   :  { %vm1918_vm9 = vcmp.lt.s32.totalorder %v1916_v49, %v1917_v11 }
 0x82b   :  { %v1919_v14 = vsel %vm1918_vm9, %v1916_v49, %v1917_v11 }
 0x82c   :  { %v1920_v15 = vrot.slane %v1919_v14, 1  ;;  %2904 = vperm.xlu1 %3428, %v2886_v13  }
 0x82e   :  { %vm1921_vm2 = vcmp.lt.s32.totalorder %v1919_v14, %v1920_v15  ;;  %v4540_v9 = vpop.permute.xlu1 %1489 }
 0x82f   :  { %v4390_v17 = vsel %vm1921_vm2, %v1919_v14, %v1920_v15  ;;  %v1530_v14 = vadd.f32 %v1529_v59, %v1485_v35  ;;  %v1533_v35 = vadd.f32 %v4538_v8, %v4540_v9 }
 0x830   :  { %v4393_v19 = vand.u32 127, %v4390_v17 }
 0x832   :  { %vm1943_vm14 = vcmp.eq.s32.totalorder %v3842_v33, %v4393_v19  ;;  %vm1944_vm10 = vcmp.eq.s32.totalorder %v3845_v34, %v4393_v19  ;;  %vm1941_vm11 = vcmp.eq.s32.totalorder %v3850_v37, %v4393_v19  ;;  %vm1942_vm12 = vcmp.eq.s32.totalorder %v3853_v38, %v4393_v19 }
 0x833   :  { %vm3283_vm5 = vmpackc.low %vm1944_vm10, %vm1943_vm14  ;;  %vm1939_vm7 = vcmp.eq.s32.totalorder %v3859_v40, %v4393_v19  ;;  %vm1935_vm13 = vcmp.eq.s32.totalorder %v3826_v44, %v4393_v19  ;;  %vm1936_vm6 = vcmp.eq.s32.totalorder %v3806_v56, %v4393_v19  ;;  %vm1940_vm0 = vcmp.eq.s32.totalorder %v3862_v41, %v4393_v19 }
 0x834   :  { %2894 = vperm.xlu1 %3428, %v2884_v20   ;;  %3284 = vmatpush.bf16.msk.msrb.mxu1 %vm3283_vm5, %v3496_v54  ;;  %v4423_v24 = vsel %vm1935_vm13, 2147483647, %v4351_v12  ;;  %vm4907_vm1 = vcmp.eq.s32.totalorder %v3771_v21, %v4393_v19  ;;  %vm4906_vm4 = vcmp.eq.s32.totalorder %v3778_v29, %v4393_v19  ;;  %v4432_v25 = vsel %vm1936_vm6, 2147483647, %v1857_v45  ;;  %vm3285_vm15 = vmpackc.low %vm1942_vm12, %vm1941_vm11 }
 0x835   :  { %vm1933_vm8 = vcmp.eq.s32.totalorder %v3781_v31, %v4393_v19  ;;  %vm1934_vm3 = vcmp.eq.s32.totalorder %v3775_v26, %v4393_v19  ;;  %v4442_v12 = vsel %vm4907_vm1, 2147483647, %v4345_v4  ;;  %vm1937_vm9 = vcmp.eq.s32.totalorder %v3865_v47, %v4393_v19 }
 0x836   :  { %v4456_v50 = vsel %vm4906_vm4, 2147483647, %v4374_v57  ;;  %v4462_v4 = vsel %vm1933_vm8, 2147483647, %v4342_v7  ;;  %v4468_v27 = vsel %vm1934_vm3, 2147483647, %v4370_v63  ;;  %vm4909_vm10 = vcmp.eq.s32.totalorder %v3831_v0, %v4393_v19  ;;  %v1662_v63 = vpop.f32.mrf.mxu0 }
 0x837   :  { %vm2028_vm2 = vcmp.lt.s32.totalorder %v4442_v12, %v4462_v4  ;;  %vm2030_vm14 = vcmp.lt.s32.totalorder %v4456_v50, %v4468_v27  ;;  %vm4908_vm5 = vcmp.eq.s32.totalorder %v3803_v55, %v4393_v19  ;;  %v2963_v7 = vld [vmem:[%s4892_s1 + $0x448] sm:$0xff]  ;;  %vm1938_vm11 = vcmp.eq.s32.totalorder %v3878_v53, %v4393_v19 }
 0x838   :  { %3286 = vmatpush.bf16.msk.msrb.mxu1 %vm3285_vm15, %v3496_v54  ;;  %v2029_v28 = vsel %vm2028_vm2, %v4442_v12, %v4462_v4  ;;  %v2031_v42 = vsel %vm2030_vm14, %v4456_v50, %v4468_v27  ;;  %v4492_v43 = vsel %vm4909_vm10, 2147483647, %v4348_v10  ;;  %v4498_v45 = vsel %vm4908_vm5, 2147483647, %v4366_v16  ;;  %vm3287_vm14 = vmpackc.low %vm1940_vm0, %vm1939_vm7 }
 0x839   :  { %vm2036_vm12 = vcmp.lt.s32.totalorder %v2029_v28, 2147483647  ;;  %vm2038_vm15 = vcmp.lt.s32.totalorder %v2031_v42, 2147483647  ;;  %vm2032_vm2 = vcmp.lt.s32.totalorder %v4492_v43, %v4423_v24  ;;  %vm2034_vm4 = vcmp.lt.s32.totalorder %v4498_v45, %v4432_v25 }
 0x83a   :  { %v2037_v10 = vsel %vm2036_vm12, %v2029_v28, 2147483647  ;;  %v2039_v39 = vsel %vm2038_vm15, %v2031_v42, 2147483647  ;;  %v2033_v51 = vsel %vm2032_vm2, %v4492_v43, %v4423_v24  ;;  %v2035_v16 = vsel %vm2034_vm4, %v4498_v45, %v4432_v25  ;;  %vm3289_vm15 = vmpackc.low %vm1938_vm11, %vm1937_vm9  ;;  %v1535_v42 = vpop.f32.mrf.mxu3 }
 0x83b   :  { %vm2044_vm1 = vcmp.lt.s32.totalorder %v2037_v10, 2147483647  ;;  %vm2046_vm5 = vcmp.lt.s32.totalorder %v2039_v39, 2147483647  ;;  %vm2040_vm10 = vcmp.lt.s32.totalorder %v2033_v51, 2147483647  ;;  %vm4963_vm11 = vcmp.eq.s32.totalorder %v3803_v55, %v4393_v19 }
 0x83c   :  { %2981 = vperm.xlu1 %3428, %v2963_v7   ;;  %3288 = vmatpush.bf16.msk.msrb.mxu1 %vm3287_vm14, %v3496_v54  ;;  %v2045_v57 = vsel %vm2044_vm1, %v2037_v10, 2147483647  ;;  %v2047_v2 = vsel %vm2046_vm5, %v2039_v39, 2147483647  ;;  %v2041_v3 = vsel %vm2040_vm10, %v2033_v51, 2147483647  ;;  %vm3291_vm10 = vmpackc.low %vm1936_vm6, %vm1935_vm13  ;;  %vm4962_vm6 = vcmp.eq.s32.totalorder %v3831_v0, %v4393_v19  ;;  %v1495_v10 = vpop.permute.xlu1 %1494 }
 0x83d   :  { %vm2052_vm7 = vcmp.lt.s32.totalorder %v2045_v57, %v2047_v2  ;;  %vm2042_vm0 = vcmp.lt.s32.totalorder %v2035_v16, 2147483647  ;;  %vm2048_vm12 = vcmp.lt.s32.totalorder %v2041_v3, 2147483647  ;;  %vm3293_vm5 = vmpackc.low %vm1934_vm3, %vm1933_vm8  ;;  %v1527_v20 = vadd.f32 %v4406_v22, %v4408_v23 }
 0x83e   :  { %v2043_v48 = vsel %vm2042_vm0, %v2035_v16, 2147483647  ;;  %v2049_v60 = vsel %vm2048_vm12, %v2041_v3, 2147483647  ;;  %v2053_v30 = vsel %vm2052_vm7, %v2045_v57, %v2047_v2  ;;  %v1665_v6 = vpop.f32.mrf.mxu0  ;;  %vm3295_vm2 = vmpackc.low %vm4963_vm11, %vm4962_vm6  ;;  %vm4964_vm8 = vcmp.eq.s32.totalorder %v3771_v21, %v4393_v19 }
 0x83f   :  { %vm2050_vm4 = vcmp.lt.s32.totalorder %v2043_v48, 2147483647  ;;  %vm4965_vm3 = vcmp.eq.s32.totalorder %v3778_v29, %v4393_v19  ;;  %v4559_v7 = vpack.c.bf16 %v1530_v14, %v1527_v20  ;;  %v1536_v22 = vadd.f32 %v1535_v42, %v1495_v10 }
 0x840   :  { %3290 = vmatpush.bf16.msk.msrb.mxu1 %vm3289_vm15, %v3496_v54  ;;  %v2051_v52 = vsel %vm2050_vm4, %v2043_v48, 2147483647  ;;  %vm3297_vm7 = vmpackc.low %vm4965_vm3, %vm4964_vm8 }
 0x841   :  { %vm2054_vm1 = vcmp.lt.s32.totalorder %v2049_v60, %v2051_v52 }
 0x842   :  { %v2055_v5 = vsel %vm2054_vm1, %v2049_v60, %v2051_v52 }
 0x843   :  { %vm2056_vm9 = vcmp.lt.s32.totalorder %v2053_v30, %v2055_v5 }
 0x844   :  { %2971 = vperm.xlu1 %3428, %v2961_v61   ;;  %3292 = vmatpush.bf16.msk.msrb.mxu1 %vm3291_vm10, %v3496_v54  ;;  %v2057_v36 = vsel %vm2056_vm9, %v2053_v30, %v2055_v5  ;;  %v4645_v30 = vpack.c.bf16 %v1536_v22, %v1533_v35 }
 0x845   :  { %v2058_v62 = vrot.slane %v2057_v36, 4 }
 0x846   :  { %v1668_v13 = vpop.f32.mrf.mxu0 }
 0x847   :  { %vm2059_vm13 = vcmp.lt.s32.totalorder %v2057_v36, %v2058_v62 }
 0x848   :  { %3294 = vmatpush.bf16.msk.msrb.mxu1 %vm3293_vm5, %v3496_v54  ;;  %v2060_v49 = vsel %vm2059_vm13, %v2057_v36, %v2058_v62 }
 0x849   :  { %v2061_v11 = vrot.slane %v2060_v49, 2 }
 0x84b   :  { %vm2062_vm14 = vcmp.lt.s32.totalorder %v2060_v49, %v2061_v11 }
 0x84c   :  { %3296 = vmatpush.bf16.msk.msrb.mxu1 %vm3295_vm2, %v3496_v54  ;;  %v2063_v15 = vsel %vm2062_vm14, %v2060_v49, %v2061_v11 }
 0x84d   :  { %v2064_v18 = vrot.slane %v2063_v15, 1 }
 0x84e   :  { %v1671_v19 = vpop.f32.mrf.mxu0 }
 0x84f   :  { %vm2065_vm0 = vcmp.lt.s32.totalorder %v2063_v15, %v2064_v18 }
 0x850   :  { %3298 = vmatpush.bf16.msk.msrb.mxu1 %vm3297_vm7, %v3496_v54  ;;  %v4561_v28 = vsel %vm2065_vm0, %v2063_v15, %v2064_v18 }
 0x851   :  { %v4564_v39 = vand.u32 127, %v4561_v28 }
 0x853   :  { %1993 = vmatmul.bf16.vlgmr.msrb.gmra.mxu1 %v4559_v7  ;;  %vm2087_vm12 = vcmp.eq.s32.totalorder %v3842_v33, %v4564_v39  ;;  %vm2088_vm15 = vcmp.eq.s32.totalorder %v3845_v34, %v4564_v39  ;;  %vm2085_vm1 = vcmp.eq.s32.totalorder %v3850_v37, %v4564_v39  ;;  %vm2086_vm10 = vcmp.eq.s32.totalorder %v3853_v38, %v4564_v39 }
 0x854   :  { %vm3315_vm4 = vmpackc.low %vm2088_vm15, %vm2087_vm12  ;;  %vm2083_vm9 = vcmp.eq.s32.totalorder %v3859_v40, %v4564_v39  ;;  %vm2084_vm5 = vcmp.eq.s32.totalorder %v3862_v41, %v4564_v39  ;;  %vm2079_vm13 = vcmp.eq.s32.totalorder %v3826_v44, %v4564_v39  ;;  %vm2080_vm6 = vcmp.eq.s32.totalorder %v3806_v56, %v4564_v39 }
 0x855   :  { %3316 = vmatpush.bf16.msk.msra.mxu3 %vm3315_vm4, %v3496_v54  ;;  %vm2081_vm11 = vcmp.eq.s32.totalorder %v3865_v47, %v4564_v39  ;;  %v2166_v23 = vsel %vm2079_vm13, 2147483647, %v4423_v24  ;;  %vm4911_vm2 = vcmp.eq.s32.totalorder %v3771_v21, %v4564_v39  ;;  %vm4910_vm14 = vcmp.eq.s32.totalorder %v3778_v29, %v4564_v39  ;;  %vm3317_vm7 = vmpackc.low %vm2086_vm10, %vm2085_vm1 }
 0x856   :  { %v2167_v51 = vsel %vm2080_vm6, 2147483647, %v4432_v25  ;;  %vm2077_vm8 = vcmp.eq.s32.totalorder %v3781_v31, %v4564_v39  ;;  %vm2078_vm3 = vcmp.eq.s32.totalorder %v3775_v26, %v4564_v39  ;;  %v2160_v24 = vsel %vm4911_vm2, 2147483647, %v4442_v12  ;;  %vm3319_vm2 = vmpackc.low %vm2084_vm5, %vm2083_vm9  ;;  %v1674_v59 = vpop.f32.mrf.mxu0 }
 0x857   :  { %v2161_v25 = vsel %vm4910_vm14, 2147483647, %v4456_v50  ;;  %v2164_v16 = vsel %vm2077_vm8, 2147483647, %v4462_v4  ;;  %v2165_v63 = vsel %vm2078_vm3, 2147483647, %v4468_v27  ;;  %vm4913_vm0 = vcmp.eq.s32.totalorder %v3831_v0, %v4564_v39 }
 0x858   :  { %vm2176_vm12 = vcmp.lt.s32.totalorder %v2160_v24, %v2164_v16  ;;  %vm2178_vm15 = vcmp.lt.s32.totalorder %v2161_v25, %v2165_v63  ;;  %vm4912_vm4 = vcmp.eq.s32.totalorder %v3803_v55, %v4564_v39  ;;  %v2162_v12 = vsel %vm4913_vm0, 2147483647, %v4492_v43  ;;  %v2402_v59 = vld [vmem:[%s4892_s1 + $0x260] sm:$0xff] }
 0x859   :  { %3318 = vmatpush.bf16.msk.msra.mxu3 %vm3317_vm7, %v3496_v54  ;;  %v2177_v50 = vsel %vm2176_vm12, %v2160_v24, %v2164_v16  ;;  %v2179_v4 = vsel %vm2178_vm15, %v2161_v25, %v2165_v63  ;;  %v2163_v27 = vsel %vm4912_vm4, 2147483647, %v4498_v45  ;;  %vm2180_vm1 = vcmp.lt.s32.totalorder %v2162_v12, %v2166_v23 }
 0x85a   :  { %vm2184_vm10 = vcmp.lt.s32.totalorder %v2177_v50, 2147483647  ;;  %vm2186_vm7 = vcmp.lt.s32.totalorder %v2179_v4, 2147483647  ;;  %v2181_v57 = vsel %vm2180_vm1, %v2162_v12, %v2166_v23  ;;  %vm2182_vm14 = vcmp.lt.s32.totalorder %v2163_v27, %v2167_v51 }
 0x85b   :  { %v2185_v43 = vsel %vm2184_vm10, %v2177_v50, 2147483647  ;;  %v2187_v2 = vsel %vm2186_vm7, %v2179_v4, 2147483647  ;;  %v2183_v3 = vsel %vm2182_vm14, %v2163_v27, %v2167_v51  ;;  %vm2188_vm12 = vcmp.lt.s32.totalorder %v2181_v57, 2147483647 }
 0x85c   :  { %vm2082_vm15 = vcmp.eq.s32.totalorder %v3878_v53, %v4564_v39  ;;  %vm2192_vm4 = vcmp.lt.s32.totalorder %v2185_v43, 2147483647  ;;  %vm2194_vm0 = vcmp.lt.s32.totalorder %v2187_v2, 2147483647  ;;  %v2189_v45 = vsel %vm2188_vm12, %v2181_v57, 2147483647 }
 0x85d   :  { %3320 = vmatpush.bf16.msk.msra.mxu3 %vm3319_vm2, %v3496_v54  ;;  %v2193_v48 = vsel %vm2192_vm4, %v2185_v43, 2147483647  ;;  %v2195_v60 = vsel %vm2194_vm0, %v2187_v2, 2147483647  ;;  %vm2190_vm1 = vcmp.lt.s32.totalorder %v2183_v3, 2147483647  ;;  %vm3321_vm2 = vmpackc.low %vm2082_vm15, %vm2081_vm11 }
 0x85e   :  { %vm2200_vm9 = vcmp.lt.s32.totalorder %v2193_v48, %v2195_v60  ;;  %v2191_v61 = vsel %vm2190_vm1, %v2183_v3, 2147483647  ;;  %vm2196_vm5 = vcmp.lt.s32.totalorder %v2189_v45, 2147483647  ;;  %vm3323_vm0 = vmpackc.low %vm2080_vm6, %vm2079_vm13  ;;  %v1677_v8 = vpop.f32.mrf.mxu0  ;;  %vm4966_vm13 = vcmp.eq.s32.totalorder %v3831_v0, %v4564_v39 }
 0x85f   :  { %v2197_v52 = vsel %vm2196_vm5, %v2189_v45, 2147483647  ;;  %vm2198_vm14 = vcmp.lt.s32.totalorder %v2191_v61, 2147483647  ;;  %v2201_v5 = vsel %vm2200_vm9, %v2193_v48, %v2195_v60  ;;  %vm3325_vm11 = vmpackc.low %vm2078_vm3, %vm2077_vm8  ;;  %vm4967_vm6 = vcmp.eq.s32.totalorder %v3803_v55, %v4564_v39  ;;  %v2404_v8 = vld [vmem:[%s4892_s1 + $0x270] sm:$0xff] }
 0x860   :  { %v2199_v6 = vsel %vm2198_vm14, %v2191_v61, 2147483647  ;;  %vm3327_vm12 = vmpackc.low %vm4967_vm6, %vm4966_vm13  ;;  %vm4968_vm8 = vcmp.eq.s32.totalorder %v3771_v21, %v4564_v39  ;;  %vm4969_vm3 = vcmp.eq.s32.totalorder %v3778_v29, %v4564_v39 }
 0x861   :  { %3322 = vmatpush.bf16.msk.msra.mxu3 %vm3321_vm2, %v3496_v54  ;;  %vm2202_vm4 = vcmp.lt.s32.totalorder %v2197_v52, %v2199_v6  ;;  %vm3329_vm9 = vmpackc.low %vm4969_vm3, %vm4968_vm8 }
 0x862   :  { %v2203_v36 = vsel %vm2202_vm4, %v2197_v52, %v2199_v6 }
 0x863   :  { %1998 = vmatmul.bf16.gmra.mxu1 %v4645_v30  ;;  %vm2204_vm10 = vcmp.lt.s32.totalorder %v2201_v5, %v2203_v36 }
 0x864   :  { %v2205_v62 = vsel %vm2204_vm10, %v2201_v5, %v2203_v36 }
 0x865   :  { %3324 = vmatpush.bf16.msk.msra.mxu3 %vm3323_vm0, %v3496_v54  ;;  %v2206_v9 = vrot.slane %v2205_v62, 4 }
 0x866   :  { %v1680_v14 = vpop.f32.mrf.mxu0 }
 0x867   :  { %vm2207_vm7 = vcmp.lt.s32.totalorder %v2205_v62, %v2206_v9  ;;  %v2312_v14 = vld [vmem:[%s4892_s1 + $0x220] sm:$0xff] }
 0x868   :  { %v2208_v49 = vsel %vm2207_vm7, %v2205_v62, %v2206_v9 }
 0x869   :  { %3326 = vmatpush.bf16.msk.msra.mxu3 %vm3325_vm11, %v3496_v54  ;;  %v2209_v11 = vrot.slane %v2208_v49, 2 }
 0x86b   :  { %vm2210_vm15 = vcmp.lt.s32.totalorder %v2208_v49, %v2209_v11 }
 0x86c   :  { %v2211_v13 = vsel %vm2210_vm15, %v2208_v49, %v2209_v11  ;;  %v2316_v11 = vld [vmem:[%s4892_s1 + $0x240] sm:$0xff] }
 0x86d   :  { %3328 = vmatpush.bf16.msk.msra.mxu3 %vm3327_vm12, %v3496_v54  ;;  %v2212_v15 = vrot.slane %v2211_v13, 1 }
 0x86f   :  { %vm2213_vm1 = vcmp.lt.s32.totalorder %v2211_v13, %v2212_v15 }
 0x870   :  { %v4679_v18 = vsel %vm2213_vm1, %v2211_v13, %v2212_v15  ;;  %v2405_v15 = vld [vmem:[%s4892_s1 + $0x278] sm:$0xff] }
 0x871   :  { %3330 = vmatpush.bf16.msk.msra.mxu3 %vm3329_vm9, %v3496_v54  ;;  %v2215_v20 = vand.u32 127, %v4679_v18 }
 0x873   :  { %vm2235_vm5 = vcmp.eq.s32.totalorder %v3842_v33, %v2215_v20  ;;  %vm2236_vm2 = vcmp.eq.s32.totalorder %v3845_v34, %v2215_v20  ;;  %vm2233_vm4 = vcmp.eq.s32.totalorder %v3850_v37, %v2215_v20  ;;  %vm2234_vm0 = vcmp.eq.s32.totalorder %v3853_v38, %v2215_v20 }
 0x874   :  { %2137 = vmatmul.bf16.vlgmr.msra.gmra.mxu3 %v4559_v7  ;;  %vm3347_vm14 = vmpackc.low %vm2236_vm2, %vm2235_vm5  ;;  %vm2231_vm11 = vcmp.eq.s32.totalorder %v3859_v40, %v2215_v20  ;;  %vm2232_vm7 = vcmp.eq.s32.totalorder %v3862_v41, %v2215_v20  ;;  %vm2229_vm6 = vcmp.eq.s32.totalorder %v3865_v47, %v2215_v20  ;;  %vm2230_vm12 = vcmp.eq.s32.totalorder %v3878_v53, %v2215_v20 }
 0x875   :  { %3348 = vmatpush.bf16.msk.msra.mxu1 %vm3347_vm14, %v3496_v54  ;;  %vm3349_vm10 = vmpackc.low %vm2234_vm0, %vm2233_vm4  ;;  %vm2227_vm1 = vcmp.eq.s32.totalorder %v3826_v44, %v2215_v20  ;;  %vm2228_vm8 = vcmp.eq.s32.totalorder %v3806_v56, %v2215_v20  ;;  %vm2225_vm9 = vcmp.eq.s32.totalorder %v3781_v31, %v2215_v20  ;;  %vm2226_vm5 = vcmp.eq.s32.totalorder %v3775_v26, %v2215_v20 }
 0x876   :  { %vm3351_vm13 = vmpackc.low %vm2232_vm7, %vm2231_vm11  ;;  %vm2223_vm14 = vcmp.eq.s32.totalorder %v3831_v0, %v2215_v20  ;;  %vm2224_vm4 = vcmp.eq.s32.totalorder %v3803_v55, %v2215_v20  ;;  %vm2222_vm11 = vcmp.eq.s32.totalorder %v3778_v29, %v2215_v20  ;;  %v1924_v26 = vand.u32 4294967168, %v4390_v17 }
 0x877   :  { %vm3353_vm15 = vmpackc.low %vm2230_vm12, %vm2229_vm6 }
 0x878   :  { %vm3355_vm3 = vmpackc.low %vm2228_vm8, %vm2227_vm1  ;;  %v1926_v29 = vmul.f32 -10.0, %v1924_v26  ;;  %v2318_v26 = vld [vmem:[%s4892_s1 + $0x250] sm:$0xff] }
 0x879   :  { %3350 = vmatpush.bf16.msk.msra.mxu1 %vm3349_vm10, %v3496_v54  ;;  %vm3357_vm2 = vmpackc.low %vm2226_vm5, %vm2225_vm9  ;;  %vm2221_vm10 = vcmp.eq.s32.totalorder %v3771_v21, %v2215_v20  ;;  %v2068_v21 = vand.u32 4294967168, %v4561_v28  ;;  %v2313_v20 = vld [vmem:[%s4892_s1 + $0x228] sm:$0xff] }
 0x87a   :  { %vm3359_vm0 = vmpackc.low %vm2224_vm4, %vm2223_vm14  ;;  %v1927_v55 = vmul.f32 1.442695, %v1926_v29  ;;  %v2319_v29 = vld [vmem:[%s4892_s1 + $0x258] sm:$0xff] }
 0x87b   :  { %vm3361_vm7 = vmpackc.low %vm2222_vm11, %vm2221_vm10  ;;  %v2070_v31 = vmul.f32 -10.0, %v2068_v21  ;;  %v2314_v21 = vld [vmem:[%s4892_s1 + $0x230] sm:$0xff] }
 0x87c   :  { %3436 = vpow2.f32 %v1927_v55 }
 0x87d   :  { %3352 = vmatpush.bf16.msk.msra.mxu1 %vm3351_vm13, %v3496_v54  ;;  %v2071_v44 = vmul.f32 1.442695, %v2070_v31  ;;  %vm4970_vm13 = vcmask 261120   ;;  %v2315_v31 = vld [vmem:[%s4892_s1 + $0x238] sm:$0xff] }
 0x87e   :  { %vm4971_vm6 = vmmov %vm4970_vm13 }
 0x87f   :  { %3438 = vpow2.f32 %v2071_v44  ;;  %vm4972_vm12 = vmmov %vm4971_vm6 }
 0x880   :  { %vm4974_vm1 = vmmov %vm4971_vm6 }
 0x881   :  { %3354 = vmatpush.bf16.msk.msra.mxu1 %vm3353_vm15, %v3496_v54  ;;  %vm4973_vm15 = vmmov %vm4971_vm6 }
 0x882   :  { %v3437_v0 = vpop.eup %3436  ;;  %vm4975_vm8 = vmmov %vm4974_vm1 }
 0x883   :  { %vm4977_vm9 = vmmov %vm4974_vm1 }
 0x884   :  { %2142 = vmatmul.bf16.gmra.mxu3 %v4645_v30  ;;  %vm4978_vm5 = vmmov %vm4974_vm1 }
 0x885   :  { %3356 = vmatpush.bf16.msk.msra.mxu1 %vm3355_vm3, %v3496_v54  ;;  %v3439_v34 = vpop.eup %3438  ;;  %vm4976_vm3 = vmmov %vm4974_vm1 }
 0x886   :  { %vm4980_vm14 = vmmov %vm4974_vm1 }
 0x887   :  { %vm4981_vm4 = vmmov %vm4974_vm1 }
 0x889   :  { %3358 = vmatpush.bf16.msk.msra.mxu1 %vm3357_vm2, %v3496_v54  ;;  %vm4979_vm2 = vmmov %vm4974_vm1 }
 0x88d   :  { %3360 = vmatpush.bf16.msk.msra.mxu1 %vm3359_vm0, %v3496_v54  ;;  %vm4982_vm0 = vmmov %vm4974_vm1 }
 0x88e   :  { %vm4983_vm10 = vmmov %vm4982_vm0 }
 0x88f   :  { %vm4984_vm11 = vmmov %vm4982_vm0 }
 0x891   :  { %3362 = vmatpush.bf16.msk.msra.mxu1 %vm3361_vm7, %v3496_v54  ;;  %v2216_v54 = vand.u32 4294967168, %v4679_v18  ;;  %v2317_v18 = vld [vmem:[%s4892_s1 + $0x248] sm:$0xff]  ;;  %vm4985_vm7 = vmmov %vm4982_vm0 }
 0x894   :  { %2285 = vmatmul.bf16.vlgmr.msra.gmra.mxu1 %v4559_v7  ;;  %v2218_v7 = vmul.f32 -10.0, %v2216_v54 }
 0x895   :  { %2430 = vmatpush.msrb.mxu1 %v4231_v1 }
 0x896   :  { %v2219_v42 = vmul.f32 1.442695, %v2218_v7 }
 0x897   :  { %2431 = vmatpush.msrb.mxu1 %v4234_v46 }
 0x898   :  { %3440 = vpow2.f32 %v2219_v42 }
 0x899   :  { %2432 = vmatpush.msrb.mxu1 %v4237_v58 }
 0x89b   :  { %2433 = vmatpush.msrb.mxu1 %v4240_v32 }
 0x89e   :  { %v3441_v16 = vpop.eup %3440 }
 0x8a4   :  { %2290 = vmatmul.bf16.gmra.mxu1 %v4645_v30  ;;  %v2403_v30 = vld [vmem:[%s4892_s1 + $0x268] sm:$0xff] }
 0x8b4   :  { %3371 = vmatmul.msk.f32.vlgmr.msrb.gmra.mxu1 %vm4970_vm13, %v2402_v59  ;;  %vm4986_vm13 = vmmov %vm4982_vm0 }
 0x8bc   :  { %3372 = vmatmul.msk.f32.gmra.mxu1 %vm4971_vm6, %v2403_v30  ;;  %vm4987_vm6 = vmmov %vm4982_vm0 }
 0x8c4   :  { %3373 = vmatmul.msk.f32.gmra.mxu1 %vm4972_vm12, %v2404_v8  ;;  %vm4988_vm12 = vmmov %vm4982_vm0 }
 0x8cc   :  { %3374 = vmatmul.msk.f32.gmra.mxu1 %vm4975_vm8, %v2405_v15  ;;  %vm4991_vm8 = vmmov %vm4982_vm0 }
 0x8d0   :  { %v1994_v56 = vpop.f32.mrf.mxu1 }
 0x8d1   :  { %v2004_v38 = vmul.f32 %v3437_v0, %v1994_v56 }
 0x8d8   :  { %v1996_v33 = vpop.f32.mrf.mxu1 }
 0x8d9   :  { %v2005_v1 = vmul.f32 %v3437_v0, %v1996_v33 }
 0x8e0   :  { %v1999_v46 = vpop.f32.mrf.mxu1 }
 0x8e1   :  { %v2006_v10 = vmul.f32 %v3437_v0, %v1999_v46 }
 0x8e8   :  { %v2001_v19 = vpop.f32.mrf.mxu1 }
 0x8e9   :  { %v2007_v24 = vmul.f32 %v3437_v0, %v2001_v19  ;;  %v2463_v19 = vpop.permute.xlu2 %2462 }
 0x8f7   :  { %v2138_v37 = vpop.f32.mrf.mxu3 }
 0x8f8   :  { %v2148_v40 = vmul.f32 %v3439_v34, %v2138_v37  ;;  %v2473_v37 = vpop.permute.xlu1 %2472 }
 0x8fa   :  { %v2152_v41 = vadd.f32 %v2148_v40, %v2004_v38  ;;  %v2156_v47 = vmax.f32 %v2004_v38, %v2148_v40 }
 0x8ff   :  { %v2140_v53 = vpop.f32.mrf.mxu3 }
 0x900   :  { %v2149_v58 = vmul.f32 %v3439_v34, %v2140_v53  ;;  %v2468_v53 = vpop.permute.xlu1 %2467 }
 0x902   :  { %v2153_v32 = vadd.f32 %v2149_v58, %v2005_v1  ;;  %v2157_v17 = vmax.f32 %v2005_v1, %v2149_v58 }
 0x907   :  { %v2143_v28 = vpop.f32.mrf.mxu3 }
 0x908   :  { %v2150_v39 = vmul.f32 %v3439_v34, %v2143_v28 }
 0x90a   :  { %v2154_v22 = vadd.f32 %v2150_v39, %v2006_v10  ;;  %v2158_v23 = vmax.f32 %v2006_v10, %v2150_v39 }
 0x90f   :  { %v2145_v51 = vpop.f32.mrf.mxu3 }
 0x910   :  { %v2151_v25 = vmul.f32 %v3439_v34, %v2145_v51  ;;  %v2458_v51 = vpop.permute.xlu1 %2457 }
 0x911   :  { %v2286_v63 = vpop.f32.mrf.mxu1 }
 0x912   :  { %v2155_v12 = vadd.f32 %v2151_v25, %v2007_v24  ;;  %v2159_v50 = vmax.f32 %v2007_v24, %v2151_v25  ;;  %v2296_v4 = vmul.f32 %v3441_v16, %v2286_v63 }
 0x914   :  { %v2300_v27 = vadd.f32 %v2296_v4, %v2152_v41  ;;  %v2304_v57 = vmax.f32 %v2156_v47, %v2296_v4 }
 0x916   :  { %v2308_v13 = vmul.f32 0.33333334, %v2300_v27 }
 0x919   :  { %v2288_v43 = vpop.f32.mrf.mxu1 }
 0x91a   :  { %v2297_v2 = vmul.f32 %v3441_v16, %v2288_v43  ;;  %v2487_v43 = vld [vmem:[%s4892_s1 + $0x2a0] sm:$0xff] }
 0x91c   :  { %v2301_v3 = vadd.f32 %v2297_v2, %v2153_v32  ;;  %v2305_v45 = vmax.f32 %v2157_v17, %v2297_v2  ;;  %v2488_v2 = vld [vmem:[%s4892_s1 + $0x2a8] sm:$0xff] }
 0x91e   :  { %v2309_v49 = vmul.f32 0.33333334, %v2301_v3  ;;  %v2489_v3 = vld [vmem:[%s4892_s1 + $0x2b0] sm:$0xff] }
 0x921   :  { %v2291_v35 = vpop.f32.mrf.mxu1 }
 0x922   :  { %v2298_v48 = vmul.f32 %v3441_v16, %v2291_v35  ;;  %v2513_v35 = vpop.permute.xlu1 %2512 }
 0x924   :  { %v2302_v60 = vadd.f32 %v2298_v48, %v2154_v22  ;;  %v2306_v61 = vmax.f32 %v2158_v23, %v2298_v48 }
 0x926   :  { %v2310_v9 = vmul.f32 0.33333334, %v2302_v60 }
 0x929   :  { %v2293_v52 = vpop.f32.mrf.mxu1 }
 0x92a   :  { %v2299_v5 = vmul.f32 %v3441_v16, %v2293_v52  ;;  %v2508_v60 = vpop.permute.xlu1 %2507  ;;  %v2503_v52 = vpop.permute.xlu2 %2502 }
 0x92c   :  { %v2303_v6 = vadd.f32 %v2299_v5, %v2155_v12  ;;  %v2307_v36 = vmax.f32 %v2159_v50, %v2299_v5 }
 0x92e   :  { %v2311_v62 = vmul.f32 0.33333334, %v2303_v6  ;;  %2344 = vmatpush.msrb.mxu2 %v2307_v36 }
 0x930   :  { %2345 = vmatpush.msrb.mxu2 %v2306_v61  ;;  %2385 = vmatpush.msrb.mxu3 %v2311_v62 }
 0x931   :  { %v2435_v55 = vpop.f32.mrf.mxu1 }
 0x932   :  { %2346 = vmatpush.msrb.mxu2 %v2305_v45  ;;  %2386 = vmatpush.msrb.mxu3 %v2310_v9  ;;  %v2490_v45 = vld [vmem:[%s4892_s1 + $0x2b8] sm:$0xff]  ;;  %v2498_v62 = vpop.permute.xlu1 %2497 }
 0x934   :  { %2347 = vmatpush.msrb.mxu2 %v2304_v57  ;;  %2387 = vmatpush.msrb.mxu3 %v2309_v49 }
 0x935   :  { %3363 = vmatmul.msk.f32.vlgmr.msrb.gmra.mxu2 %vm4973_vm15, %v2316_v11  ;;  %vm4989_vm15 = vmmov %vm4982_vm0 }
 0x936   :  { %2388 = vmatpush.msrb.mxu3 %v2308_v13 }
 0x937   :  { %3367 = vmatmul.msk.f32.vlgmr.msrb.gmra.mxu3 %vm4974_vm1, %v2312_v14  ;;  %vm4990_vm1 = vmmov %vm4982_vm0 }
 0x939   :  { %v2438_v0 = vpop.f32.mrf.mxu1 }
 0x93d   :  { %3364 = vmatmul.msk.f32.gmra.mxu2 %vm4976_vm3, %v2317_v18  ;;  %vm4992_vm3 = vmmov %vm4982_vm0 }
 0x93f   :  { %3368 = vmatmul.msk.f32.gmra.mxu3 %vm4977_vm9, %v2313_v20  ;;  %vm4993_vm9 = vmmov %vm4982_vm0 }
 0x941   :  { %v2441_v40 = vpop.f32.mrf.mxu1 }
 0x945   :  { %3365 = vmatmul.msk.f32.gmra.mxu2 %vm4978_vm5, %v2318_v26  ;;  %v2564_v26 = vld [vmem:[%s4892_s1 + $0x2e0] sm:$0xff]  ;;  %vm4994_vm5 = vmmov %vm4982_vm0 }
 0x947   :  { %3369 = vmatmul.msk.f32.gmra.mxu3 %vm4979_vm2, %v2314_v21  ;;  %v2565_v21 = vld [vmem:[%s4892_s1 + $0x2e8] sm:$0xff]  ;;  %vm4995_vm2 = vmmov %vm4982_vm0 }
 0x949   :  { %v2444_v17 = vpop.f32.mrf.mxu1 }
 0x94d   :  { %3366 = vmatmul.msk.f32.gmra.mxu2 %vm4980_vm14, %v2319_v29  ;;  %v2566_v29 = vld [vmem:[%s4892_s1 + $0x2f0] sm:$0xff]  ;;  %vm4996_vm14 = vmmov %vm4982_vm0 }
 0x94f   :  { %3370 = vmatmul.msk.f32.gmra.mxu3 %vm4981_vm4, %v2315_v31  ;;  %v2567_v31 = vld [vmem:[%s4892_s1 + $0x2f8] sm:$0xff]  ;;  %vm4997_vm4 = vmmov %vm4982_vm0 }
 0x9b8   :  { %v2349_v56 = vpop.f32.mrf.mxu2 }
 0x9ba   :  { %v2390_v44 = vpop.f32.mrf.mxu3 }
 0x9bb   :  { %v2391_v46 = vadd.f32 %v2390_v44, %v2349_v56  ;;  %v2590_v44 = vpop.permute.xlu2 %2589 }
 0x9bd   :  { %v2447_v42 = vadd.f32 %v2435_v55, %v2391_v46 }
 0x9bf   :  { %v2475_v24 = vadd.f32 %v2458_v51, %v2447_v42  ;;  %v2641_v42 = vld [vmem:[%s4892_s1 + $0x320] sm:$0xff] }
 0x9c0   :  { %v2352_v33 = vpop.f32.mrf.mxu2 }
 0x9c1   :  { %v2479_v50 = vmul.f32 0.01, %v2475_v24 }
 0x9c2   :  { %v2393_v34 = vpop.f32.mrf.mxu3 }
 0x9c3   :  { %v2394_v54 = vadd.f32 %v2393_v34, %v2352_v33  ;;  %v2483_v57 = vmax.f32 %v2475_v24, %v2479_v50 }
 0x9c5   :  { %v2448_v7 = vadd.f32 %v2438_v0, %v2394_v54  ;;  %v2585_v0 = vpop.permute.xlu1 %2584 }
 0x9c7   :  { %v2476_v22 = vadd.f32 %v2463_v19, %v2448_v7  ;;  %v2644_v19 = vld [vmem:[%s4892_s1 + $0x338] sm:$0xff] }
 0x9c8   :  { %v2355_v38 = vpop.f32.mrf.mxu2 }
 0x9c9   :  { %v2480_v63 = vmul.f32 0.01, %v2476_v22 }
 0x9ca   :  { %v2396_v41 = vpop.f32.mrf.mxu3 }
 0x9cb   :  { %v2397_v47 = vadd.f32 %v2396_v41, %v2355_v38  ;;  %v2484_v27 = vmax.f32 %v2476_v22, %v2480_v63 }
 0x9cd   :  { %v2449_v58 = vadd.f32 %v2441_v40, %v2397_v47  ;;  %v2575_v47 = vpop.permute.xlu1 %2574 }
 0x9cf   :  { %v2477_v10 = vadd.f32 %v2468_v53, %v2449_v58 }
 0x9d0   :  { %v2358_v1 = vpop.f32.mrf.mxu2 }
 0x9d1   :  { %v2481_v25 = vmul.f32 0.01, %v2477_v10 }
 0x9d2   :  { %v2399_v32 = vpop.f32.mrf.mxu3 }
 0x9d3   :  { %v2400_v28 = vadd.f32 %v2399_v32, %v2358_v1  ;;  %v2485_v4 = vmax.f32 %v2477_v10, %v2481_v25  ;;  %v2642_v10 = vld [vmem:[%s4892_s1 + $0x328] sm:$0xff] }
 0x9d5   :  { %v2450_v39 = vadd.f32 %v2444_v17, %v2400_v28  ;;  %v2662_v24 = vpop.permute.xlu1 %2661 }
 0x9d7   :  { %v2478_v23 = vadd.f32 %v2473_v37, %v2450_v39  ;;  %v2580_v37 = vpop.permute.xlu2 %2579  ;;  %v2643_v39 = vld [vmem:[%s4892_s1 + $0x330] sm:$0xff] }
 0x9d9   :  { %v2482_v16 = vmul.f32 0.01, %v2478_v23 }
 0x9db   :  { %v2486_v12 = vmax.f32 %v2478_v23, %v2482_v16 }
 0x9dd   :  { %2539 = vmatpush.msra.mxu2 %v2486_v12 }
 0x9df   :  { %2540 = vmatpush.msra.mxu2 %v2485_v4  ;;  %v2667_v51 = vpop.permute.xlu2 %2666 }
 0x9e1   :  { %2541 = vmatpush.msra.mxu2 %v2484_v27 }
 0x9e3   :  { %2542 = vmatpush.msra.mxu2 %v2483_v57 }
 0x9e4   :  { %3375 = vmatmul.msk.f32.vlgmr.msra.gmra.mxu2 %vm4982_vm0, %v2487_v43 }
 0x9e7   :  { %v2657_v63 = vpop.permute.xlu2 %2656 }
 0x9ec   :  { %3376 = vmatmul.msk.f32.gmra.mxu2 %vm4983_vm10, %v2488_v2  ;;  %vm2769_vm10 = vcmask 1045504  }
 0x9f4   :  { %3377 = vmatmul.msk.f32.gmra.mxu2 %vm4984_vm11, %v2489_v3  ;;  %vm2756_vm11 = vcmask 48128  }
 0x9fc   :  { %3378 = vmatmul.msk.f32.gmra.mxu2 %vm4985_vm7, %v2490_v45  ;;  %vm4998_vm7 = vmmov %vm4982_vm0 }
 0xa67   :  { %v2544_v59 = vpop.f32.mrf.mxu2 }
 0xa68   :  { %v2545_v8 = vadd.f32 %v2544_v59, %v2498_v62 }
 0xa6a   :  { %v2556_v14 = vmul.f32 0.01, %v2545_v8 }
 0xa6c   :  { %v2560_v20 = vmax.f32 %v2545_v8, %v2556_v14 }
 0xa6f   :  { %v2547_v48 = vpop.f32.mrf.mxu2 }
 0xa70   :  { %v2548_v6 = vadd.f32 %v2547_v48, %v2503_v52  ;;  %v2749_v52 = vld [vmem:[%s4892_s1 + $0x378] sm:$0xff] }
 0xa72   :  { %v2557_v11 = vmul.f32 0.01, %v2548_v6 }
 0xa74   :  { %v2561_v18 = vmax.f32 %v2548_v6, %v2557_v11  ;;  %v2751_v6 = vld [vmem:[%s4892_s1 + $0x388] sm:$0xff]  ;;  %v2754_v11 = vld [vmem:[%s4892_s1 + $0x3a0] sm:$0xff] }
 0xa77   :  { %v2550_v61 = vpop.f32.mrf.mxu2 }
 0xa78   :  { %v2551_v30 = vadd.f32 %v2550_v61, %v2508_v60  ;;  %v2718_v61 = vld [vmem:[%s4892_s1 + $0x360] sm:$0x3f] }
 0xa7a   :  { %v2558_v9 = vmul.f32 0.01, %v2551_v30 }
 0xa7c   :  { %v2562_v15 = vmax.f32 %v2551_v30, %v2558_v9  ;;  %v2748_v30 = vld [vmem:[%s4892_s1 + $0x370] sm:$0xff] }
 0xa7d   :  { %v2752_v9 = vld [vmem:[%s4892_s1 + $0x390] sm:$0xff] }
 0xa7f   :  { %v2553_v5 = vpop.f32.mrf.mxu2 }
 0xa80   :  { %v2554_v36 = vadd.f32 %v2553_v5, %v2513_v35  ;;  %v2750_v5 = vld [vmem:[%s4892_s1 + $0x380] sm:$0xff] }
 0xa82   :  { %v2559_v49 = vmul.f32 0.01, %v2554_v36 }
 0xa84   :  { %v2563_v13 = vmax.f32 %v2554_v36, %v2559_v49  ;;  %v2723_v36 = vpop.permute.xlu2 %2722  ;;  %v2753_v49 = vld [vmem:[%s4892_s1 + $0x398] sm:$0xff] }
 0xa86   :  { %2616 = vmatpush.msra.mxu3 %v2563_v13  ;;  %v2755_v13 = vld [vmem:[%s4892_s1 + $0x3a8] sm:$0xff] }
 0xa88   :  { %2617 = vmatpush.msra.mxu3 %v2562_v15 }
 0xa8a   :  { %2618 = vmatpush.msra.mxu3 %v2561_v18 }
 0xa8c   :  { %2619 = vmatpush.msra.mxu3 %v2560_v20 }
 0xa8d   :  { %3379 = vmatmul.msk.f32.vlgmr.msra.gmra.mxu3 %vm4986_vm13, %v2564_v26  ;;  %vm4999_vm13 = vmmov %vm4982_vm0 }
 0xa8e   :  { %2826 = vmatpush.msrb.mxu3 %v2486_v12 }
 0xa90   :  { %2827 = vmatpush.msrb.mxu3 %v2485_v4 }
 0xa92   :  { %2828 = vmatpush.msrb.mxu3 %v2484_v27  ;;  %v2652_v27 = vpop.permute.xlu1 %2651 }
 0xa94   :  { %2829 = vmatpush.msrb.mxu3 %v2483_v57 }
 0xa95   :  { %3380 = vmatmul.msk.f32.gmra.mxu3 %vm4987_vm6, %v2565_v21  ;;  %vm5000_vm6 = vmmov %vm4982_vm0 }
 0xa9a   :  { %v2865_v21 = vpop.permute.xlu1 %2864 }
 0xa9d   :  { %3381 = vmatmul.msk.f32.gmra.mxu3 %vm4988_vm12, %v2566_v29  ;;  %vm5001_vm12 = vmmov %vm4982_vm0 }
 0xaa5   :  { %3382 = vmatmul.msk.f32.gmra.mxu3 %vm4989_vm15, %v2567_v31  ;;  %v2860_v31 = vpop.permute.xlu2 %2859  ;;  %vm5002_vm15 = vmmov %vm4982_vm0 }
 0xaad   :  { %3393 = vmatmul.msk.f32.vlgmr.msrb.gmra.mxu3 %vm4995_vm2, %v2748_v30  ;;  %v2957_v30 = vld [vmem:[%s4892_s1 + $0x418] sm:$0xff] }
 0xab5   :  { %3394 = vmatmul.msk.f32.gmra.mxu3 %vm4996_vm14, %v2749_v52  ;;  %v2958_v52 = vld [vmem:[%s4892_s1 + $0x420] sm:$0xff] }
 0xabd   :  { %3395 = vmatmul.msk.f32.gmra.mxu3 %vm4997_vm4, %v2750_v5  ;;  %v2959_v5 = vld [vmem:[%s4892_s1 + $0x428] sm:$0xff] }
 0xac5   :  { %3396 = vmatmul.msk.f32.gmra.mxu3 %vm4982_vm0, %v2751_v6 }
 0xb10   :  { %v2621_v55 = vpop.f32.mrf.mxu3 }
 0xb11   :  { %v2622_v53 = vadd.f32 %v2621_v55, %v2575_v47  ;;  %v2850_v47 = vpop.permute.xlu2 %2849 }
 0xb13   :  { %v2633_v32 = vmul.f32 0.01, %v2622_v53 }
 0xb15   :  { %v2637_v28 = vmax.f32 %v2622_v53, %v2633_v32 }
 0xb18   :  { %v2624_v56 = vpop.f32.mrf.mxu3 }
 0xb19   :  { %v2625_v40 = vadd.f32 %v2624_v56, %v2580_v37 }
 0xb1b   :  { %v2634_v46 = vmul.f32 0.01, %v2625_v40 }
 0xb1d   :  { %v2638_v7 = vmax.f32 %v2625_v40, %v2634_v46 }
 0xb20   :  { %v2627_v33 = vpop.f32.mrf.mxu3 }
 0xb21   :  { %v2628_v34 = vadd.f32 %v2627_v33, %v2585_v0 }
 0xb23   :  { %v2635_v54 = vmul.f32 0.01, %v2628_v34 }
 0xb25   :  { %v2639_v17 = vmax.f32 %v2628_v34, %v2635_v54 }
 0xb28   :  { %v2630_v38 = vpop.f32.mrf.mxu3 }
 0xb29   :  { %v2631_v41 = vadd.f32 %v2630_v38, %v2590_v44  ;;  %v2855_v38 = vpop.permute.xlu1 %2854 }
 0xb2b   :  { %v2636_v1 = vmul.f32 0.01, %v2631_v41 }
 0xb2d   :  { %v2640_v58 = vmax.f32 %v2631_v41, %v2636_v1 }
 0xb2f   :  { %2693 = vmatpush.msra.mxu1 %v2640_v58 }
 0xb30   :  { %v2831_v14 = vpop.f32.mrf.mxu3 }
 0xb31   :  { %2694 = vmatpush.msra.mxu1 %v2639_v17 }
 0xb33   :  { %2695 = vmatpush.msra.mxu1 %v2638_v7 }
 0xb35   :  { %2696 = vmatpush.msra.mxu1 %v2637_v28 }
 0xb36   :  { %3383 = vmatmul.msk.f32.vlgmr.msra.gmra.mxu1 %vm4990_vm1, %v2641_v42  ;;  %v2879_v42 = vld [vmem:[%s4892_s1 + $0x3d0] sm:$0xff]  ;;  %vm5003_vm1 = vmmov %vm4982_vm0 }
 0xb38   :  { %v2834_v18 = vpop.f32.mrf.mxu3 }
 0xb3e   :  { %3384 = vmatmul.msk.f32.gmra.mxu1 %vm4991_vm8, %v2642_v10  ;;  %v2880_v10 = vld [vmem:[%s4892_s1 + $0x3d8] sm:$0xff]  ;;  %vm5004_vm8 = vmmov %vm4982_vm0 }
 0xb40   :  { %v2837_v26 = vpop.f32.mrf.mxu3 }
 0xb46   :  { %3385 = vmatmul.msk.f32.gmra.mxu1 %vm4992_vm3, %v2643_v39  ;;  %v2881_v39 = vld [vmem:[%s4892_s1 + $0x3e0] sm:$0xff]  ;;  %vm5005_vm3 = vmmov %vm4982_vm0 }
 0xb48   :  { %v2840_v56 = vpop.f32.mrf.mxu3 }
 0xb4e   :  { %3386 = vmatmul.msk.f32.gmra.mxu1 %vm4993_vm9, %v2644_v19  ;;  %v2882_v19 = vld [vmem:[%s4892_s1 + $0x3e8] sm:$0xff]  ;;  %vm5006_vm9 = vmmov %vm4982_vm0 }
 0xbb3   :  { %v2698_v22 = vpop.f32.mrf.mxu1 }
 0xbb4   :  { %v2699_v57 = vadd.f32 %v2698_v22, %v2652_v27 }
 0xbb6   :  { %v2710_v59 = vmul.f32 0.01, %v2699_v57 }
 0xbb8   :  { %v2714_v60 = vmax.f32 %v2699_v57, %v2710_v59 }
 0xbbb   :  { %v2701_v23 = vpop.f32.mrf.mxu1 }
 0xbbc   :  { %v2702_v50 = vadd.f32 %v2701_v23, %v2657_v63 }
 0xbbe   :  { %v2711_v3 = vmul.f32 0.01, %v2702_v50 }
 0xbc0   :  { %v2715_v48 = vmax.f32 %v2702_v50, %v2711_v3 }
 0xbc3   :  { %v2704_v25 = vpop.f32.mrf.mxu1 }
 0xbc4   :  { %v2705_v16 = vadd.f32 %v2704_v25, %v2662_v24  ;;  %v2900_v24 = vpop.permute.xlu2 %2899 }
 0xbc6   :  { %v2712_v43 = vmul.f32 0.01, %v2705_v16 }
 0xbc8   :  { %v2716_v35 = vmax.f32 %v2705_v16, %v2712_v43 }
 0xbcb   :  { %v2707_v12 = vpop.f32.mrf.mxu1 }
 0xbcc   :  { %v2708_v4 = vadd.f32 %v2707_v12, %v2667_v51  ;;  %v2905_v51 = vpop.permute.xlu1 %2904  ;;  %v2890_v27 = vpop.permute.xlu2 %2889 }
 0xbce   :  { %v2713_v2 = vmul.f32 0.01, %v2708_v4 }
 0xbd0   :  { %v2717_v45 = vmax.f32 %v2708_v4, %v2713_v2 }
 0xbd2   :  { %2740 = vmatpush.msrb.mxu2 %v2717_v45 }
 0xbd4   :  { %2741 = vmatpush.msrb.mxu2 %v2716_v35  ;;  %v2895_v63 = vpop.permute.xlu1 %2894 }
 0xbd6   :  { %2742 = vmatpush.msrb.mxu2 %v2715_v48 }
 0xbd8   :  { %2743 = vmatpush.msrb.mxu2 %v2714_v60 }
 0xbd9   :  { %3387 = vmatmul.msk.f32.vlgmr.msrb.gmra.mxu2 %vm4994_vm5, %v2718_v61  ;;  %v2956_v61 = vld [vmem:[%s4892_s1 + $0x410] sm:$0xff] }
 0xc5c   :  { %v2745_v62 = vpop.f32.mrf.mxu2 }
 0xc5d   :  { %v2746_v8 = vadd.f32 %v2745_v62, %v2723_v36  ;;  %v2982_v62 = vpop.permute.xlu1 %2981 }
 0xc5f   :  { %3067 = vst [vmem:[#allocation2] sm:$0x3f] %v2746_v8  ;;  %3388 = vmatpush.msk.msra.mxu2 %vm2769_vm10, %v2746_v8  ;;  %v2977_v8 = vpop.permute.xlu2 %2976 }
 0xc60   :  { %3389 = vmatmul.msk.f32.vlgmr.msra.gmra.mxu2 %vm2756_vm11, %v2752_v9  ;;  %3079 = dma.vmem_to_hbm [thread:$0]  %s3075_s28, 128, %s3077_s26, [#allocation3]  }
 0xc68   :  { %3390 = vmatmul.msk.f32.gmra.mxu2 %vm2756_vm11, %v2753_v49 }
 0xc70   :  { %3391 = vmatmul.msk.f32.gmra.mxu2 %vm2756_vm11, %v2754_v11  ;;  %v2972_v11 = vpop.permute.xlu1 %2971 }
 0xc78   :  { %3392 = vmatmul.msk.f32.gmra.mxu2 %vm2756_vm11, %v2755_v13 }
 0xce3   :  { %v2790_v15 = vpop.f32.mrf.mxu2 }
 0xce4   :  { %v2832_v33 = vadd.f32 %v2831_v14, %v2790_v15 }
 0xce6   :  { %v2867_v53 = vadd.f32 %v2850_v47, %v2832_v33  ;;  %v3033_v33 = vld [vmem:[%s4892_s1 + $0x450] sm:$0xf]  ;;  %s3087_s1 = sshll.u32 %s4894_s3, 4  ;;  %s3088_s1 = int_to_ptr.hbm [resolvable:$true] %s3087_s1 }
 0xce8   :  { %v2871_v32 = vmul.f32 0.01, %v2867_v53 }
 0xcea   :  { %v2875_v28 = vmax.f32 %v2867_v53, %v2871_v32 }
 0xceb   :  { %v2793_v20 = vpop.f32.mrf.mxu2 }
 0xcec   :  { %v2835_v44 = vadd.f32 %v2834_v18, %v2793_v20  ;;  %v2967_v18 = vpop.permute.xlu2 %2966 }
 0xcee   :  { %v2868_v40 = vadd.f32 %v2855_v38, %v2835_v44 }
 0xcf0   :  { %v2872_v46 = vmul.f32 0.01, %v2868_v40 }
 0xcf2   :  { %v2876_v7 = vmax.f32 %v2868_v40, %v2872_v46 }
 0xcf3   :  { %v2796_v29 = vpop.f32.mrf.mxu2 }
 0xcf4   :  { %v2838_v55 = vadd.f32 %v2837_v26, %v2796_v29 }
 0xcf6   :  { %v2869_v34 = vadd.f32 %v2860_v31, %v2838_v55 }
 0xcf8   :  { %v2873_v54 = vmul.f32 0.01, %v2869_v34 }
 0xcfa   :  { %v2877_v17 = vmax.f32 %v2869_v34, %v2873_v54  ;;  %v3038_v34 = vpop.permute.xlu0 %3037 }
 0xcfb   :  { %v2799_v0 = vpop.f32.mrf.mxu2 }
 0xcfc   :  { %v2841_v37 = vadd.f32 %v2840_v56, %v2799_v0 }
 0xcfe   :  { %v2870_v41 = vadd.f32 %v2865_v21, %v2841_v37 }
 0xd00   :  { %v2874_v1 = vmul.f32 0.01, %v2870_v41 }
 0xd02   :  { %v2878_v58 = vmax.f32 %v2870_v41, %v2874_v1  ;;  %v3442_v41 = vld [vmem:[%s4891_s0] sm:$0xff] }
 0xd04   :  { %2931 = vmatpush.msrb.mxu0 %v2878_v58 }
 0xd06   :  { %2932 = vmatpush.msrb.mxu0 %v2877_v17 }
 0xd08   :  { %2933 = vmatpush.msrb.mxu0 %v2876_v7 }
 0xd0a   :  { %2934 = vmatpush.msrb.mxu0 %v2875_v28 }
 0xd0b   :  { %3397 = vmatmul.msk.f32.vlgmr.msrb.gmra.mxu0 %vm4998_vm7, %v2879_v42 }
 0xd13   :  { %3398 = vmatmul.msk.f32.gmra.mxu0 %vm4999_vm13, %v2880_v10 }
 0xd1b   :  { %3399 = vmatmul.msk.f32.gmra.mxu0 %vm5000_vm6, %v2881_v39 }
 0xd23   :  { %3400 = vmatmul.msk.f32.gmra.mxu0 %vm5001_vm12, %v2882_v19 }
 0xd88   :  { %v2936_v22 = vpop.f32.mrf.mxu0 }
 0xd89   :  { %v2937_v57 = vadd.f32 %v2936_v22, %v2890_v27 }
 0xd8b   :  { %v2948_v59 = vmul.f32 0.01, %v2937_v57 }
 0xd8d   :  { %v2952_v60 = vmax.f32 %v2937_v57, %v2948_v59 }
 0xd90   :  { %v2939_v23 = vpop.f32.mrf.mxu0 }
 0xd91   :  { %v2940_v50 = vadd.f32 %v2939_v23, %v2895_v63 }
 0xd93   :  { %v2949_v3 = vmul.f32 0.01, %v2940_v50 }
 0xd95   :  { %v2953_v48 = vmax.f32 %v2940_v50, %v2949_v3 }
 0xd98   :  { %v2942_v25 = vpop.f32.mrf.mxu0 }
 0xd99   :  { %v2943_v16 = vadd.f32 %v2942_v25, %v2900_v24 }
 0xd9b   :  { %v2950_v43 = vmul.f32 0.01, %v2943_v16 }
 0xd9d   :  { %v2954_v35 = vmax.f32 %v2943_v16, %v2950_v43 }
 0xda0   :  { %v2945_v12 = vpop.f32.mrf.mxu0 }
 0xda1   :  { %v2946_v4 = vadd.f32 %v2945_v12, %v2905_v51 }
 0xda3   :  { %v2951_v2 = vmul.f32 0.01, %v2946_v4 }
 0xda5   :  { %v2955_v45 = vmax.f32 %v2946_v4, %v2951_v2 }
 0xda7   :  { %3008 = vmatpush.msrb.mxu1 %v2955_v45 }
 0xda9   :  { %3009 = vmatpush.msrb.mxu1 %v2954_v35 }
 0xdab   :  { %3010 = vmatpush.msrb.mxu1 %v2953_v48 }
 0xdad   :  { %3011 = vmatpush.msrb.mxu1 %v2952_v60 }
 0xdae   :  { %3401 = vmatmul.msk.f32.vlgmr.msrb.gmra.mxu1 %vm5002_vm15, %v2956_v61 }
 0xdb6   :  { %3402 = vmatmul.msk.f32.gmra.mxu1 %vm5003_vm1, %v2957_v30 }
 0xdbe   :  { %3403 = vmatmul.msk.f32.gmra.mxu1 %vm5004_vm8, %v2958_v52 }
 0xdc6   :  { %3404 = vmatmul.msk.f32.gmra.mxu1 %vm5005_vm3, %v2959_v5 }
 0xe2b   :  { %v3013_v6 = vpop.f32.mrf.mxu1 }
 0xe2c   :  { %v3014_v20 = vadd.f32 %v3013_v6, %v2967_v18 }
 0xe2e   :  { %v3025_v55 = vmul.f32 0.01, %v3014_v20 }
 0xe30   :  { %v3029_v0 = vmax.f32 %v3014_v20, %v3025_v55 }
 0xe33   :  { %v3016_v36 = vpop.f32.mrf.mxu1 }
 0xe34   :  { %v3017_v14 = vadd.f32 %v3016_v36, %v2972_v11 }
 0xe36   :  { %v3026_v29 = vmul.f32 0.01, %v3017_v14 }
 0xe38   :  { %v3030_v44 = vmax.f32 %v3017_v14, %v3026_v29 }
 0xe3b   :  { %v3019_v9 = vpop.f32.mrf.mxu1 }
 0xe3c   :  { %v3020_v49 = vadd.f32 %v3019_v9, %v2977_v8 }
 0xe3e   :  { %v3027_v26 = vmul.f32 0.01, %v3020_v49 }
 0xe40   :  { %v3031_v56 = vmax.f32 %v3020_v49, %v3027_v26 }
 0xe43   :  { %v3022_v13 = vpop.f32.mrf.mxu1 }
 0xe44   :  { %v3023_v15 = vadd.f32 %v3022_v13, %v2982_v62 }
 0xe46   :  { %v3028_v21 = vmul.f32 0.01, %v3023_v15 }
 0xe48   :  { %v3032_v31 = vmax.f32 %v3023_v15, %v3028_v21 }
 0xe4a   :  { %3055 = vmatpush.msrb.mxu2 %v3032_v31 }
 0xe4c   :  { %3056 = vmatpush.msrb.mxu2 %v3031_v56 }
 0xe4e   :  { %3057 = vmatpush.msrb.mxu2 %v3030_v44 }
 0xe50   :  { %3058 = vmatpush.msrb.mxu2 %v3029_v0 }
 0xe51   :  { %3405 = vmatmul.msk.f32.vlgmr.msrb.gmra.mxu2 %vm5006_vm9, %v3033_v33 }
 0xed4   :  { %v3060_v37 = vpop.f32.mrf.mxu2 }
 0xed5   :  { %v3061_v38 = vadd.f32 %v3060_v37, %v3038_v34 }
 0xed7   :  { %v3064_v40 = vrot.slane %v3061_v38, 5 }
 0xed9   :  { %v3066_v47 = vadd.f32 %v3442_v41, %v3064_v40 }
 0xedb   :  { %3068 = vst [vmem:[#allocation4 - $0x3] sm:$0x78] %v3066_v47 }
 0xedc   :  { %3090 = dma.vmem_to_hbm [thread:$0]  %s3086_s30, 64, %s3088_s1, [#allocation5]  }
 0xedd   :  { %3491 = dma.done.wait [#allocation3], 128  }
 0xede   :  { %3492 = vsyncadd [#allocation3], 4294967168 }
 0xedf   :  { %3493 = dma.done.wait [#allocation5], 64  }
 0xee0   :  { %3494 = vsyncadd [#allocation5], 4294967232 }
 0xee1   :  { %3099 = vsyncpa [#allocation3], 1 }
 0xee2   :  { %3100 = vsyncpa [#allocation5], 1 }

</bundles_post_ra>
